<compile_context>
chip_gen: v6e
topology: v6e:2x2x1
jax: 0.10.0
libtpu: 0.0.40
codegen_flags: <defaults>
</compile_context>

<pallas_src>
import numpy as np

import jax
import jax.numpy as jnp
from jax.experimental import pallas as pl
from jax.experimental.pallas import tpu as pltpu  # noqa: F401  (TPU backend)


# ----------------------------------------------------------------------------
# Structural matrices (built once at init, in numpy)
# ----------------------------------------------------------------------------
def _conv_lane_mats(w_sp, cin, cout, k):
    """A[dy]: (w_sp*cin, w_sp*cout).  x_row @ A[dy] applies the dx/channel part
    of a 3x3 'same' conv for image row h feeding output row h; the dy row shift
    is applied separately with a left matmul (see _row_shift_mats)."""
    a = np.zeros((3, w_sp * cin, w_sp * cout), np.float32)
    for dy in range(3):
        for dx in range(3):
            for wo in range(w_sp):
                wi = wo + dx - 1
                if 0 <= wi < w_sp:
                    a[dy, wi * cin:(wi + 1) * cin, wo * cout:(wo + 1) * cout] = k[dy, dx]
    return a


def _row_shift_mats(b, h):
    """S[dy]: (b*h, b*h) block-diagonal per batch; output row h takes input row
    h + dy - 1 (zero at the image boundary).  S[1] is the identity."""
    s = np.zeros((3, b * h, b * h), np.float32)
    for dy in range(3):
        off = dy - 1
        for bi in range(b):
            for ho in range(h):
                hi = ho + off
                if 0 <= hi < h:
                    s[dy, bi * h + ho, bi * h + hi] = 1.0
    return s


def _pool_lane_mats(w_sp, c):
    """G[dx]: (w_sp*c, (w_sp//2)*c) lane gathers; max over dx pools along W."""
    g = np.zeros((2, w_sp * c, (w_sp // 2) * c), np.float32)
    for dx in range(2):
        for wo in range(w_sp // 2):
            for ci in range(c):
                g[dx, (2 * wo + dx) * c + ci, wo * c + ci] = 1.0
    return g


def _pool_row_mats(b, h):
    """R[dy]: (b*(h//2), b*h) row gathers; max over dy pools along H."""
    r = np.zeros((2, b * (h // 2), b * h), np.float32)
    for dy in range(2):
        for bi in range(b):
            for ho in range(h // 2):
                r[dy, bi * (h // 2) + ho, bi * h + 2 * ho + dy] = 1.0
    return r


def _row_select_mats(b, h):
    """R3[hi]: (b, b*h) selects row (batch, hi) for every batch."""
    r = np.zeros((h, b, b * h), np.float32)
    for hi in range(h):
        for bi in range(b):
            r[hi, bi, bi * h + hi] = 1.0
    return r


def _lane_pad_mats(h, wc):
    """PadH[hi]: (wc, h*wc) places a (w, c) lane block into slot hi of the
    flattened (h, w, c) lane layout."""
    p = np.zeros((h, wc, h * wc), np.float32)
    eye = np.eye(wc, dtype=np.float32)
    for hi in range(h):
        p[hi, :, hi * wc:(hi + 1) * wc] = eye
    return p


def _seq_select_mats(h, w, c):
    """Sel[t]: (h*w*c, h*c) picks time-step t (width column) with features
    ordered (h outer, c inner) from the flattened (h, w, c) lane layout."""
    s = np.zeros((w, h * w * c, h * c), np.float32)
    for t in range(w):
        for hi in range(h):
            for ci in range(c):
                s[t, hi * w * c + t * c + ci, hi * c + ci] = 1.0
    return s


# ----------------------------------------------------------------------------
# The fused Pallas kernel (everything VMEM-resident, 2-D matmuls only)
# ----------------------------------------------------------------------------
def _ocrnn_kernel(x1_ref, xo_ref,
                  a1_ref, s1_ref, b1_ref, g1_ref, r1_ref,
                  a2_ref, s2_ref, b2_ref, g2_ref, r2_ref,
                  r3_ref, padh_ref, w0_ref, wh0_ref, br0_ref,
                  wxs_ref, whs_ref, brs_ref,
                  fcw_ref, fcb_ref,
                  l0aw_ref, l0ab_ref, l0bw_ref, l0bb_ref,
                  clswi_ref, clswo_ref, clsb_ref,
                  out_ref):
    f32 = jnp.float32

    def dot(a, b):
        return jnp.dot(a, b, preferred_element_type=f32)

    def conv_block(x, a_ref, s_ref, b_ref):
        # 3x3 'same' conv + bias + ReLU as 3 (right, left) matmul pairs.
        acc = None
        for dy in range(3):
            p = dot(x, a_ref[dy])
            if dy != 1:                       # dy == 1 has identity row shift
                p = dot(s_ref[dy], p)
            acc = p if acc is None else acc + p
        return jnp.maximum(acc + b_ref[...], 0.0)

    def pool_block(y, g_ref, r_ref):
        # 2x2 max pool = max of lane gathers (W) then max of row gathers (H).
        pw = jnp.maximum(dot(y, g_ref[0]), dot(y, g_ref[1]))
        return jnp.maximum(dot(r_ref[0], pw), dot(r_ref[1], pw))

    # ---------------- synthetic CRNN backbone: conv stages ----------------
    y1 = conv_block(x1_ref[...], a1_ref, s1_ref, b1_ref)   # (B*16, 16*C)
    p1 = pool_block(y1, g1_ref, r1_ref)                    # (B*8,   8*C)
    y2 = conv_block(p1, a2_ref, s2_ref, b2_ref)            # (B*8,   8*C)
    p2 = pool_block(y2, g2_ref, r2_ref)                    # (B*4,   4*C)

    # relayout rows=(b,h), lanes=(w,c)  ->  rows=b, lanes=(h,w,c)
    zcat = None
    for hi in range(r3_ref.shape[0]):
        term = dot(dot(r3_ref[hi], p2), padh_ref[hi])
        zcat = term if zcat is None else zcat + term        # (B, H*W*C)

    # ---------------- stacked tanh RNN over time = width ----------------
    seq_len = w0_ref.shape[0]
    b_pad = zcat.shape[0]
    hidden = wh0_ref.shape[0]

    wh0 = wh0_ref[...]
    br0 = br0_ref[...]
    h = jnp.zeros((b_pad, hidden), f32)
    seq = []
    for t in range(seq_len):                 # layer 0: gather folded into W0[t]
        h = jnp.tanh(dot(zcat, w0_ref[t]) + dot(h, wh0) + br0)
        seq.append(h)

    for l in range(wxs_ref.shape[0]):        # layers 1 .. num_layers-1
        wx = wxs_ref[l]
        wh = whs_ref[l]
        br = brs_ref[l]
        h = jnp.zeros((b_pad, hidden), f32)
        nxt = []
        for t in range(seq_len):
            h = jnp.tanh(dot(seq[t], wx) + dot(h, wh) + br)
            nxt.append(h)
        seq = nxt

    f_crnn = dot(seq[-1], fcw_ref[...]) + fcb_ref[...]      # (B, 496)

    # ---------------- omic branch: linear0 (LeakyReLU, slope 0.01) --------
    def leaky(v):
        return jnp.where(v >= 0.0, v, 0.01 * v)

    o = leaky(dot(xo_ref[...], l0aw_ref[...]) + l0ab_ref[...])
    o = leaky(dot(o, l0bw_ref[...]) + l0bb_ref[...])

    # ---------------- classifier on cat([f_crnn, omic]) -------------------
    # concat avoided by splitting the classifier weight; output lane-padded.
    out_ref[...] = (dot(f_crnn, clswi_ref[...])
                    + dot(o, clswo_ref[...])
                    + clsb_ref[...])


# ----------------------------------------------------------------------------
# Parameter construction (deterministic, in-script)
# ----------------------------------------------------------------------------
def init_params(key, input_size, hidden_size, num_layers, omic_len, output_size,
                crnn_feat=496, img_hw=16, in_ch=3, b_pad=8, out_pad=128):
    assert num_layers >= 2, "synthetic backbone assumes a stacked RNN (>=2 layers)"
    assert img_hw % 4 == 0
    c1 = input_size
    h1 = w1 = img_hw
    h2 = w2 = img_hw // 2
    h3 = w3 = img_hw // 4
    rnn_in = h3 * c1

    ks = iter(jax.random.split(key, 16))

    def w(shape, scale=0.1):
        return (scale * jax.random.normal(next(ks), shape)).astype(jnp.float32)

    # --- underlying synthetic CRNN weights (real checkpoint unavailable) ---
    k1 = np.asarray(w((3, 3, in_ch, c1)))
    k2 = np.asarray(w((3, 3, c1, c1)))
    b1 = np.zeros((c1,), np.float32)
    b2 = np.zeros((c1,), np.float32)
    wx0 = np.asarray(w((rnn_in, hidden_size)))
    wh0 = w((hidden_size, hidden_size))
    br0 = jnp.zeros((1, hidden_size), jnp.float32)
    wxs = w((num_layers - 1, hidden_size, hidden_size))
    whs = w((num_layers - 1, hidden_size, hidden_size))
    brs = jnp.zeros((num_layers - 1, 1, hidden_size), jnp.float32)
    fc_w = w((hidden_size, crnn_feat))
    fc_b = jnp.zeros((1, crnn_feat), jnp.float32)

    # --- trainable OCRNN parts: linear0 + classifier ---
    l0a_w = w((omic_len, 2 * omic_len))
    l0a_b = jnp.zeros((1, 2 * omic_len), jnp.float32)
    l0b_w = w((2 * omic_len, omic_len))
    l0b_b = jnp.zeros((1, omic_len), jnp.float32)
    cls_w = np.asarray(w((crnn_feat + omic_len, output_size)))
    cls_b = np.zeros((output_size,), np.float32)

    # --- structural matrices (bake im2col shifts, pooling, relayout) ---
    a1 = _conv_lane_mats(w1, in_ch, c1, k1)
    s1 = _row_shift_mats(b_pad, h1)
    b1row = np.tile(b1, w1)[None, :]
    g1 = _pool_lane_mats(w1, c1)
    r1 = _pool_row_mats(b_pad, h1)
    a2 = _conv_lane_mats(w2, c1, c1, k2)
    s2 = _row_shift_mats(b_pad, h2)
    b2row = np.tile(b2, w2)[None, :]
    g2 = _pool_lane_mats(w2, c1)
    r2 = _pool_row_mats(b_pad, h2)
    r3 = _row_select_mats(b_pad, h3)
    padh = _lane_pad_mats(h3, w3 * c1)
    sel = _seq_select_mats(h3, w3, c1)
    w0 = np.einsum("tlf,fk->tlk", sel, wx0)      # fold seq gather into layer-0 Wx

    # classifier split ([f_crnn | omic]) + lane-dense (128) output padding
    cls_wi = np.zeros((crnn_feat, out_pad), np.float32)
    cls_wo = np.zeros((omic_len, out_pad), np.float32)
    cls_brow = np.zeros((1, out_pad), np.float32)
    cls_wi[:, :output_size] = cls_w[:crnn_feat]
    cls_wo[:, :output_size] = cls_w[crnn_feat:]
    cls_brow[0, :output_size] = cls_b

    weights = [a1, s1, b1row, g1, r1,
               a2, s2, b2row, g2, r2,
               r3, padh, w0, wh0, br0,
               wxs, whs, brs,
               fc_w, fc_b,
               l0a_w, l0a_b, l0b_w, l0b_b,
               cls_wi, cls_wo, cls_brow]
    weights = [jnp.asarray(a, dtype=jnp.float32) for a in weights]

    cfg = dict(b_pad=b_pad, img_hw=img_hw, in_ch=in_ch,
               output_size=output_size, out_pad=out_pad)
    return {"weights": weights, "cfg": cfg}


# ----------------------------------------------------------------------------
# Forward pass: a little JAX layout prep + ONE pallas_call
# ----------------------------------------------------------------------------
def ocrnn_forward(params, x_crnn, x_omic):
    cfg = params["cfg"]
    b = x_crnn.shape[0]
    b_pad, hw, cin = cfg["b_pad"], cfg["img_hw"], cfg["in_ch"]
    assert b <= b_pad, "increase b_pad in init_params for larger batches"
    assert x_crnn.shape[1:] == (cin, hw, hw)

    # NCHW -> NHWC -> rows=(batch, h), lanes=(w, c); pad batch to 8 sublanes.
    img = jnp.transpose(x_crnn, (0, 2, 3, 1)).astype(jnp.float32)
    img = jnp.pad(img, ((0, b_pad - b), (0, 0), (0, 0), (0, 0)))
    x1 = img.reshape(b_pad * hw, hw * cin)
    xo = jnp.pad(x_omic.astype(jnp.float32), ((0, b_pad - b), (0, 0)))

    out = pl.pallas_call(
        _ocrnn_kernel,
        out_shape=jax.ShapeDtypeStruct((b_pad, cfg["out_pad"]), jnp.float32),
    )(x1, xo, *params["weights"])

    return out[:b, :cfg["output_size"]]


# ----------------------------------------------------------------------------
if __name__ == "__main__":
    input_size = 8        # conv channel width of the synthetic CRNN
    hidden_size = 32
    num_layers = 2
    omic_len = 32
    output_size = 4
    batch = 2

    key = jax.random.PRNGKey(0)
    k_params, k_img, k_omic = jax.random.split(key, 3)

    params = init_params(k_params, input_size, hidden_size, num_layers,
                         omic_len, output_size)

    x_crnn = jax.random.normal(k_img, (batch, 3, 16, 16), dtype=jnp.float32)
    x_omic = jax.random.normal(k_omic, (batch, omic_len), dtype=jnp.float32)

    fwd = jax.jit(lambda a, b: ocrnn_forward(params, a, b))
    out = fwd(x_crnn, x_omic)
    jax.block_until_ready(out)

    assert out.shape == (batch, output_size), out.shape
    assert out.dtype == jnp.float32
    print("KERNEL_OK")
</pallas_src>

<mosaic_0001>
module attributes {stable_mosaic.version = 11 : i64} {
  func.func @_ocrnn_kernel(%arg0: memref<128x48xf32, #tpu.memory_space<vmem>>, %arg1: memref<8x32xf32, #tpu.memory_space<vmem>>, %arg2: memref<3x48x128xf32, #tpu.memory_space<vmem>>, %arg3: memref<3x128x128xf32, #tpu.memory_space<vmem>>, %arg4: memref<1x128xf32, #tpu.memory_space<vmem>>, %arg5: memref<2x128x64xf32, #tpu.memory_space<vmem>>, %arg6: memref<2x64x128xf32, #tpu.memory_space<vmem>>, %arg7: memref<3x64x64xf32, #tpu.memory_space<vmem>>, %arg8: memref<3x64x64xf32, #tpu.memory_space<vmem>>, %arg9: memref<1x64xf32, #tpu.memory_space<vmem>>, %arg10: memref<2x64x32xf32, #tpu.memory_space<vmem>>, %arg11: memref<2x32x64xf32, #tpu.memory_space<vmem>>, %arg12: memref<4x8x32xf32, #tpu.memory_space<vmem>>, %arg13: memref<4x32x128xf32, #tpu.memory_space<vmem>>, %arg14: memref<4x128x32xf32, #tpu.memory_space<vmem>>, %arg15: memref<32x32xf32, #tpu.memory_space<vmem>>, %arg16: memref<1x32xf32, #tpu.memory_space<vmem>>, %arg17: memref<1x32x32xf32, #tpu.memory_space<vmem>>, %arg18: memref<1x32x32xf32, #tpu.memory_space<vmem>>, %arg19: memref<1x1x32xf32, #tpu.memory_space<vmem>>, %arg20: memref<32x496xf32, #tpu.memory_space<vmem>>, %arg21: memref<1x496xf32, #tpu.memory_space<vmem>>, %arg22: memref<32x64xf32, #tpu.memory_space<vmem>>, %arg23: memref<1x64xf32, #tpu.memory_space<vmem>>, %arg24: memref<64x32xf32, #tpu.memory_space<vmem>>, %arg25: memref<1x32xf32, #tpu.memory_space<vmem>>, %arg26: memref<496x128xf32, #tpu.memory_space<vmem>>, %arg27: memref<32x128xf32, #tpu.memory_space<vmem>>, %arg28: memref<1x128xf32, #tpu.memory_space<vmem>>, %arg29: memref<8x128xf32, #tpu.memory_space<vmem>>) attributes {dimension_semantics = [], scalar_prefetch = 0 : i64, scratch_operands = 0 : i64, tpu.core_type = #tpu.core_type<tc>} {
    %c0 = arith.constant 0 : index
    %c0_0 = arith.constant 0 : index
    %0 = vector.load %arg0[%c0, %c0_0] : memref<128x48xf32, #tpu.memory_space<vmem>>, vector<128x48xf32>
    %c0_1 = arith.constant 0 : index
    %c0_2 = arith.constant 0 : index
    %c0_3 = arith.constant 0 : index
    %1 = vector.load %arg2[%c0_1, %c0_2, %c0_3] : memref<3x48x128xf32, #tpu.memory_space<vmem>>, vector<1x48x128xf32>
    %2 = vector.shape_cast %1 : vector<1x48x128xf32> to vector<48x128xf32>
    %cst = arith.constant dense<0.000000e+00> : vector<128x128xf32>
    %3 = tpu.matmul %0, %2, %cst {dimension_numbers = #tpu.dot_dimension_numbers<[1], [0], [0], [1], [0, 0, 1, 1], [], []>} : vector<128x48xf32>, vector<48x128xf32>, vector<128x128xf32> -> vector<128x128xf32>
    %c0_4 = arith.constant 0 : index
    %c0_5 = arith.constant 0 : index
    %c0_6 = arith.constant 0 : index
    %4 = vector.load %arg3[%c0_4, %c0_5, %c0_6] : memref<3x128x128xf32, #tpu.memory_space<vmem>>, vector<1x128x128xf32>
    %5 = vector.shape_cast %4 : vector<1x128x128xf32> to vector<128x128xf32>
    %cst_7 = arith.constant dense<0.000000e+00> : vector<128x128xf32>
    %6 = tpu.matmul %5, %3, %cst_7 {dimension_numbers = #tpu.dot_dimension_numbers<[1], [0], [0], [1], [0, 0, 1, 1], [], []>} : vector<128x128xf32>, vector<128x128xf32>, vector<128x128xf32> -> vector<128x128xf32>
    %c1 = arith.constant 1 : index
    %c0_8 = arith.constant 0 : index
    %c0_9 = arith.constant 0 : index
    %7 = vector.load %arg2[%c1, %c0_8, %c0_9] : memref<3x48x128xf32, #tpu.memory_space<vmem>>, vector<1x48x128xf32>
    %8 = vector.shape_cast %7 : vector<1x48x128xf32> to vector<48x128xf32>
    %cst_10 = arith.constant dense<0.000000e+00> : vector<128x128xf32>
    %9 = tpu.matmul %0, %8, %cst_10 {dimension_numbers = #tpu.dot_dimension_numbers<[1], [0], [0], [1], [0, 0, 1, 1], [], []>} : vector<128x48xf32>, vector<48x128xf32>, vector<128x128xf32> -> vector<128x128xf32>
    %10 = arith.addf %6, %9 : vector<128x128xf32>
    %c2 = arith.constant 2 : index
    %c0_11 = arith.constant 0 : index
    %c0_12 = arith.constant 0 : index
    %11 = vector.load %arg2[%c2, %c0_11, %c0_12] : memref<3x48x128xf32, #tpu.memory_space<vmem>>, vector<1x48x128xf32>
    %12 = vector.shape_cast %11 : vector<1x48x128xf32> to vector<48x128xf32>
    %cst_13 = arith.constant dense<0.000000e+00> : vector<128x128xf32>
    %13 = tpu.matmul %0, %12, %cst_13 {dimension_numbers = #tpu.dot_dimension_numbers<[1], [0], [0], [1], [0, 0, 1, 1], [], []>} : vector<128x48xf32>, vector<48x128xf32>, vector<128x128xf32> -> vector<128x128xf32>
    %c2_14 = arith.constant 2 : index
    %c0_15 = arith.constant 0 : index
    %c0_16 = arith.constant 0 : index
    %14 = vector.load %arg3[%c2_14, %c0_15, %c0_16] : memref<3x128x128xf32, #tpu.memory_space<vmem>>, vector<1x128x128xf32>
    %15 = vector.shape_cast %14 : vector<1x128x128xf32> to vector<128x128xf32>
    %cst_17 = arith.constant dense<0.000000e+00> : vector<128x128xf32>
    %16 = tpu.matmul %15, %13, %cst_17 {dimension_numbers = #tpu.dot_dimension_numbers<[1], [0], [0], [1], [0, 0, 1, 1], [], []>} : vector<128x128xf32>, vector<128x128xf32>, vector<128x128xf32> -> vector<128x128xf32>
    %17 = arith.addf %10, %16 : vector<128x128xf32>
    %c0_18 = arith.constant 0 : index
    %c0_19 = arith.constant 0 : index
    %18 = vector.load %arg4[%c0_18, %c0_19] : memref<1x128xf32, #tpu.memory_space<vmem>>, vector<1x128xf32>
    %19 = vector.broadcast %18 : vector<1x128xf32> to vector<128x128xf32>
    %20 = arith.addf %17, %19 : vector<128x128xf32>
    %cst_20 = arith.constant 0.000000e+00 : f32
    %21 = vector.broadcast %cst_20 : f32 to vector<128x128xf32>
    %22 = arith.maximumf %20, %21 : vector<128x128xf32>
    %c0_21 = arith.constant 0 : index
    %c0_22 = arith.constant 0 : index
    %c0_23 = arith.constant 0 : index
    %23 = vector.load %arg5[%c0_21, %c0_22, %c0_23] : memref<2x128x64xf32, #tpu.memory_space<vmem>>, vector<1x128x64xf32>
    %24 = vector.shape_cast %23 : vector<1x128x64xf32> to vector<128x64xf32>
    %cst_24 = arith.constant dense<0.000000e+00> : vector<128x64xf32>
    %25 = tpu.matmul %22, %24, %cst_24 {dimension_numbers = #tpu.dot_dimension_numbers<[1], [0], [0], [1], [0, 0, 1, 1], [], []>} : vector<128x128xf32>, vector<128x64xf32>, vector<128x64xf32> -> vector<128x64xf32>
    %c1_25 = arith.constant 1 : index
    %c0_26 = arith.constant 0 : index
    %c0_27 = arith.constant 0 : index
    %26 = vector.load %arg5[%c1_25, %c0_26, %c0_27] : memref<2x128x64xf32, #tpu.memory_space<vmem>>, vector<1x128x64xf32>
    %27 = vector.shape_cast %26 : vector<1x128x64xf32> to vector<128x64xf32>
    %cst_28 = arith.constant dense<0.000000e+00> : vector<128x64xf32>
    %28 = tpu.matmul %22, %27, %cst_28 {dimension_numbers = #tpu.dot_dimension_numbers<[1], [0], [0], [1], [0, 0, 1, 1], [], []>} : vector<128x128xf32>, vector<128x64xf32>, vector<128x64xf32> -> vector<128x64xf32>
    %29 = arith.maximumf %25, %28 : vector<128x64xf32>
    %c0_29 = arith.constant 0 : index
    %c0_30 = arith.constant 0 : index
    %c0_31 = arith.constant 0 : index
    %30 = vector.load %arg6[%c0_29, %c0_30, %c0_31] : memref<2x64x128xf32, #tpu.memory_space<vmem>>, vector<1x64x128xf32>
    %31 = vector.shape_cast %30 : vector<1x64x128xf32> to vector<64x128xf32>
    %cst_32 = arith.constant dense<0.000000e+00> : vector<64x64xf32>
    %32 = tpu.matmul %31, %29, %cst_32 {dimension_numbers = #tpu.dot_dimension_numbers<[1], [0], [0], [1], [0, 0, 1, 1], [], []>} : vector<64x128xf32>, vector<128x64xf32>, vector<64x64xf32> -> vector<64x64xf32>
    %c1_33 = arith.constant 1 : index
    %c0_34 = arith.constant 0 : index
    %c0_35 = arith.constant 0 : index
    %33 = vector.load %arg6[%c1_33, %c0_34, %c0_35] : memref<2x64x128xf32, #tpu.memory_space<vmem>>, vector<1x64x128xf32>
    %34 = vector.shape_cast %33 : vector<1x64x128xf32> to vector<64x128xf32>
    %cst_36 = arith.constant dense<0.000000e+00> : vector<64x64xf32>
    %35 = tpu.matmul %34, %29, %cst_36 {dimension_numbers = #tpu.dot_dimension_numbers<[1], [0], [0], [1], [0, 0, 1, 1], [], []>} : vector<64x128xf32>, vector<128x64xf32>, vector<64x64xf32> -> vector<64x64xf32>
    %36 = arith.maximumf %32, %35 : vector<64x64xf32>
    %c0_37 = arith.constant 0 : index
    %c0_38 = arith.constant 0 : index
    %c0_39 = arith.constant 0 : index
    %37 = vector.load %arg7[%c0_37, %c0_38, %c0_39] : memref<3x64x64xf32, #tpu.memory_space<vmem>>, vector<1x64x64xf32>
    %38 = vector.shape_cast %37 : vector<1x64x64xf32> to vector<64x64xf32>
    %cst_40 = arith.constant dense<0.000000e+00> : vector<64x64xf32>
    %39 = tpu.matmul %36, %38, %cst_40 {dimension_numbers = #tpu.dot_dimension_numbers<[1], [0], [0], [1], [0, 0, 1, 1], [], []>} : vector<64x64xf32>, vector<64x64xf32>, vector<64x64xf32> -> vector<64x64xf32>
    %c0_41 = arith.constant 0 : index
    %c0_42 = arith.constant 0 : index
    %c0_43 = arith.constant 0 : index
    %40 = vector.load %arg8[%c0_41, %c0_42, %c0_43] : memref<3x64x64xf32, #tpu.memory_space<vmem>>, vector<1x64x64xf32>
    %41 = vector.shape_cast %40 : vector<1x64x64xf32> to vector<64x64xf32>
    %cst_44 = arith.constant dense<0.000000e+00> : vector<64x64xf32>
    %42 = tpu.matmul %41, %39, %cst_44 {dimension_numbers = #tpu.dot_dimension_numbers<[1], [0], [0], [1], [0, 0, 1, 1], [], []>} : vector<64x64xf32>, vector<64x64xf32>, vector<64x64xf32> -> vector<64x64xf32>
    %c1_45 = arith.constant 1 : index
    %c0_46 = arith.constant 0 : index
    %c0_47 = arith.constant 0 : index
    %43 = vector.load %arg7[%c1_45, %c0_46, %c0_47] : memref<3x64x64xf32, #tpu.memory_space<vmem>>, vector<1x64x64xf32>
    %44 = vector.shape_cast %43 : vector<1x64x64xf32> to vector<64x64xf32>
    %cst_48 = arith.constant dense<0.000000e+00> : vector<64x64xf32>
    %45 = tpu.matmul %36, %44, %cst_48 {dimension_numbers = #tpu.dot_dimension_numbers<[1], [0], [0], [1], [0, 0, 1, 1], [], []>} : vector<64x64xf32>, vector<64x64xf32>, vector<64x64xf32> -> vector<64x64xf32>
    %46 = arith.addf %42, %45 : vector<64x64xf32>
    %c2_49 = arith.constant 2 : index
    %c0_50 = arith.constant 0 : index
    %c0_51 = arith.constant 0 : index
    %47 = vector.load %arg7[%c2_49, %c0_50, %c0_51] : memref<3x64x64xf32, #tpu.memory_space<vmem>>, vector<1x64x64xf32>
    %48 = vector.shape_cast %47 : vector<1x64x64xf32> to vector<64x64xf32>
    %cst_52 = arith.constant dense<0.000000e+00> : vector<64x64xf32>
    %49 = tpu.matmul %36, %48, %cst_52 {dimension_numbers = #tpu.dot_dimension_numbers<[1], [0], [0], [1], [0, 0, 1, 1], [], []>} : vector<64x64xf32>, vector<64x64xf32>, vector<64x64xf32> -> vector<64x64xf32>
    %c2_53 = arith.constant 2 : index
    %c0_54 = arith.constant 0 : index
    %c0_55 = arith.constant 0 : index
    %50 = vector.load %arg8[%c2_53, %c0_54, %c0_55] : memref<3x64x64xf32, #tpu.memory_space<vmem>>, vector<1x64x64xf32>
    %51 = vector.shape_cast %50 : vector<1x64x64xf32> to vector<64x64xf32>
    %cst_56 = arith.constant dense<0.000000e+00> : vector<64x64xf32>
    %52 = tpu.matmul %51, %49, %cst_56 {dimension_numbers = #tpu.dot_dimension_numbers<[1], [0], [0], [1], [0, 0, 1, 1], [], []>} : vector<64x64xf32>, vector<64x64xf32>, vector<64x64xf32> -> vector<64x64xf32>
    %53 = arith.addf %46, %52 : vector<64x64xf32>
    %c0_57 = arith.constant 0 : index
    %c0_58 = arith.constant 0 : index
    %54 = vector.load %arg9[%c0_57, %c0_58] : memref<1x64xf32, #tpu.memory_space<vmem>>, vector<1x64xf32>
    %55 = vector.broadcast %54 : vector<1x64xf32> to vector<64x64xf32>
    %56 = arith.addf %53, %55 : vector<64x64xf32>
    %cst_59 = arith.constant 0.000000e+00 : f32
    %57 = vector.broadcast %cst_59 : f32 to vector<64x64xf32>
    %58 = arith.maximumf %56, %57 : vector<64x64xf32>
    %c0_60 = arith.constant 0 : index
    %c0_61 = arith.constant 0 : index
    %c0_62 = arith.constant 0 : index
    %59 = vector.load %arg10[%c0_60, %c0_61, %c0_62] : memref<2x64x32xf32, #tpu.memory_space<vmem>>, vector<1x64x32xf32>
    %60 = vector.shape_cast %59 : vector<1x64x32xf32> to vector<64x32xf32>
    %cst_63 = arith.constant dense<0.000000e+00> : vector<64x32xf32>
    %61 = tpu.matmul %58, %60, %cst_63 {dimension_numbers = #tpu.dot_dimension_numbers<[1], [0], [0], [1], [0, 0, 1, 1], [], []>} : vector<64x64xf32>, vector<64x32xf32>, vector<64x32xf32> -> vector<64x32xf32>
    %c1_64 = arith.constant 1 : index
    %c0_65 = arith.constant 0 : index
    %c0_66 = arith.constant 0 : index
    %62 = vector.load %arg10[%c1_64, %c0_65, %c0_66] : memref<2x64x32xf32, #tpu.memory_space<vmem>>, vector<1x64x32xf32>
    %63 = vector.shape_cast %62 : vector<1x64x32xf32> to vector<64x32xf32>
    %cst_67 = arith.constant dense<0.000000e+00> : vector<64x32xf32>
    %64 = tpu.matmul %58, %63, %cst_67 {dimension_numbers = #tpu.dot_dimension_numbers<[1], [0], [0], [1], [0, 0, 1, 1], [], []>} : vector<64x64xf32>, vector<64x32xf32>, vector<64x32xf32> -> vector<64x32xf32>
    %65 = arith.maximumf %61, %64 : vector<64x32xf32>
    %c0_68 = arith.constant 0 : index
    %c0_69 = arith.constant 0 : index
    %c0_70 = arith.constant 0 : index
    %66 = vector.load %arg11[%c0_68, %c0_69, %c0_70] : memref<2x32x64xf32, #tpu.memory_space<vmem>>, vector<1x32x64xf32>
    %67 = vector.shape_cast %66 : vector<1x32x64xf32> to vector<32x64xf32>
    %cst_71 = arith.constant dense<0.000000e+00> : vector<32x32xf32>
    %68 = tpu.matmul %67, %65, %cst_71 {dimension_numbers = #tpu.dot_dimension_numbers<[1], [0], [0], [1], [0, 0, 1, 1], [], []>} : vector<32x64xf32>, vector<64x32xf32>, vector<32x32xf32> -> vector<32x32xf32>
    %c1_72 = arith.constant 1 : index
    %c0_73 = arith.constant 0 : index
    %c0_74 = arith.constant 0 : index
    %69 = vector.load %arg11[%c1_72, %c0_73, %c0_74] : memref<2x32x64xf32, #tpu.memory_space<vmem>>, vector<1x32x64xf32>
    %70 = vector.shape_cast %69 : vector<1x32x64xf32> to vector<32x64xf32>
    %cst_75 = arith.constant dense<0.000000e+00> : vector<32x32xf32>
    %71 = tpu.matmul %70, %65, %cst_75 {dimension_numbers = #tpu.dot_dimension_numbers<[1], [0], [0], [1], [0, 0, 1, 1], [], []>} : vector<32x64xf32>, vector<64x32xf32>, vector<32x32xf32> -> vector<32x32xf32>
    %72 = arith.maximumf %68, %71 : vector<32x32xf32>
    %c0_76 = arith.constant 0 : index
    %c0_77 = arith.constant 0 : index
    %c0_78 = arith.constant 0 : index
    %73 = vector.load %arg12[%c0_76, %c0_77, %c0_78] : memref<4x8x32xf32, #tpu.memory_space<vmem>>, vector<1x8x32xf32>
    %74 = vector.shape_cast %73 : vector<1x8x32xf32> to vector<8x32xf32>
    %cst_79 = arith.constant dense<0.000000e+00> : vector<8x32xf32>
    %75 = tpu.matmul %74, %72, %cst_79 {dimension_numbers = #tpu.dot_dimension_numbers<[1], [0], [0], [1], [0, 0, 1, 1], [], []>} : vector<8x32xf32>, vector<32x32xf32>, vector<8x32xf32> -> vector<8x32xf32>
    %c0_80 = arith.constant 0 : index
    %c0_81 = arith.constant 0 : index
    %c0_82 = arith.constant 0 : index
    %76 = vector.load %arg13[%c0_80, %c0_81, %c0_82] : memref<4x32x128xf32, #tpu.memory_space<vmem>>, vector<1x32x128xf32>
    %77 = vector.shape_cast %76 : vector<1x32x128xf32> to vector<32x128xf32>
    %cst_83 = arith.constant dense<0.000000e+00> : vector<8x128xf32>
    %78 = tpu.matmul %75, %77, %cst_83 {dimension_numbers = #tpu.dot_dimension_numbers<[1], [0], [0], [1], [0, 0, 1, 1], [], []>} : vector<8x32xf32>, vector<32x128xf32>, vector<8x128xf32> -> vector<8x128xf32>
    %c1_84 = arith.constant 1 : index
    %c0_85 = arith.constant 0 : index
    %c0_86 = arith.constant 0 : index
    %79 = vector.load %arg12[%c1_84, %c0_85, %c0_86] : memref<4x8x32xf32, #tpu.memory_space<vmem>>, vector<1x8x32xf32>
    %80 = vector.shape_cast %79 : vector<1x8x32xf32> to vector<8x32xf32>
    %cst_87 = arith.constant dense<0.000000e+00> : vector<8x32xf32>
    %81 = tpu.matmul %80, %72, %cst_87 {dimension_numbers = #tpu.dot_dimension_numbers<[1], [0], [0], [1], [0, 0, 1, 1], [], []>} : vector<8x32xf32>, vector<32x32xf32>, vector<8x32xf32> -> vector<8x32xf32>
    %c1_88 = arith.constant 1 : index
    %c0_89 = arith.constant 0 : index
    %c0_90 = arith.constant 0 : index
    %82 = vector.load %arg13[%c1_88, %c0_89, %c0_90] : memref<4x32x128xf32, #tpu.memory_space<vmem>>, vector<1x32x128xf32>
    %83 = vector.shape_cast %82 : vector<1x32x128xf32> to vector<32x128xf32>
    %cst_91 = arith.constant dense<0.000000e+00> : vector<8x128xf32>
    %84 = tpu.matmul %81, %83, %cst_91 {dimension_numbers = #tpu.dot_dimension_numbers<[1], [0], [0], [1], [0, 0, 1, 1], [], []>} : vector<8x32xf32>, vector<32x128xf32>, vector<8x128xf32> -> vector<8x128xf32>
    %85 = arith.addf %78, %84 : vector<8x128xf32>
    %c2_92 = arith.constant 2 : index
    %c0_93 = arith.constant 0 : index
    %c0_94 = arith.constant 0 : index
    %86 = vector.load %arg12[%c2_92, %c0_93, %c0_94] : memref<4x8x32xf32, #tpu.memory_space<vmem>>, vector<1x8x32xf32>
    %87 = vector.shape_cast %86 : vector<1x8x32xf32> to vector<8x32xf32>
    %cst_95 = arith.constant dense<0.000000e+00> : vector<8x32xf32>
    %88 = tpu.matmul %87, %72, %cst_95 {dimension_numbers = #tpu.dot_dimension_numbers<[1], [0], [0], [1], [0, 0, 1, 1], [], []>} : vector<8x32xf32>, vector<32x32xf32>, vector<8x32xf32> -> vector<8x32xf32>
    %c2_96 = arith.constant 2 : index
    %c0_97 = arith.constant 0 : index
    %c0_98 = arith.constant 0 : index
    %89 = vector.load %arg13[%c2_96, %c0_97, %c0_98] : memref<4x32x128xf32, #tpu.memory_space<vmem>>, vector<1x32x128xf32>
    %90 = vector.shape_cast %89 : vector<1x32x128xf32> to vector<32x128xf32>
    %cst_99 = arith.constant dense<0.000000e+00> : vector<8x128xf32>
    %91 = tpu.matmul %88, %90, %cst_99 {dimension_numbers = #tpu.dot_dimension_numbers<[1], [0], [0], [1], [0, 0, 1, 1], [], []>} : vector<8x32xf32>, vector<32x128xf32>, vector<8x128xf32> -> vector<8x128xf32>
    %92 = arith.addf %85, %91 : vector<8x128xf32>
    %c3 = arith.constant 3 : index
    %c0_100 = arith.constant 0 : index
    %c0_101 = arith.constant 0 : index
    %93 = vector.load %arg12[%c3, %c0_100, %c0_101] : memref<4x8x32xf32, #tpu.memory_space<vmem>>, vector<1x8x32xf32>
    %94 = vector.shape_cast %93 : vector<1x8x32xf32> to vector<8x32xf32>
    %cst_102 = arith.constant dense<0.000000e+00> : vector<8x32xf32>
    %95 = tpu.matmul %94, %72, %cst_102 {dimension_numbers = #tpu.dot_dimension_numbers<[1], [0], [0], [1], [0, 0, 1, 1], [], []>} : vector<8x32xf32>, vector<32x32xf32>, vector<8x32xf32> -> vector<8x32xf32>
    %c3_103 = arith.constant 3 : index
    %c0_104 = arith.constant 0 : index
    %c0_105 = arith.constant 0 : index
    %96 = vector.load %arg13[%c3_103, %c0_104, %c0_105] : memref<4x32x128xf32, #tpu.memory_space<vmem>>, vector<1x32x128xf32>
    %97 = vector.shape_cast %96 : vector<1x32x128xf32> to vector<32x128xf32>
    %cst_106 = arith.constant dense<0.000000e+00> : vector<8x128xf32>
    %98 = tpu.matmul %95, %97, %cst_106 {dimension_numbers = #tpu.dot_dimension_numbers<[1], [0], [0], [1], [0, 0, 1, 1], [], []>} : vector<8x32xf32>, vector<32x128xf32>, vector<8x128xf32> -> vector<8x128xf32>
    %99 = arith.addf %92, %98 : vector<8x128xf32>
    %c0_107 = arith.constant 0 : index
    %c0_108 = arith.constant 0 : index
    %100 = vector.load %arg15[%c0_107, %c0_108] : memref<32x32xf32, #tpu.memory_space<vmem>>, vector<32x32xf32>
    %c0_109 = arith.constant 0 : index
    %c0_110 = arith.constant 0 : index
    %101 = vector.load %arg16[%c0_109, %c0_110] : memref<1x32xf32, #tpu.memory_space<vmem>>, vector<1x32xf32>
    %cst_111 = arith.constant 0.000000e+00 : f32
    %102 = vector.broadcast %cst_111 : f32 to vector<8x32xf32>
    %c0_112 = arith.constant 0 : index
    %c0_113 = arith.constant 0 : index
    %c0_114 = arith.constant 0 : index
    %103 = vector.load %arg14[%c0_112, %c0_113, %c0_114] : memref<4x128x32xf32, #tpu.memory_space<vmem>>, vector<1x128x32xf32>
    %104 = vector.shape_cast %103 : vector<1x128x32xf32> to vector<128x32xf32>
    %cst_115 = arith.constant dense<0.000000e+00> : vector<8x32xf32>
    %105 = tpu.matmul %99, %104, %cst_115 {dimension_numbers = #tpu.dot_dimension_numbers<[1], [0], [0], [1], [0, 0, 1, 1], [], []>} : vector<8x128xf32>, vector<128x32xf32>, vector<8x32xf32> -> vector<8x32xf32>
    %cst_116 = arith.constant dense<0.000000e+00> : vector<8x32xf32>
    %106 = tpu.matmul %102, %100, %cst_116 {dimension_numbers = #tpu.dot_dimension_numbers<[1], [0], [0], [1], [0, 0, 1, 1], [], []>} : vector<8x32xf32>, vector<32x32xf32>, vector<8x32xf32> -> vector<8x32xf32>
    %107 = arith.addf %105, %106 : vector<8x32xf32>
    %108 = vector.broadcast %101 : vector<1x32xf32> to vector<8x32xf32>
    %109 = arith.addf %107, %108 : vector<8x32xf32>
    %110 = math.tanh %109 : vector<8x32xf32>
    %c1_117 = arith.constant 1 : index
    %c0_118 = arith.constant 0 : index
    %c0_119 = arith.constant 0 : index
    %111 = vector.load %arg14[%c1_117, %c0_118, %c0_119] : memref<4x128x32xf32, #tpu.memory_space<vmem>>, vector<1x128x32xf32>
    %112 = vector.shape_cast %111 : vector<1x128x32xf32> to vector<128x32xf32>
    %cst_120 = arith.constant dense<0.000000e+00> : vector<8x32xf32>
    %113 = tpu.matmul %99, %112, %cst_120 {dimension_numbers = #tpu.dot_dimension_numbers<[1], [0], [0], [1], [0, 0, 1, 1], [], []>} : vector<8x128xf32>, vector<128x32xf32>, vector<8x32xf32> -> vector<8x32xf32>
    %cst_121 = arith.constant dense<0.000000e+00> : vector<8x32xf32>
    %114 = tpu.matmul %110, %100, %cst_121 {dimension_numbers = #tpu.dot_dimension_numbers<[1], [0], [0], [1], [0, 0, 1, 1], [], []>} : vector<8x32xf32>, vector<32x32xf32>, vector<8x32xf32> -> vector<8x32xf32>
    %115 = arith.addf %113, %114 : vector<8x32xf32>
    %116 = vector.broadcast %101 : vector<1x32xf32> to vector<8x32xf32>
    %117 = arith.addf %115, %116 : vector<8x32xf32>
    %118 = math.tanh %117 : vector<8x32xf32>
    %c2_122 = arith.constant 2 : index
    %c0_123 = arith.constant 0 : index
    %c0_124 = arith.constant 0 : index
    %119 = vector.load %arg14[%c2_122, %c0_123, %c0_124] : memref<4x128x32xf32, #tpu.memory_space<vmem>>, vector<1x128x32xf32>
    %120 = vector.shape_cast %119 : vector<1x128x32xf32> to vector<128x32xf32>
    %cst_125 = arith.constant dense<0.000000e+00> : vector<8x32xf32>
    %121 = tpu.matmul %99, %120, %cst_125 {dimension_numbers = #tpu.dot_dimension_numbers<[1], [0], [0], [1], [0, 0, 1, 1], [], []>} : vector<8x128xf32>, vector<128x32xf32>, vector<8x32xf32> -> vector<8x32xf32>
    %cst_126 = arith.constant dense<0.000000e+00> : vector<8x32xf32>
    %122 = tpu.matmul %118, %100, %cst_126 {dimension_numbers = #tpu.dot_dimension_numbers<[1], [0], [0], [1], [0, 0, 1, 1], [], []>} : vector<8x32xf32>, vector<32x32xf32>, vector<8x32xf32> -> vector<8x32xf32>
    %123 = arith.addf %121, %122 : vector<8x32xf32>
    %124 = vector.broadcast %101 : vector<1x32xf32> to vector<8x32xf32>
    %125 = arith.addf %123, %124 : vector<8x32xf32>
    %126 = math.tanh %125 : vector<8x32xf32>
    %c3_127 = arith.constant 3 : index
    %c0_128 = arith.constant 0 : index
    %c0_129 = arith.constant 0 : index
    %127 = vector.load %arg14[%c3_127, %c0_128, %c0_129] : memref<4x128x32xf32, #tpu.memory_space<vmem>>, vector<1x128x32xf32>
    %128 = vector.shape_cast %127 : vector<1x128x32xf32> to vector<128x32xf32>
    %cst_130 = arith.constant dense<0.000000e+00> : vector<8x32xf32>
    %129 = tpu.matmul %99, %128, %cst_130 {dimension_numbers = #tpu.dot_dimension_numbers<[1], [0], [0], [1], [0, 0, 1, 1], [], []>} : vector<8x128xf32>, vector<128x32xf32>, vector<8x32xf32> -> vector<8x32xf32>
    %cst_131 = arith.constant dense<0.000000e+00> : vector<8x32xf32>
    %130 = tpu.matmul %126, %100, %cst_131 {dimension_numbers = #tpu.dot_dimension_numbers<[1], [0], [0], [1], [0, 0, 1, 1], [], []>} : vector<8x32xf32>, vector<32x32xf32>, vector<8x32xf32> -> vector<8x32xf32>
    %131 = arith.addf %129, %130 : vector<8x32xf32>
    %132 = vector.broadcast %101 : vector<1x32xf32> to vector<8x32xf32>
    %133 = arith.addf %131, %132 : vector<8x32xf32>
    %134 = math.tanh %133 : vector<8x32xf32>
    %c0_132 = arith.constant 0 : index
    %c0_133 = arith.constant 0 : index
    %c0_134 = arith.constant 0 : index
    %135 = vector.load %arg17[%c0_132, %c0_133, %c0_134] : memref<1x32x32xf32, #tpu.memory_space<vmem>>, vector<1x32x32xf32>
    %136 = vector.shape_cast %135 : vector<1x32x32xf32> to vector<32x32xf32>
    %c0_135 = arith.constant 0 : index
    %c0_136 = arith.constant 0 : index
    %c0_137 = arith.constant 0 : index
    %137 = vector.load %arg18[%c0_135, %c0_136, %c0_137] : memref<1x32x32xf32, #tpu.memory_space<vmem>>, vector<1x32x32xf32>
    %138 = vector.shape_cast %137 : vector<1x32x32xf32> to vector<32x32xf32>
    %c0_138 = arith.constant 0 : index
    %c0_139 = arith.constant 0 : index
    %c0_140 = arith.constant 0 : index
    %139 = vector.load %arg19[%c0_138, %c0_139, %c0_140] : memref<1x1x32xf32, #tpu.memory_space<vmem>>, vector<1x1x32xf32>
    %140 = vector.shape_cast %139 : vector<1x1x32xf32> to vector<1x32xf32>
    %cst_141 = arith.constant 0.000000e+00 : f32
    %141 = vector.broadcast %cst_141 : f32 to vector<8x32xf32>
    %cst_142 = arith.constant dense<0.000000e+00> : vector<8x32xf32>
    %142 = tpu.matmul %110, %136, %cst_142 {dimension_numbers = #tpu.dot_dimension_numbers<[1], [0], [0], [1], [0, 0, 1, 1], [], []>} : vector<8x32xf32>, vector<32x32xf32>, vector<8x32xf32> -> vector<8x32xf32>
    %cst_143 = arith.constant dense<0.000000e+00> : vector<8x32xf32>
    %143 = tpu.matmul %141, %138, %cst_143 {dimension_numbers = #tpu.dot_dimension_numbers<[1], [0], [0], [1], [0, 0, 1, 1], [], []>} : vector<8x32xf32>, vector<32x32xf32>, vector<8x32xf32> -> vector<8x32xf32>
    %144 = arith.addf %142, %143 : vector<8x32xf32>
    %145 = vector.broadcast %140 : vector<1x32xf32> to vector<8x32xf32>
    %146 = arith.addf %144, %145 : vector<8x32xf32>
    %147 = math.tanh %146 : vector<8x32xf32>
    %cst_144 = arith.constant dense<0.000000e+00> : vector<8x32xf32>
    %148 = tpu.matmul %118, %136, %cst_144 {dimension_numbers = #tpu.dot_dimension_numbers<[1], [0], [0], [1], [0, 0, 1, 1], [], []>} : vector<8x32xf32>, vector<32x32xf32>, vector<8x32xf32> -> vector<8x32xf32>
    %cst_145 = arith.constant dense<0.000000e+00> : vector<8x32xf32>
    %149 = tpu.matmul %147, %138, %cst_145 {dimension_numbers = #tpu.dot_dimension_numbers<[1], [0], [0], [1], [0, 0, 1, 1], [], []>} : vector<8x32xf32>, vector<32x32xf32>, vector<8x32xf32> -> vector<8x32xf32>
    %150 = arith.addf %148, %149 : vector<8x32xf32>
    %151 = vector.broadcast %140 : vector<1x32xf32> to vector<8x32xf32>
    %152 = arith.addf %150, %151 : vector<8x32xf32>
    %153 = math.tanh %152 : vector<8x32xf32>
    %cst_146 = arith.constant dense<0.000000e+00> : vector<8x32xf32>
    %154 = tpu.matmul %126, %136, %cst_146 {dimension_numbers = #tpu.dot_dimension_numbers<[1], [0], [0], [1], [0, 0, 1, 1], [], []>} : vector<8x32xf32>, vector<32x32xf32>, vector<8x32xf32> -> vector<8x32xf32>
    %cst_147 = arith.constant dense<0.000000e+00> : vector<8x32xf32>
    %155 = tpu.matmul %153, %138, %cst_147 {dimension_numbers = #tpu.dot_dimension_numbers<[1], [0], [0], [1], [0, 0, 1, 1], [], []>} : vector<8x32xf32>, vector<32x32xf32>, vector<8x32xf32> -> vector<8x32xf32>
    %156 = arith.addf %154, %155 : vector<8x32xf32>
    %157 = vector.broadcast %140 : vector<1x32xf32> to vector<8x32xf32>
    %158 = arith.addf %156, %157 : vector<8x32xf32>
    %159 = math.tanh %158 : vector<8x32xf32>
    %cst_148 = arith.constant dense<0.000000e+00> : vector<8x32xf32>
    %160 = tpu.matmul %134, %136, %cst_148 {dimension_numbers = #tpu.dot_dimension_numbers<[1], [0], [0], [1], [0, 0, 1, 1], [], []>} : vector<8x32xf32>, vector<32x32xf32>, vector<8x32xf32> -> vector<8x32xf32>
    %cst_149 = arith.constant dense<0.000000e+00> : vector<8x32xf32>
    %161 = tpu.matmul %159, %138, %cst_149 {dimension_numbers = #tpu.dot_dimension_numbers<[1], [0], [0], [1], [0, 0, 1, 1], [], []>} : vector<8x32xf32>, vector<32x32xf32>, vector<8x32xf32> -> vector<8x32xf32>
    %162 = arith.addf %160, %161 : vector<8x32xf32>
    %163 = vector.broadcast %140 : vector<1x32xf32> to vector<8x32xf32>
    %164 = arith.addf %162, %163 : vector<8x32xf32>
    %165 = math.tanh %164 : vector<8x32xf32>
    %c0_150 = arith.constant 0 : index
    %c0_151 = arith.constant 0 : index
    %166 = vector.load %arg20[%c0_150, %c0_151] : memref<32x496xf32, #tpu.memory_space<vmem>>, vector<32x496xf32>
    %cst_152 = arith.constant dense<0.000000e+00> : vector<8x496xf32>
    %167 = tpu.matmul %165, %166, %cst_152 {dimension_numbers = #tpu.dot_dimension_numbers<[1], [0], [0], [1], [0, 0, 1, 1], [], []>} : vector<8x32xf32>, vector<32x496xf32>, vector<8x496xf32> -> vector<8x496xf32>
    %c0_153 = arith.constant 0 : index
    %c0_154 = arith.constant 0 : index
    %168 = vector.load %arg21[%c0_153, %c0_154] : memref<1x496xf32, #tpu.memory_space<vmem>>, vector<1x496xf32>
    %169 = vector.broadcast %168 : vector<1x496xf32> to vector<8x496xf32>
    %170 = arith.addf %167, %169 : vector<8x496xf32>
    %c0_155 = arith.constant 0 : index
    %c0_156 = arith.constant 0 : index
    %171 = vector.load %arg1[%c0_155, %c0_156] : memref<8x32xf32, #tpu.memory_space<vmem>>, vector<8x32xf32>
    %c0_157 = arith.constant 0 : index
    %c0_158 = arith.constant 0 : index
    %172 = vector.load %arg22[%c0_157, %c0_158] : memref<32x64xf32, #tpu.memory_space<vmem>>, vector<32x64xf32>
    %cst_159 = arith.constant dense<0.000000e+00> : vector<8x64xf32>
    %173 = tpu.matmul %171, %172, %cst_159 {dimension_numbers = #tpu.dot_dimension_numbers<[1], [0], [0], [1], [0, 0, 1, 1], [], []>} : vector<8x32xf32>, vector<32x64xf32>, vector<8x64xf32> -> vector<8x64xf32>
    %c0_160 = arith.constant 0 : index
    %c0_161 = arith.constant 0 : index
    %174 = vector.load %arg23[%c0_160, %c0_161] : memref<1x64xf32, #tpu.memory_space<vmem>>, vector<1x64xf32>
    %175 = vector.broadcast %174 : vector<1x64xf32> to vector<8x64xf32>
    %176 = arith.addf %173, %175 : vector<8x64xf32>
    %cst_162 = arith.constant 0.000000e+00 : f32
    %177 = vector.broadcast %cst_162 : f32 to vector<8x64xf32>
    %178 = arith.cmpf oge, %176, %177 : vector<8x64xf32>
    %cst_163 = arith.constant 0.00999999977 : f32
    %179 = vector.broadcast %cst_163 : f32 to vector<8x64xf32>
    %180 = arith.mulf %179, %176 : vector<8x64xf32>
    %181 = arith.select %178, %176, %180 : vector<8x64xi1>, vector<8x64xf32>
    %c0_164 = arith.constant 0 : index
    %c0_165 = arith.constant 0 : index
    %182 = vector.load %arg24[%c0_164, %c0_165] : memref<64x32xf32, #tpu.memory_space<vmem>>, vector<64x32xf32>
    %cst_166 = arith.constant dense<0.000000e+00> : vector<8x32xf32>
    %183 = tpu.matmul %181, %182, %cst_166 {dimension_numbers = #tpu.dot_dimension_numbers<[1], [0], [0], [1], [0, 0, 1, 1], [], []>} : vector<8x64xf32>, vector<64x32xf32>, vector<8x32xf32> -> vector<8x32xf32>
    %c0_167 = arith.constant 0 : index
    %c0_168 = arith.constant 0 : index
    %184 = vector.load %arg25[%c0_167, %c0_168] : memref<1x32xf32, #tpu.memory_space<vmem>>, vector<1x32xf32>
    %185 = vector.broadcast %184 : vector<1x32xf32> to vector<8x32xf32>
    %186 = arith.addf %183, %185 : vector<8x32xf32>
    %cst_169 = arith.constant 0.000000e+00 : f32
    %187 = vector.broadcast %cst_169 : f32 to vector<8x32xf32>
    %188 = arith.cmpf oge, %186, %187 : vector<8x32xf32>
    %cst_170 = arith.constant 0.00999999977 : f32
    %189 = vector.broadcast %cst_170 : f32 to vector<8x32xf32>
    %190 = arith.mulf %189, %186 : vector<8x32xf32>
    %191 = arith.select %188, %186, %190 : vector<8x32xi1>, vector<8x32xf32>
    %c0_171 = arith.constant 0 : index
    %c0_172 = arith.constant 0 : index
    %192 = vector.load %arg26[%c0_171, %c0_172] : memref<496x128xf32, #tpu.memory_space<vmem>>, vector<496x128xf32>
    %cst_173 = arith.constant dense<0.000000e+00> : vector<8x128xf32>
    %193 = tpu.matmul %170, %192, %cst_173 {dimension_numbers = #tpu.dot_dimension_numbers<[1], [0], [0], [1], [0, 0, 1, 1], [], []>} : vector<8x496xf32>, vector<496x128xf32>, vector<8x128xf32> -> vector<8x128xf32>
    %c0_174 = arith.constant 0 : index
    %c0_175 = arith.constant 0 : index
    %194 = vector.load %arg27[%c0_174, %c0_175] : memref<32x128xf32, #tpu.memory_space<vmem>>, vector<32x128xf32>
    %cst_176 = arith.constant dense<0.000000e+00> : vector<8x128xf32>
    %195 = tpu.matmul %191, %194, %cst_176 {dimension_numbers = #tpu.dot_dimension_numbers<[1], [0], [0], [1], [0, 0, 1, 1], [], []>} : vector<8x32xf32>, vector<32x128xf32>, vector<8x128xf32> -> vector<8x128xf32>
    %196 = arith.addf %193, %195 : vector<8x128xf32>
    %c0_177 = arith.constant 0 : index
    %c0_178 = arith.constant 0 : index
    %197 = vector.load %arg28[%c0_177, %c0_178] : memref<1x128xf32, #tpu.memory_space<vmem>>, vector<1x128xf32>
    %198 = vector.broadcast %197 : vector<1x128xf32> to vector<8x128xf32>
    %199 = arith.addf %196, %198 : vector<8x128xf32>
    %c0_179 = arith.constant 0 : index
    %c0_180 = arith.constant 0 : index
    %200 = vector.load %arg29[%c0_179, %c0_180] : memref<8x128xf32, #tpu.memory_space<vmem>>, vector<8x128xf32>
    tpu.vector_store %arg29[%c0_179, %c0_180], %199 {strides = array<i32>} : memref<8x128xf32, #tpu.memory_space<vmem>>, vector<8x128xf32>,
    return
  }
}

</mosaic_0001>

<bundles_post_ra>
// kernel: _lambda_.1
= control target key start
LH: loop header
LB: loop body
LE: loop exit
PB: predicated region body
PF: predicated region fallthrough
CT: control target
= control target key end

     0   :  { %s7749_s6 = smov 1   ;;  %s7750_s10 = smov 2   ;;  %s8907_s0 = inlined_call_operand.smem [shape: u32[30], index: -1, kind: input, shape index: {}] }
   0x1   :  { %s7807_s5 = sld [smem:[%s8907_s0]]   ;;  %s7751_s14 = smov 3  }
   0x2   :  { %s7812_s9 = sld [smem:[%s8907_s0 + %s7749_s6]]   ;;  %s7752_s18 = smov 4  }
   0x3   :  { %s7817_s13 = sld [smem:[%s8907_s0 + %s7750_s10]]   ;;  %s7753_s22 = smov 5  }
   0x4   :  { %s7822_s17 = sld [smem:[%s8907_s0 + %s7751_s14]]   ;;  %s7754_s26 = smov 6  }
   0x5   :  { %s7827_s21 = sld [smem:[%s8907_s0 + %s7752_s18]]   ;;  %s7755_s30 = smov 7  }
   0x6   :  { %s7832_s25 = sld [smem:[%s8907_s0 + %s7753_s22]]   ;;  %s7756_s4 = smov 8  }
   0x7   :  { %8912 = sst [smem:[#allocation33_spill]] %s7807_s5  ;;  %s7757_s10 = smov 9  }
   0x8   :  { %8913 = sst [smem:[#allocation34_spill]] %s7812_s9  ;;  %s7758_s15 = smov 10  }
   0x9   :  { %s7837_s29 = sld [smem:[%s8907_s0 + %s7754_s26]]   ;;  %s7759_s20 = smov 11  }
   0xa   :  { %s7842_s3 = sld [smem:[%s8907_s0 + %s7755_s30]]   ;;  %s7760_s26 = smov 12  }
   0xb   :  { %8914 = sst [smem:[#allocation35_spill]] %s7827_s21  ;;  %s7761_s1 = smov 13  }
   0xc   :  { %8915 = sst [smem:[#allocation36_spill]] %s7832_s25  ;;  %s7762_s7 = smov 14  }
   0xd   :  { %s7847_s8 = sld [smem:[%s8907_s0 + %s7756_s4]]   ;;  %s7764_s22 = smov 16  }
   0xe   :  { %s7852_s14 = sld [smem:[%s8907_s0 + %s7757_s10]]   ;;  %s7765_s28 = smov 17  }
   0xf   :  { %s7857_s19 = sld [smem:[%s8907_s0 + %s7758_s15]]   ;;  %s7763_s15 = smov 15  }
  0x10   :  { %s7862_s24 = sld [smem:[%s8907_s0 + %s7759_s20]]  }
  0x11   :  { %s7867_s30 = sld [smem:[%s8907_s0 + %s7760_s26]]  }
  0x12   :  { %s7872_s6 = sld [smem:[%s8907_s0 + %s7761_s1]]  }
  0x13   :  { %s7877_s12 = sld [smem:[%s8907_s0 + %s7762_s7]]   ;;  %s7766_s7 = smov 18  }
  0x14   :  { %8916 = sst [smem:[#allocation37_spill]] %s7852_s14 }
  0x15   :  { %s7882_s20 = sld [smem:[%s8907_s0 + %s7763_s15]]   ;;  %s7767_s15 = smov 19  }
  0x16   :  { %s7887_s27 = sld [smem:[%s8907_s0 + %s7764_s22]]   ;;  %s7768_s22 = smov 20  }
  0x17   :  { %8917 = sst [smem:[#allocation38_spill]] %s7867_s30 }
  0x18   :  { %s7892_s4 = sld [smem:[%s8907_s0 + %s7765_s28]]   ;;  %s7769_s28 = smov 21  }
  0x19   :  { %8918 = sst [smem:[#allocation39_spill]] %s7877_s12 }
  0x1a   :  { %s7897_s9 = sld [smem:[%s8907_s0 + %s7766_s7]]   ;;  %s7770_s7 = smov 22  }
  0x1b   :  { %s7902_s12 = sld [smem:[%s8907_s0 + %s7767_s15]]   ;;  %s7771_s15 = smov 23  }
  0x1c   :  { %8919 = sst [smem:[#allocation40_spill]] %s7887_s27 }
  0x1d   :  { %s7907_s27 = sld [smem:[%s8907_s0 + %s7768_s22]]   ;;  %s7772_s22 = smov 24  }
  0x1e   :  { %s7912_s30 = sld [smem:[%s8907_s0 + %s7769_s28]]   ;;  %s7773_s28 = smov 25  }
  0x1f   :  { %s7917_s14 = sld [smem:[%s8907_s0 + %s7770_s7]]   ;;  %s7774_s7 = smov 26  }
  0x20   :  { %s7927_s21 = sld [smem:[%s8907_s0 + %s7772_s22]]   ;;  %s7776_s22 = smov 28  }
  0x21   :  { %8920 = sst [smem:[#allocation41_spill]] %s7902_s12 }
  0x22   :  { %s7922_s12 = sld [smem:[%s8907_s0 + %s7771_s15]]   ;;  %s7775_s15 = smov 27  }
  0x23   :  { %s7937_s25 = sld [smem:[%s8907_s0 + %s7774_s7]]  }
  0x24   :  { %8921 = sst [smem:[#allocation42_spill]] %s7912_s30 }
  0x25   :  { %s7932_s30 = sld [smem:[%s8907_s0 + %s7773_s28]]   ;;  %s7777_s28 = smov 29  }
  0x26   :  { %s7947_s5 = sld [smem:[%s8907_s0 + %s7776_s22]]  }
  0x28   :  { %8922 = sst [smem:[#allocation43_spill]] %s7922_s12 }
  0x29   :  { %s7942_s12 = sld [smem:[%s8907_s0 + %s7775_s15]]  }
  0x2b   :  { %8923 = sst [smem:[#allocation44_spill]] %s7932_s30 }
  0x2c   :  { %s7952_s30 = sld [smem:[%s8907_s0 + %s7777_s28]]  }
  0x2d   :  { %64 = vsyncpa [#allocation3], 0 }
  0x2e   :  { %65 = vsyncpa [#allocation5], 0 }
  0x2f   :  { %66 = vsyncpa [#allocation8], 0 }
  0x30   :  { %67 = vsyncpa [#allocation11], 0 }
  0x31   :  { %68 = vsyncpa [#allocation14], 0 }
  0x32   :  { %69 = vsyncpa [#allocation17], 0 }
  0x33   :  { %70 = vsyncpa [#allocation20], 0 }
  0x34   :  { %71 = vsyncpa [#allocation23], 0  ;;  %s7778_s7 = smov [#allocation4]   ;;  %s7779_s11 = smov [#allocation7]  }
  0x35   :  { %s93_s10 = sshll.u32 %s7778_s7, 4  ;;  %s121_s15 = sshll.u32 %s7779_s11, 4  ;;  %s94_s10 = int_to_ptr.vmem [resolvable:$true] %s93_s10  ;;  %s122_s15 = int_to_ptr.vmem [resolvable:$true] %s121_s15 }
  0x36   :  { %s7441_s16 = scalar_lea.vmem %s94_s10, 6144  ;;  %p7446_p1 = scmp.lt.s32.totalorder %s94_s10, %s94_s10 }
  0x37   :  { %p7442_p0 = scmp.ne.s32.totalorder %s94_s10, %s7441_s16  ;;  %p7447_p2 = scmp.lt.s32.totalorder %s7441_s16, %s7441_s16 }
  0x39   :  { %p7448_p3 = por %p7447_p2, %p7446_p1 }
  0x3b   :  { %p7449_p4 = pnand %p7448_p3, %p7442_p0 }
  0x3d   :  { %7452 = shalt.err (!%p7449_p4)
}
  0x3e   :  { %s7780_s0 = smov 128   ;;  %s7781_s18 = smov 8  }
  0x3f   :  { %99 = dma.hbm_to_vmem [thread:$0]  %s7822_s17, 6144, %s94_s10, [#allocation5], %s7780_s0, %s7780_s0, %s7781_s18  }
  0x40   :  { %s7461_s22 = scalar_lea.vmem %s122_s15, 3072  ;;  %p7466_p6 = scmp.lt.s32.totalorder %s122_s15, %s122_s15 }
  0x41   :  { %p7462_p5 = scmp.ne.s32.totalorder %s122_s15, %s7461_s22  ;;  %p7467_p7 = scmp.lt.s32.totalorder %s7461_s22, %s7461_s22 }
  0x43   :  { %p7468_p8 = por %p7467_p7, %p7466_p6 }
  0x45   :  { %p7469_p9 = pnand %p7468_p8, %p7462_p5 }
  0x47   :  { %7472 = shalt.err (!%p7469_p9)
}
  0x48   :  { %127 = dma.hbm_to_vmem [thread:$0]  %s7842_s3, 3072, %s122_s15, [#allocation8], %s7780_s0, %s7780_s0, %s7781_s18  }
  0x49   :  { %s7782_s23 = smov [#allocation10]   ;;  %s7783_s28 = smov [#allocation13]  }
  0x4a   :  { %s147_s26 = sshll.u32 %s7782_s23, 4  ;;  %s173_s1 = sshll.u32 %s7783_s28, 4  ;;  %s148_s26 = int_to_ptr.vmem [resolvable:$true] %s147_s26  ;;  %s174_s1 = int_to_ptr.vmem [resolvable:$true] %s173_s1 }
  0x4b   :  { %s7481_s2 = scalar_lea.vmem %s148_s26, 2048  ;;  %p7486_p11 = scmp.lt.s32.totalorder %s148_s26, %s148_s26 }
  0x4c   :  { %p7482_p10 = scmp.ne.s32.totalorder %s148_s26, %s7481_s2  ;;  %p7487_p12 = scmp.lt.s32.totalorder %s7481_s2, %s7481_s2 }
  0x4e   :  { %p7488_p13 = por %p7487_p12, %p7486_p11 }
  0x50   :  { %p7489_p0 = pnand %p7488_p13, %p7482_p10 }
  0x52   :  { %7492 = shalt.err (!%p7489_p0)
}
  0x53   :  { %153 = dma.hbm_to_vmem [thread:$0]  %s7857_s19, 2048, %s148_s26, [#allocation11], %s7780_s0, %s7780_s0, %s7781_s18  }
  0x54   :  { %s7501_s17 = scalar_lea.vmem %s174_s1, 2048  ;;  %p7506_p2 = scmp.lt.s32.totalorder %s174_s1, %s174_s1 }
  0x55   :  { %p7502_p1 = scmp.ne.s32.totalorder %s174_s1, %s7501_s17  ;;  %p7507_p3 = scmp.lt.s32.totalorder %s7501_s17, %s7501_s17 }
  0x57   :  { %p7508_p4 = por %p7507_p3, %p7506_p2 }
  0x59   :  { %p7509_p5 = pnand %p7508_p4, %p7502_p1 }
  0x5b   :  { %7512 = shalt.err (!%p7509_p5)
}
  0x5c   :  { %179 = dma.hbm_to_vmem [thread:$0]  %s7872_s6, 2048, %s174_s1, [#allocation14], %s7780_s0, %s7780_s0, %s7781_s18  }
  0x5d   :  { %s7784_s3 = smov [#allocation16]   ;;  %s7785_s10 = smov [#allocation19]  }
  0x5e   :  { %s201_s7 = sshll.u32 %s7784_s3, 4  ;;  %s227_s11 = sshll.u32 %s7785_s10, 4  ;;  %s202_s7 = int_to_ptr.vmem [resolvable:$true] %s201_s7  ;;  %s228_s11 = int_to_ptr.vmem [resolvable:$true] %s227_s11 }
  0x5f   :  { %s7521_s15 = scalar_lea.vmem %s202_s7, 512  ;;  %p7526_p7 = scmp.lt.s32.totalorder %s202_s7, %s202_s7 }
  0x60   :  { %p7522_p6 = scmp.ne.s32.totalorder %s202_s7, %s7521_s15  ;;  %p7527_p8 = scmp.lt.s32.totalorder %s7521_s15, %s7521_s15 }
  0x62   :  { %p7528_p9 = por %p7527_p8, %p7526_p7 }
  0x64   :  { %p7529_p10 = pnand %p7528_p9, %p7522_p6 }
  0x66   :  { %7532 = shalt.err (!%p7529_p10)
}
  0x67   :  { %207 = dma.hbm_to_vmem [thread:$0]  %s7892_s4, 512, %s202_s7, [#allocation17], %s7780_s0, %s7780_s0, %s7781_s18  }
  0x68   :  { %s7541_s19 = scalar_lea.vmem %s228_s11, 2048  ;;  %p7546_p12 = scmp.lt.s32.totalorder %s228_s11, %s228_s11 }
  0x69   :  { %p7542_p11 = scmp.ne.s32.totalorder %s228_s11, %s7541_s19  ;;  %p7547_p13 = scmp.lt.s32.totalorder %s7541_s19, %s7541_s19 }
  0x6b   :  { %p7548_p0 = por %p7547_p13, %p7546_p12 }
  0x6d   :  { %p7549_p1 = pnand %p7548_p0, %p7542_p11 }
  0x6f   :  { %7552 = shalt.err (!%p7549_p1)
}
  0x70   :  { %s7786_s6 = smov 512   ;;  %s7787_s16 = smov 32  }
  0x71   :  { %233 = dma.hbm_to_vmem [thread:$0]  %s7907_s27, 2048, %s228_s11, [#allocation20], %s7786_s6, %s7786_s6, %s7787_s16  }
  0x72   :  { %s7788_s22 = smov [#allocation22]   ;;  %s7789_s26 = smov [#allocation2]  }
  0x73   :  { %s255_s23 = sshll.u32 %s7788_s22, 4  ;;  %s81_s28 = sshll.u32 %s7789_s26, 4  ;;  %s256_s23 = int_to_ptr.vmem [resolvable:$true] %s255_s23  ;;  %s82_s28 = int_to_ptr.vmem [resolvable:$true] %s81_s28 }
  0x74   :  { %s7561_s1 = scalar_lea.vmem %s256_s23, 1024  ;;  %p7566_p3 = scmp.lt.s32.totalorder %s256_s23, %s256_s23 }
  0x75   :  { %p7562_p2 = scmp.ne.s32.totalorder %s256_s23, %s7561_s1  ;;  %p7567_p4 = scmp.lt.s32.totalorder %s7561_s1, %s7561_s1 }
  0x77   :  { %p7568_p5 = por %p7567_p4, %p7566_p3 }
  0x79   :  { %p7569_p6 = pnand %p7568_p5, %p7562_p2 }
  0x7b   :  { %7572 = shalt.err (!%p7569_p6)
}
  0x7c   :  { %261 = dma.hbm_to_vmem [thread:$0]  %s7927_s21, 1024, %s256_s23, [#allocation23], %s7780_s0, %s7780_s0, %s7781_s18  }
  0x7d   :  { %s7581_s4 = scalar_lea.vmem %s82_s28, 2304  ;;  %p7586_p8 = scmp.lt.s32.totalorder %s82_s28, %s82_s28 }
  0x7e   :  { %p7582_p7 = scmp.ne.s32.totalorder %s82_s28, %s7581_s4  ;;  %p7587_p9 = scmp.lt.s32.totalorder %s7581_s4, %s7581_s4 }
  0x80   :  { %p7588_p10 = por %p7587_p9, %p7586_p8 }
  0x82   :  { %p7589_p11 = pnand %p7588_p10, %p7582_p7 }
  0x84   :  { %7592 = shalt.err (!%p7589_p11)
}
  0x85   :  { %87 = dma.hbm_to_vmem [thread:$0]  %s7817_s13, 2304, %s82_s28, [#allocation3], %s7780_s0, %s7780_s0, %s7781_s18  }
  0x86   :  { %s7790_s27 = smov [#allocation6]   ;;  %s7791_s17 = smov [#allocation9]  }
  0x87   :  { %s109_s2 = sshll.u32 %s7790_s27, 4  ;;  %s133_s3 = sshll.u32 %s7791_s17, 4  ;;  %s110_s2 = int_to_ptr.vmem [resolvable:$true] %s109_s2  ;;  %s134_s3 = int_to_ptr.vmem [resolvable:$true] %s133_s3 }
  0x88   :  { %s7601_s7 = scalar_lea.vmem %s110_s2, 2048  ;;  %p7606_p13 = scmp.lt.s32.totalorder %s110_s2, %s110_s2 }
  0x89   :  { %p7602_p12 = scmp.ne.s32.totalorder %s110_s2, %s7601_s7  ;;  %p7607_p0 = scmp.lt.s32.totalorder %s7601_s7, %s7601_s7 }
  0x8b   :  { %p7608_p1 = por %p7607_p0, %p7606_p13 }
  0x8d   :  { %p7609_p2 = pnand %p7608_p1, %p7602_p12 }
  0x8f   :  { %7612 = shalt.err (!%p7609_p2)
}
  0x90   :  { %115 = dma.hbm_to_vmem [thread:$0]  %s7837_s29, 2048, %s110_s2, [#allocation5], %s7780_s0, %s7780_s0, %s7781_s18  }
  0x91   :  { %s7621_s21 = scalar_lea.vmem %s134_s3, 3072  ;;  %p7626_p4 = scmp.lt.s32.totalorder %s134_s3, %s134_s3 }
  0x92   :  { %p7622_p3 = scmp.ne.s32.totalorder %s134_s3, %s7621_s21  ;;  %p7627_p5 = scmp.lt.s32.totalorder %s7621_s21, %s7621_s21 }
  0x94   :  { %p7628_p6 = por %p7627_p5, %p7626_p4 }
  0x96   :  { %p7629_p7 = pnand %p7628_p6, %p7622_p3 }
  0x98   :  { %7632 = shalt.err (!%p7629_p7)
}
  0x99   :  { %139 = dma.hbm_to_vmem [thread:$0]  %s7847_s8, 3072, %s134_s3, [#allocation8], %s7780_s0, %s7780_s0, %s7781_s18  }
  0x9a   :  { %s7792_s13 = smov [#allocation12]   ;;  %s7793_s11 = smov [#allocation15]  }
  0x9b   :  { %s159_s10 = sshll.u32 %s7792_s13, 4  ;;  %s187_s15 = sshll.u32 %s7793_s11, 4  ;;  %s160_s10 = int_to_ptr.vmem [resolvable:$true] %s159_s10  ;;  %s188_s15 = int_to_ptr.vmem [resolvable:$true] %s187_s15 }
  0x9c   :  { %s7641_s19 = scalar_lea.vmem %s160_s10, 1024  ;;  %p7646_p9 = scmp.lt.s32.totalorder %s160_s10, %s160_s10 }
  0x9d   :  { %p7642_p8 = scmp.ne.s32.totalorder %s160_s10, %s7641_s19  ;;  %p7647_p10 = scmp.lt.s32.totalorder %s7641_s19, %s7641_s19 }
  0x9f   :  { %p7648_p11 = por %p7647_p10, %p7646_p9 }
  0xa1   :  { %p7649_p12 = pnand %p7648_p11, %p7642_p8 }
  0xa3   :  { %7652 = shalt.err (!%p7649_p12)
}
  0xa4   :  { %165 = dma.hbm_to_vmem [thread:$0]  %s7862_s24, 1024, %s160_s10, [#allocation11], %s7780_s0, %s7780_s0, %s7781_s18  }
  0xa5   :  { %s7661_s29 = scalar_lea.vmem %s188_s15, 512  ;;  %p7666_p0 = scmp.lt.s32.totalorder %s188_s15, %s188_s15 }
  0xa6   :  { %p7662_p13 = scmp.ne.s32.totalorder %s188_s15, %s7661_s29  ;;  %p7667_p1 = scmp.lt.s32.totalorder %s7661_s29, %s7661_s29 }
  0xa8   :  { %p7668_p2 = por %p7667_p1, %p7666_p0 }
  0xaa   :  { %p7669_p3 = pnand %p7668_p2, %p7662_p13 }
  0xac   :  { %7672 = shalt.err (!%p7669_p3)
}
  0xad   :  { %193 = dma.hbm_to_vmem [thread:$0]  %s7882_s20, 512, %s188_s15, [#allocation14], %s7780_s0, %s7780_s0, %s7781_s18  }
  0xae   :  { %s7794_s8 = smov [#allocation18]   ;;  %s7795_s16 = smov [#allocation21]  }
  0xaf   :  { %s213_s6 = sshll.u32 %s7794_s8, 4  ;;  %s241_s22 = sshll.u32 %s7795_s16, 4  ;;  %s214_s6 = int_to_ptr.vmem [resolvable:$true] %s213_s6  ;;  %s242_s22 = int_to_ptr.vmem [resolvable:$true] %s241_s22 }
  0xb0   :  { %s7681_s23 = scalar_lea.vmem %s214_s6, 512  ;;  %p7686_p5 = scmp.lt.s32.totalorder %s214_s6, %s214_s6 }
  0xb1   :  { %p7682_p4 = scmp.ne.s32.totalorder %s214_s6, %s7681_s23  ;;  %p7687_p6 = scmp.lt.s32.totalorder %s7681_s23, %s7681_s23 }
  0xb3   :  { %p7688_p7 = por %p7687_p6, %p7686_p5 }
  0xb5   :  { %p7689_p8 = pnand %p7688_p7, %p7682_p4 }
  0xb7   :  { %7692 = shalt.err (!%p7689_p8)
}
  0xb8   :  { %219 = dma.hbm_to_vmem [thread:$0]  %s7897_s9, 512, %s214_s6, [#allocation17], %s7780_s0, %s7780_s0, %s7781_s18  }
  0xb9   :  { %s7701_s24 = scalar_lea.vmem %s242_s22, 512  ;;  %p7706_p10 = scmp.lt.s32.totalorder %s242_s22, %s242_s22 }
  0xba   :  { %p7702_p9 = scmp.ne.s32.totalorder %s242_s22, %s7701_s24  ;;  %p7707_p11 = scmp.lt.s32.totalorder %s7701_s24, %s7701_s24 }
  0xbc   :  { %p7708_p12 = por %p7707_p11, %p7706_p10 }
  0xbe   :  { %p7709_p13 = pnand %p7708_p12, %p7702_p9 }
  0xc0   :  { %7712 = shalt.err (!%p7709_p13)
}
  0xc1   :  { %247 = dma.hbm_to_vmem [thread:$0]  %s7917_s14, 512, %s242_s22, [#allocation20], %s7780_s0, %s7780_s0, %s7781_s18  }
  0xc2   :  { %s7796_s20 = smov [#allocation24]  }
  0xc3   :  { %s271_s26 = sshll.u32 %s7796_s20, 4  ;;  %s272_s26 = int_to_ptr.vmem [resolvable:$true] %s271_s26 }
  0xc4   :  { %s7721_s28 = scalar_lea.vmem %s272_s26, 512  ;;  %p7726_p1 = scmp.lt.s32.totalorder %s272_s26, %s272_s26 }
  0xc5   :  { %p7722_p0 = scmp.ne.s32.totalorder %s272_s26, %s7721_s28  ;;  %p7727_p2 = scmp.lt.s32.totalorder %s7721_s28, %s7721_s28 }
  0xc7   :  { %p7728_p3 = por %p7727_p2, %p7726_p1 }
  0xc9   :  { %p7729_p4 = pnand %p7728_p3, %p7722_p0 }
  0xcb   :  { %7732 = shalt.err (!%p7729_p4)
}
  0xcc   :  { %277 = dma.hbm_to_vmem [thread:$0]  %s7942_s12, 512, %s272_s26, [#allocation23], %s7780_s0, %s7780_s0, %s7781_s18  }
  0xcd   :  { %7733 = dma.done.wait [#allocation3], 2304  }
  0xce   :  { %7734 = vsyncadd [#allocation3], 4294964992 }
  0xcf   :  { %7735 = dma.done.wait [#allocation5], 8192  }
  0xd0   :  { %7736 = vsyncadd [#allocation5], 4294959104 }
  0xd1   :  { %7737 = dma.done.wait [#allocation8], 6144  }
  0xd2   :  { %7738 = vsyncadd [#allocation8], 4294961152 }
  0xd3   :  { %7739 = dma.done.wait [#allocation11], 3072  }
  0xd4   :  { %7740 = vsyncadd [#allocation11], 4294964224 }
  0xd5   :  { %7741 = dma.done.wait [#allocation14], 2560  }
  0xd6   :  { %7742 = vsyncadd [#allocation14], 4294964736 }
  0xd7   :  { %7743 = dma.done.wait [#allocation17], 1024  }
  0xd8   :  { %7744 = vsyncadd [#allocation17], 4294966272 }
  0xd9   :  { %7745 = dma.done.wait [#allocation20], 2560  }
  0xda   :  { %7746 = vsyncadd [#allocation20], 4294964736 }
  0xdb   :  { %7747 = dma.done.wait [#allocation23], 1536  }
  0xdc   :  { %7748 = vsyncadd [#allocation23], 4294965760  ;;  %v346_v0 = vld [vmem:[#allocation2 + $0x28] sm:$0xff]  ;;  %v563_v1 = vld [vmem:[#allocation2 + $0x58] sm:$0xff]  ;;  %s8924_s9 = sld [smem:[#allocation33_spill]]  ;;  %vm347_vm0 = vcmask 392192  }
  0xdd   :  { %v345_v2 = vld [vmem:[#allocation2 + $0x20] sm:$0xff]  ;;  %6306 = vmatprep.subr.mxu0 %v346_v0  ;;  %6342 = vmatprep.subr.mxu1 %v563_v1  ;;  %v562_v3 = vld [vmem:[#allocation2 + $0x50] sm:$0xff]  ;;  %v344_v4 = vld [vmem:[#allocation2 + $0x18] sm:$0xff]  ;;  %s8925_s14 = sld [smem:[#allocation36_spill]]  ;;  %vm1805_vm1 = vcmask 523264   ;;  %vm7798_vm2 = vmmov 0  }
  0xde   :  { %6307 = vmatpush3.msra.mxu0 %v346_v0  ;;  %6343 = vmatpush3.msra.mxu1 %v563_v1  ;;  %v561_v5 = vld [vmem:[#allocation2 + $0x48] sm:$0xff]  ;;  %v343_v6 = vld [vmem:[#allocation2 + $0x10] sm:$0xff]  ;;  %v560_v7 = vld [vmem:[#allocation2 + $0x40] sm:$0xff]  ;;  %s8926_s12 = sld [smem:[#allocation35_spill]]  ;;  %vm2936_vm3 = vcmask 261120   ;;  %vm5302_vm5 = vcmask 916480  }
  0xdf   :  { %6308 = vmatprep.subr.mxu0 %v345_v2  ;;  %6344 = vmatprep.subr.mxu1 %v562_v3  ;;  %v342_v8 = vld [vmem:[#allocation2 + $0x8] sm:$0xff]  ;;  %v559_v9 = vld [vmem:[#allocation2 + $0x38] sm:$0xff]  ;;  %v341_v10 = vld [vmem:[#allocation2] sm:$0xff]  ;;  %s8927_s0 = sld [smem:[#allocation37_spill]] }
  0xe0   :  { %6309 = vmatpush3.msra.mxu0 %v345_v2  ;;  %6345 = vmatpush3.msra.mxu1 %v562_v3  ;;  %v558_v11 = vld [vmem:[#allocation2 + $0x30] sm:$0xff]  ;;  %v860_v14 = vld [vmem:[#allocation2 + $0x88] sm:$0xff]  ;;  %v859_v16 = vld [vmem:[#allocation2 + $0x80] sm:$0xff]  ;;  %s8928_s18 = sld [smem:[#allocation38_spill]] }
  0xe1   :  { %6310 = vmatprep.subr.mxu0 %v344_v4  ;;  %6346 = vmatprep.subr.mxu1 %v561_v5  ;;  %v858_v19 = vld [vmem:[#allocation2 + $0x78] sm:$0xff]  ;;  %v857_v22 = vld [vmem:[#allocation2 + $0x70] sm:$0xff]  ;;  %v856_v25 = vld [vmem:[#allocation2 + $0x68] sm:$0xff]  ;;  %s8929_s1 = sld [smem:[#allocation39_spill]] }
  0xe2   :  { %6311 = vmatpush3.msra.mxu0 %v344_v4  ;;  %6347 = vmatpush3.msra.mxu1 %v561_v5  ;;  %v8012_v12 = vld [vmem:[%s8924_s9] sm:$0xff]  ;;  %v8015_v13 = vld [vmem:[%s8924_s9 + $0x8] sm:$0xff]  ;;  %v8020_v15 = vld [vmem:[%s8924_s9 + $0x10] sm:$0xff]  ;;  %s8930_s4 = sld [smem:[#allocation40_spill]] }
  0xe3   :  { %6312 = vmatprep.subr.mxu0 %v343_v6  ;;  %6348 = vmatprep.subr.mxu1 %v560_v7  ;;  %v328_v17 = vld [vmem:[%s8924_s9 + $0x18] sm:$0xff]  ;;  %v329_v18 = vld [vmem:[%s8924_s9 + $0x20] sm:$0xff]  ;;  %v330_v20 = vld [vmem:[%s8924_s9 + $0x28] sm:$0xff]  ;;  %s8931_s27 = sld [smem:[#allocation41_spill]] }
  0xe4   :  { %6313 = vmatpush3.msra.mxu0 %v343_v6  ;;  %6349 = vmatpush3.msra.mxu1 %v560_v7  ;;  %v331_v21 = vld [vmem:[%s8924_s9 + $0x30] sm:$0xff]  ;;  %v332_v23 = vld [vmem:[%s8924_s9 + $0x38] sm:$0xff]  ;;  %v333_v24 = vld [vmem:[%s8924_s9 + $0x40] sm:$0xff]  ;;  %s8932_s2 = sld [smem:[#allocation34_spill]] }
  0xe5   :  { %6314 = vmatprep.subr.mxu0 %v342_v8  ;;  %6350 = vmatprep.subr.mxu1 %v559_v9  ;;  %v334_v26 = vld [vmem:[%s8924_s9 + $0x48] sm:$0xff]  ;;  %v335_v27 = vld [vmem:[%s8924_s9 + $0x50] sm:$0xff]  ;;  %v855_v28 = vld [vmem:[#allocation2 + $0x60] sm:$0xff]  ;;  %s8933_s17 = sld [smem:[#allocation43_spill]] }
  0xe6   :  { %6315 = vmatpush3.msra.mxu0 %v342_v8  ;;  %6351 = vmatpush3.msra.mxu1 %v559_v9  ;;  %v336_v29 = vld [vmem:[%s8924_s9 + $0x58] sm:$0xff]  ;;  %v337_v30 = vld [vmem:[%s8924_s9 + $0x60] sm:$0xff]  ;;  %v338_v31 = vld [vmem:[%s8924_s9 + $0x68] sm:$0xff]  ;;  %s8934_s3 = sld [smem:[#allocation42_spill]] }
  0xe7   :  { %6316 = vmatprep.subr.mxu0 %v341_v10  ;;  %6352 = vmatprep.subr.mxu1 %v558_v11  ;;  %v339_v32 = vld [vmem:[%s8924_s9 + $0x70] sm:$0xff]  ;;  %v340_v33 = vld [vmem:[%s8924_s9 + $0x78] sm:$0xff]  ;;  %s8935_s7 = sld [smem:[#allocation44_spill]] }
  0xe8   :  { %6317 = vmatpush3.msra.mxu0 %v341_v10  ;;  %6318 = vmatprep.mubr.msk.f32.mxu0 %vm347_vm0, %v8012_v12  ;;  %v541_v34 = vld [vmem:[#allocation4] sm:$0xff] }
  0xe9   :  { %6353 = vmatpush3.msra.mxu1 %v558_v11  ;;  %6354 = vmatprep.mubr.msk.f32.mxu1 %vm347_vm0, %v8012_v12 }
  0xea   :  { %6319 = vmatmul.mubr.msk.f32.vlgmr.msra.gmra.mxu0 %vm347_vm0, %v8015_v13  ;;  %6355 = vmatmul.mubr.msk.f32.vlgmr.msra.gmra.mxu1 %vm347_vm0, %v8015_v13 }
  0xeb   :  { %6434 = vmatprep.subr.mxu1 %v860_v14  ;;  %6321 = vmatprep.mubr.msk.f32.mxu0 %vm347_vm0, %v8020_v15 }
  0xec   :  { %6435 = vmatpush3.msra.mxu1 %v860_v14  ;;  %6357 = vmatprep.mubr.msk.f32.mxu1 %vm347_vm0, %v8020_v15 }
  0xed   :  { %6436 = vmatprep.subr.mxu1 %v859_v16 }
  0xee   :  { %6322 = vmatmul.mubr.msk.f32.gmra.mxu0 %vm347_vm0, %v328_v17  ;;  %6358 = vmatmul.mubr.msk.f32.gmra.mxu1 %vm347_vm0, %v328_v17 }
  0xef   :  { %6324 = vmatprep.mubr.msk.f32.mxu0 %vm347_vm0, %v329_v18  ;;  %6360 = vmatprep.mubr.msk.f32.mxu1 %vm347_vm0, %v329_v18 }
  0xf0   :  { %6437 = vmatpush3.msra.mxu1 %v859_v16 }
  0xf1   :  { %6438 = vmatprep.subr.mxu1 %v858_v19 }
  0xf2   :  { %6325 = vmatmul.mubr.msk.f32.gmra.mxu0 %vm347_vm0, %v330_v20  ;;  %6361 = vmatmul.mubr.msk.f32.gmra.mxu1 %vm347_vm0, %v330_v20 }
  0xf3   :  { %6327 = vmatprep.mubr.msk.f32.mxu0 %vm347_vm0, %v331_v21  ;;  %6363 = vmatprep.mubr.msk.f32.mxu1 %vm347_vm0, %v331_v21 }
  0xf4   :  { %6439 = vmatpush3.msra.mxu1 %v858_v19 }
  0xf5   :  { %6440 = vmatprep.subr.mxu1 %v857_v22 }
  0xf6   :  { %6328 = vmatmul.mubr.msk.f32.gmra.mxu0 %vm347_vm0, %v332_v23  ;;  %6364 = vmatmul.mubr.msk.f32.gmra.mxu1 %vm347_vm0, %v332_v23 }
  0xf7   :  { %6330 = vmatprep.mubr.msk.f32.mxu0 %vm347_vm0, %v333_v24  ;;  %6366 = vmatprep.mubr.msk.f32.mxu1 %vm347_vm0, %v333_v24 }
  0xf8   :  { %6441 = vmatpush3.msra.mxu1 %v857_v22  ;;  %v545_v22 = vld [vmem:[#allocation4 + $0x20] sm:$0xff] }
  0xf9   :  { %6442 = vmatprep.subr.mxu1 %v856_v25 }
  0xfa   :  { %6331 = vmatmul.mubr.msk.f32.gmra.mxu0 %vm347_vm0, %v334_v26  ;;  %6367 = vmatmul.mubr.msk.f32.gmra.mxu1 %vm347_vm0, %v334_v26 }
  0xfb   :  { %6333 = vmatprep.mubr.msk.f32.mxu0 %vm347_vm0, %v335_v27  ;;  %6369 = vmatprep.mubr.msk.f32.mxu1 %vm347_vm0, %v335_v27 }
  0xfc   :  { %6443 = vmatpush3.msra.mxu1 %v856_v25  ;;  %v548_v25 = vld [vmem:[#allocation4 + $0x38] sm:$0xff] }
  0xfd   :  { %6444 = vmatprep.subr.mxu1 %v855_v28 }
  0xfe   :  { %6334 = vmatmul.mubr.msk.f32.gmra.mxu0 %vm347_vm0, %v336_v29  ;;  %6370 = vmatmul.mubr.msk.f32.gmra.mxu1 %vm347_vm0, %v336_v29 }
  0xff   :  { %6336 = vmatprep.mubr.msk.f32.mxu0 %vm347_vm0, %v337_v30  ;;  %6372 = vmatprep.mubr.msk.f32.mxu1 %vm347_vm0, %v337_v30 }
 0x100   :  { %6445 = vmatpush3.msra.mxu1 %v855_v28  ;;  %v551_v28 = vld [vmem:[#allocation4 + $0x50] sm:$0xff] }
 0x102   :  { %6337 = vmatmul.mubr.msk.f32.gmra.mxu0 %vm347_vm0, %v338_v31  ;;  %6373 = vmatmul.mubr.msk.f32.gmra.mxu1 %vm347_vm0, %v338_v31 }
 0x103   :  { %6339 = vmatprep.mubr.msk.f32.mxu0 %vm347_vm0, %v339_v32  ;;  %6375 = vmatprep.mubr.msk.f32.mxu1 %vm347_vm0, %v339_v32 }
 0x106   :  { %6340 = vmatmul.mubr.msk.f32.gmra.mxu0 %vm347_vm0, %v340_v33  ;;  %6376 = vmatmul.mubr.msk.f32.gmra.mxu1 %vm347_vm0, %v340_v33 }
 0x107   :  { %6446 = vmatprep.mubr.msk.f32.mxu1 %vm347_vm0, %v8012_v12  ;;  %6410 = vmatprep.mubr.f32.mxu0 %v541_v34  ;;  %v1007_v34 = vld [vmem:[#allocation4 + $0x100] sm:$0xff] }
 0x10a   :  { %6447 = vmatmul.mubr.msk.f32.vlgmr.msra.gmra.mxu1 %vm347_vm0, %v8015_v13 }
 0x10b   :  { %6449 = vmatprep.mubr.msk.f32.mxu1 %vm347_vm0, %v8020_v15 }
 0x10e   :  { %6450 = vmatmul.mubr.msk.f32.gmra.mxu1 %vm347_vm0, %v328_v17  ;;  %v542_v17 = vld [vmem:[#allocation4 + $0x8] sm:$0xff] }
 0x10f   :  { %6452 = vmatprep.mubr.msk.f32.mxu1 %vm347_vm0, %v329_v18  ;;  %v543_v18 = vld [vmem:[#allocation4 + $0x10] sm:$0xff] }
 0x112   :  { %6453 = vmatmul.mubr.msk.f32.gmra.mxu1 %vm347_vm0, %v330_v20 }
 0x113   :  { %6455 = vmatprep.mubr.msk.f32.mxu1 %vm347_vm0, %v331_v21  ;;  %v544_v21 = vld [vmem:[#allocation4 + $0x18] sm:$0xff] }
 0x116   :  { %6456 = vmatmul.mubr.msk.f32.gmra.mxu1 %vm347_vm0, %v332_v23  ;;  %v546_v23 = vld [vmem:[#allocation4 + $0x28] sm:$0xff] }
 0x117   :  { %6458 = vmatprep.mubr.msk.f32.mxu1 %vm347_vm0, %v333_v24  ;;  %v547_v24 = vld [vmem:[#allocation4 + $0x30] sm:$0xff] }
 0x11a   :  { %6459 = vmatmul.mubr.msk.f32.gmra.mxu1 %vm347_vm0, %v334_v26  ;;  %v549_v26 = vld [vmem:[#allocation4 + $0x40] sm:$0xff] }
 0x11b   :  { %6461 = vmatprep.mubr.msk.f32.mxu1 %vm347_vm0, %v335_v27  ;;  %v550_v27 = vld [vmem:[#allocation4 + $0x48] sm:$0xff] }
 0x11e   :  { %6462 = vmatmul.mubr.msk.f32.gmra.mxu1 %vm347_vm0, %v336_v29  ;;  %v552_v29 = vld [vmem:[#allocation4 + $0x58] sm:$0xff] }
 0x11f   :  { %6464 = vmatprep.mubr.msk.f32.mxu1 %vm347_vm0, %v337_v30  ;;  %v553_v30 = vld [vmem:[#allocation4 + $0x60] sm:$0xff] }
 0x122   :  { %6465 = vmatmul.mubr.msk.f32.gmra.mxu1 %vm347_vm0, %v338_v31  ;;  %v554_v31 = vld [vmem:[#allocation4 + $0x68] sm:$0xff] }
 0x123   :  { %6467 = vmatprep.mubr.msk.f32.mxu1 %vm347_vm0, %v339_v32  ;;  %v555_v32 = vld [vmem:[#allocation4 + $0x70] sm:$0xff] }
 0x126   :  { %6468 = vmatmul.mubr.msk.f32.gmra.mxu1 %vm347_vm0, %v340_v33  ;;  %v556_v33 = vld [vmem:[#allocation4 + $0x78] sm:$0xff] }
 0x1aa   :  { %v8090_v35 = vpop.f32.mrf.mxu0  ;;  %v8092_v36 = vpop.f32.mrf.mxu1 }
 0x1ac   :  { %v8094_v37 = vpop.f32.mrf.mxu0  ;;  %v8096_v38 = vpop.f32.mrf.mxu1 }
 0x1ae   :  { %v8098_v39 = vpop.f32.mrf.mxu0  ;;  %v8100_v40 = vpop.f32.mrf.mxu1 }
 0x1b0   :  { %v8102_v41 = vpop.f32.mrf.mxu0  ;;  %v8104_v42 = vpop.f32.mrf.mxu1 }
 0x1b2   :  { %v6326_v43 = vpop.f32.mrf.mxu0  ;;  %v8106_v44 = vpop.f32.mrf.mxu1 }
 0x1b4   :  { %v482_v45 = vpop.f32.mrf.mxu0  ;;  %v8108_v46 = vpop.f32.mrf.mxu1 }
 0x1b6   :  { %v6329_v47 = vpop.f32.mrf.mxu0  ;;  %v8110_v48 = vpop.f32.mrf.mxu1 }
 0x1b8   :  { %v492_v49 = vpop.f32.mrf.mxu0  ;;  %v8112_v50 = vpop.f32.mrf.mxu1 }
 0x1ba   :  { %v6332_v51 = vpop.f32.mrf.mxu0  ;;  %v8114_v52 = vpop.f32.mrf.mxu1 }
 0x1bc   :  { %v502_v53 = vpop.f32.mrf.mxu0  ;;  %v8116_v54 = vpop.f32.mrf.mxu1 }
 0x1be   :  { %v6335_v55 = vpop.f32.mrf.mxu0  ;;  %v8118_v56 = vpop.f32.mrf.mxu1 }
 0x1c0   :  { %v512_v57 = vpop.f32.mrf.mxu0  ;;  %v8120_v58 = vpop.f32.mrf.mxu1 }
 0x1c2   :  { %v6338_v59 = vpop.f32.mrf.mxu0  ;;  %v8122_v60 = vpop.f32.mrf.mxu1 }
 0x1c4   :  { %v522_v61 = vpop.f32.mrf.mxu0  ;;  %v8124_v62 = vpop.f32.mrf.mxu1 }
 0x1c6   :  { %v6341_v63 = vpop.f32.mrf.mxu0  ;;  %v8126_v0 = vpop.f32.mrf.mxu1 }
 0x1c7   :  { %6378 = vmatprep.subr.mxu0 %v6341_v63 }
 0x1c8   :  { %v532_v1 = vpop.f32.mrf.mxu0  ;;  %v8128_v2 = vpop.f32.mrf.mxu1  ;;  %6379 = vmatpush3.msra.mxu0 %v6341_v63  ;;  %v1022_v63 = vld [vmem:[#allocation4 + $0x178] sm:$0xff] }
 0x1c9   :  { %6380 = vmatprep.subr.mxu0 %v532_v1 }
 0x1ca   :  { %6381 = vmatpush3.msra.mxu0 %v532_v1  ;;  %v8130_v3 = vpop.f32.mrf.mxu1  ;;  %v1238_v1 = vld [vmem:[%s8925_s14 + $0x78] sm:$0xff] }
 0x1cb   :  { %6382 = vmatprep.subr.mxu0 %v6338_v59  ;;  %6526 = vmatprep.subr.mxu1 %v1238_v1 }
 0x1cc   :  { %6383 = vmatpush3.msra.mxu0 %v6338_v59  ;;  %v8132_v4 = vpop.f32.mrf.mxu1  ;;  %v1020_v59 = vld [vmem:[#allocation4 + $0x168] sm:$0xff]  ;;  %6527 = vmatpush3.msra.mxu1 %v1238_v1 }
 0x1cd   :  { %6384 = vmatprep.subr.mxu0 %v522_v61 }
 0x1ce   :  { %6385 = vmatpush3.msra.mxu0 %v522_v61  ;;  %v8134_v5 = vpop.f32.mrf.mxu1  ;;  %v1021_v61 = vld [vmem:[#allocation4 + $0x170] sm:$0xff] }
 0x1cf   :  { %6386 = vmatprep.subr.mxu0 %v6335_v55 }
 0x1d0   :  { %6387 = vmatpush3.msra.mxu0 %v6335_v55  ;;  %v8136_v6 = vpop.f32.mrf.mxu1  ;;  %v1018_v55 = vld [vmem:[#allocation4 + $0x158] sm:$0xff] }
 0x1d1   :  { %6388 = vmatprep.subr.mxu0 %v512_v57 }
 0x1d2   :  { %6389 = vmatpush3.msra.mxu0 %v512_v57  ;;  %v8138_v7 = vpop.f32.mrf.mxu1  ;;  %v1019_v57 = vld [vmem:[#allocation4 + $0x160] sm:$0xff] }
 0x1d3   :  { %6390 = vmatprep.subr.mxu0 %v6332_v51 }
 0x1d4   :  { %6391 = vmatpush3.msra.mxu0 %v6332_v51  ;;  %v8140_v8 = vpop.f32.mrf.mxu1  ;;  %v1016_v51 = vld [vmem:[#allocation4 + $0x148] sm:$0xff] }
 0x1d5   :  { %6392 = vmatprep.subr.mxu0 %v502_v53 }
 0x1d6   :  { %6393 = vmatpush3.msra.mxu0 %v502_v53  ;;  %v6457_v9 = vpop.f32.mrf.mxu1  ;;  %v1017_v53 = vld [vmem:[#allocation4 + $0x150] sm:$0xff] }
 0x1d7   :  { %6394 = vmatprep.subr.mxu0 %v6329_v47 }
 0x1d8   :  { %6395 = vmatpush3.msra.mxu0 %v6329_v47  ;;  %v8142_v10 = vpop.f32.mrf.mxu1  ;;  %v1014_v47 = vld [vmem:[#allocation4 + $0x138] sm:$0xff] }
 0x1d9   :  { %6396 = vmatprep.subr.mxu0 %v492_v49 }
 0x1da   :  { %6397 = vmatpush3.msra.mxu0 %v492_v49  ;;  %v6460_v11 = vpop.f32.mrf.mxu1  ;;  %v1015_v49 = vld [vmem:[#allocation4 + $0x140] sm:$0xff] }
 0x1db   :  { %6398 = vmatprep.subr.mxu0 %v6326_v43 }
 0x1dc   :  { %6399 = vmatpush3.msra.mxu0 %v6326_v43  ;;  %v967_v12 = vpop.f32.mrf.mxu1  ;;  %v1012_v43 = vld [vmem:[#allocation4 + $0x128] sm:$0xff] }
 0x1dd   :  { %6400 = vmatprep.subr.mxu0 %v482_v45 }
 0x1de   :  { %6401 = vmatpush3.msra.mxu0 %v482_v45  ;;  %v6463_v13 = vpop.f32.mrf.mxu1  ;;  %v1013_v45 = vld [vmem:[#allocation4 + $0x130] sm:$0xff] }
 0x1df   :  { %6402 = vmatprep.subr.mxu0 %v8098_v39 }
 0x1e0   :  { %6403 = vmatpush3.msra.mxu0 %v8098_v39  ;;  %v977_v14 = vpop.f32.mrf.mxu1  ;;  %v1010_v39 = vld [vmem:[#allocation4 + $0x118] sm:$0xff] }
 0x1e1   :  { %6404 = vmatprep.subr.mxu0 %v8102_v41 }
 0x1e2   :  { %6405 = vmatpush3.msra.mxu0 %v8102_v41  ;;  %v6466_v15 = vpop.f32.mrf.mxu1  ;;  %v1011_v41 = vld [vmem:[#allocation4 + $0x120] sm:$0xff] }
 0x1e3   :  { %6406 = vmatprep.subr.mxu0 %v8090_v35 }
 0x1e4   :  { %6407 = vmatpush3.msra.mxu0 %v8090_v35  ;;  %v987_v16 = vpop.f32.mrf.mxu1  ;;  %v1008_v35 = vld [vmem:[#allocation4 + $0x108] sm:$0xff] }
 0x1e5   :  { %6408 = vmatprep.subr.mxu0 %v8094_v37 }
 0x1e6   :  { %6409 = vmatpush3.msra.mxu0 %v8094_v37  ;;  %v6469_v19 = vpop.f32.mrf.mxu1  ;;  %v1009_v37 = vld [vmem:[#allocation4 + $0x110] sm:$0xff] }
 0x1e7   :  { %6411 = vmatmul.mubr.f32.vlgmr.msra.gmra.mxu0 %v542_v17  ;;  %6470 = vmatprep.subr.mxu0 %v6469_v19  ;;  %v5553_v17 = vld [vmem:[%s8925_s14 + $0xc0] sm:$0xff] }
 0x1e8   :  { %v997_v20 = vpop.f32.mrf.mxu1  ;;  %6471 = vmatpush3.msra.mxu0 %v6469_v19  ;;  %6413 = vmatprep.mubr.f32.mxu0 %v543_v18  ;;  %v1230_v18 = vld [vmem:[%s8925_s14 + $0x38] sm:$0xff] }
 0x1e9   :  { %6472 = vmatprep.subr.mxu0 %v997_v20  ;;  %v5552_v19 = vld [vmem:[%s8925_s14 + $0xb8] sm:$0xff] }
 0x1ea   :  { %6473 = vmatpush3.msra.mxu0 %v997_v20  ;;  %v1229_v20 = vld [vmem:[%s8925_s14 + $0x30] sm:$0xff] }
 0x1eb   :  { %6414 = vmatmul.mubr.f32.gmra.mxu0 %v544_v21  ;;  %6474 = vmatprep.subr.mxu0 %v6466_v15  ;;  %v5551_v21 = vld [vmem:[%s8925_s14 + $0xb0] sm:$0xff] }
 0x1ec   :  { %6475 = vmatpush3.msra.mxu0 %v6466_v15  ;;  %6416 = vmatprep.mubr.f32.mxu0 %v545_v22  ;;  %v5554_v15 = vld [vmem:[%s8925_s14 + $0xc8] sm:$0xff] }
 0x1ed   :  { %6476 = vmatprep.subr.mxu0 %v987_v16  ;;  %v1228_v22 = vld [vmem:[%s8925_s14 + $0x28] sm:$0xff] }
 0x1ee   :  { %6477 = vmatpush3.msra.mxu0 %v987_v16  ;;  %v1231_v16 = vld [vmem:[%s8925_s14 + $0x40] sm:$0xff] }
 0x1ef   :  { %6417 = vmatmul.mubr.f32.gmra.mxu0 %v546_v23  ;;  %6478 = vmatprep.subr.mxu0 %v6463_v13  ;;  %v5550_v23 = vld [vmem:[%s8925_s14 + $0xa8] sm:$0xff] }
 0x1f0   :  { %6479 = vmatpush3.msra.mxu0 %v6463_v13  ;;  %6419 = vmatprep.mubr.f32.mxu0 %v547_v24  ;;  %v5555_v13 = vld [vmem:[%s8925_s14 + $0xd0] sm:$0xff]  ;;  %v1227_v24 = vld [vmem:[%s8925_s14 + $0x20] sm:$0xff] }
 0x1f1   :  { %6480 = vmatprep.subr.mxu0 %v977_v14 }
 0x1f2   :  { %6481 = vmatpush3.msra.mxu0 %v977_v14  ;;  %v1232_v14 = vld [vmem:[%s8925_s14 + $0x48] sm:$0xff] }
 0x1f3   :  { %6420 = vmatmul.mubr.f32.gmra.mxu0 %v548_v25  ;;  %6482 = vmatprep.subr.mxu0 %v6460_v11  ;;  %v5549_v25 = vld [vmem:[%s8925_s14 + $0xa0] sm:$0xff] }
 0x1f4   :  { %6483 = vmatpush3.msra.mxu0 %v6460_v11  ;;  %6422 = vmatprep.mubr.f32.mxu0 %v549_v26  ;;  %v5556_v11 = vld [vmem:[%s8925_s14 + $0xd8] sm:$0xff] }
 0x1f5   :  { %6484 = vmatprep.subr.mxu0 %v967_v12  ;;  %v1226_v26 = vld [vmem:[%s8925_s14 + $0x18] sm:$0xff] }
 0x1f6   :  { %6485 = vmatpush3.msra.mxu0 %v967_v12  ;;  %v1233_v12 = vld [vmem:[%s8925_s14 + $0x50] sm:$0xff] }
 0x1f7   :  { %6423 = vmatmul.mubr.f32.gmra.mxu0 %v550_v27  ;;  %6486 = vmatprep.subr.mxu0 %v6457_v9  ;;  %v5548_v27 = vld [vmem:[%s8925_s14 + $0x98] sm:$0xff] }
 0x1f8   :  { %6487 = vmatpush3.msra.mxu0 %v6457_v9  ;;  %6425 = vmatprep.mubr.f32.mxu0 %v551_v28  ;;  %v5557_v9 = vld [vmem:[%s8925_s14 + $0xe0] sm:$0xff]  ;;  %v1225_v28 = vld [vmem:[%s8925_s14 + $0x10] sm:$0xff] }
 0x1f9   :  { %6488 = vmatprep.subr.mxu0 %v8142_v10 }
 0x1fa   :  { %6489 = vmatpush3.msra.mxu0 %v8142_v10  ;;  %v1234_v10 = vld [vmem:[%s8925_s14 + $0x58] sm:$0xff] }
 0x1fb   :  { %6426 = vmatmul.mubr.f32.gmra.mxu0 %v552_v29  ;;  %6490 = vmatprep.subr.mxu0 %v8138_v7  ;;  %v5547_v29 = vld [vmem:[%s8925_s14 + $0x90] sm:$0xff] }
 0x1fc   :  { %6491 = vmatpush3.msra.mxu0 %v8138_v7  ;;  %6428 = vmatprep.mubr.f32.mxu0 %v553_v30  ;;  %v5558_v7 = vld [vmem:[%s8925_s14 + $0xe8] sm:$0xff] }
 0x1fd   :  { %6492 = vmatprep.subr.mxu0 %v8140_v8  ;;  %v1224_v30 = vld [vmem:[%s8925_s14 + $0x8] sm:$0xff] }
 0x1fe   :  { %6493 = vmatpush3.msra.mxu0 %v8140_v8  ;;  %v1235_v8 = vld [vmem:[%s8925_s14 + $0x60] sm:$0xff] }
 0x1ff   :  { %6429 = vmatmul.mubr.f32.gmra.mxu0 %v554_v31  ;;  %6494 = vmatprep.subr.mxu0 %v8134_v5  ;;  %v5546_v31 = vld [vmem:[%s8925_s14 + $0x88] sm:$0xff] }
 0x200   :  { %6495 = vmatpush3.msra.mxu0 %v8134_v5  ;;  %6431 = vmatprep.mubr.f32.mxu0 %v555_v32  ;;  %v5559_v5 = vld [vmem:[%s8925_s14 + $0xf0] sm:$0xff]  ;;  %v1223_v32 = vld [vmem:[%s8925_s14] sm:$0xff] }
 0x201   :  { %6496 = vmatprep.subr.mxu0 %v8136_v6 }
 0x202   :  { %6497 = vmatpush3.msra.mxu0 %v8136_v6  ;;  %v1236_v6 = vld [vmem:[%s8925_s14 + $0x68] sm:$0xff] }
 0x203   :  { %6432 = vmatmul.mubr.f32.gmra.mxu0 %v556_v33  ;;  %6498 = vmatprep.subr.mxu0 %v8130_v3  ;;  %v5545_v33 = vld [vmem:[%s8925_s14 + $0x80] sm:$0xff] }
 0x204   :  { %6499 = vmatpush3.msra.mxu0 %v8130_v3  ;;  %6502 = vmatprep.mubr.f32.mxu0 %v1007_v34  ;;  %v5560_v3 = vld [vmem:[%s8925_s14 + $0xf8] sm:$0xff] }
 0x205   :  { %6500 = vmatprep.subr.mxu0 %v8132_v4 }
 0x206   :  { %6501 = vmatpush3.msra.mxu0 %v8132_v4  ;;  %v1237_v4 = vld [vmem:[%s8925_s14 + $0x70] sm:$0xff] }
 0x207   :  { %6503 = vmatmul.mubr.f32.vlgmr.msra.gmra.mxu0 %v1008_v35  ;;  %6582 = vmatprep.subr.mxu0 %v5560_v3 }
 0x208   :  { %6505 = vmatprep.mubr.f32.mxu0 %v1009_v37  ;;  %6583 = vmatpush3.msra.mxu0 %v5560_v3 }
 0x209   :  { %6528 = vmatprep.subr.mxu1 %v1237_v4  ;;  %6584 = vmatprep.subr.mxu0 %v5559_v5 }
 0x20a   :  { %6529 = vmatpush3.msra.mxu1 %v1237_v4  ;;  %6585 = vmatpush3.msra.mxu0 %v5559_v5 }
 0x20b   :  { %6506 = vmatmul.mubr.f32.gmra.mxu0 %v1010_v39  ;;  %6530 = vmatprep.subr.mxu1 %v1236_v6 }
 0x20c   :  { %6508 = vmatprep.mubr.f32.mxu0 %v1011_v41  ;;  %6586 = vmatprep.subr.mxu0 %v5558_v7 }
 0x20d   :  { %6531 = vmatpush3.msra.mxu1 %v1236_v6  ;;  %6587 = vmatpush3.msra.mxu0 %v5558_v7  ;;  %v8211_v6 = vld [vmem:[%s8926_s12] ss:$0 sm:$0xff] }
 0x20e   :  { %6532 = vmatprep.subr.mxu1 %v1235_v8  ;;  %6588 = vmatprep.subr.mxu0 %v5557_v9 }
 0x20f   :  { %6509 = vmatmul.mubr.f32.gmra.mxu0 %v1012_v43  ;;  %6533 = vmatpush3.msra.mxu1 %v1235_v8 }
 0x210   :  { %6511 = vmatprep.mubr.f32.mxu0 %v1013_v45  ;;  %6589 = vmatpush3.msra.mxu0 %v5557_v9 }
 0x211   :  { %6534 = vmatprep.subr.mxu1 %v1234_v10  ;;  %6590 = vmatprep.subr.mxu0 %v5556_v11 }
 0x212   :  { %6535 = vmatpush3.msra.mxu1 %v1234_v10  ;;  %6591 = vmatpush3.msra.mxu0 %v5556_v11 }
 0x213   :  { %6512 = vmatmul.mubr.f32.gmra.mxu0 %v1014_v47  ;;  %6536 = vmatprep.subr.mxu1 %v1233_v12 }
 0x214   :  { %6514 = vmatprep.mubr.f32.mxu0 %v1015_v49  ;;  %6592 = vmatprep.subr.mxu0 %v5555_v13 }
 0x215   :  { %6537 = vmatpush3.msra.mxu1 %v1233_v12  ;;  %6593 = vmatpush3.msra.mxu0 %v5555_v13 }
 0x216   :  { %6538 = vmatprep.subr.mxu1 %v1232_v14  ;;  %6594 = vmatprep.subr.mxu0 %v5554_v15 }
 0x217   :  { %6515 = vmatmul.mubr.f32.gmra.mxu0 %v1016_v51  ;;  %6539 = vmatpush3.msra.mxu1 %v1232_v14 }
 0x218   :  { %6517 = vmatprep.mubr.f32.mxu0 %v1017_v53  ;;  %6595 = vmatpush3.msra.mxu0 %v5554_v15 }
 0x219   :  { %6540 = vmatprep.subr.mxu1 %v1231_v16  ;;  %6596 = vmatprep.subr.mxu0 %v5553_v17 }
 0x21a   :  { %6541 = vmatpush3.msra.mxu1 %v1231_v16  ;;  %6597 = vmatpush3.msra.mxu0 %v5553_v17 }
 0x21b   :  { %6518 = vmatmul.mubr.f32.gmra.mxu0 %v1018_v55  ;;  %6542 = vmatprep.subr.mxu1 %v1230_v18 }
 0x21c   :  { %6520 = vmatprep.mubr.f32.mxu0 %v1019_v57  ;;  %6598 = vmatprep.subr.mxu0 %v5552_v19 }
 0x21d   :  { %6543 = vmatpush3.msra.mxu1 %v1230_v18  ;;  %6599 = vmatpush3.msra.mxu0 %v5552_v19 }
 0x21e   :  { %6544 = vmatprep.subr.mxu1 %v1229_v20  ;;  %6600 = vmatprep.subr.mxu0 %v5551_v21 }
 0x21f   :  { %6521 = vmatmul.mubr.f32.gmra.mxu0 %v1020_v59  ;;  %6545 = vmatpush3.msra.mxu1 %v1229_v20 }
 0x220   :  { %6523 = vmatprep.mubr.f32.mxu0 %v1021_v61  ;;  %6601 = vmatpush3.msra.mxu0 %v5551_v21 }
 0x221   :  { %6546 = vmatprep.subr.mxu1 %v1228_v22  ;;  %6602 = vmatprep.subr.mxu0 %v5550_v23 }
 0x222   :  { %6547 = vmatpush3.msra.mxu1 %v1228_v22  ;;  %6603 = vmatpush3.msra.mxu0 %v5550_v23 }
 0x223   :  { %6524 = vmatmul.mubr.f32.gmra.mxu0 %v1022_v63  ;;  %6548 = vmatprep.subr.mxu1 %v1227_v24 }
 0x224   :  { %6604 = vmatprep.subr.mxu0 %v5549_v25  ;;  %6549 = vmatpush3.msra.mxu1 %v1227_v24 }
 0x225   :  { %6605 = vmatpush3.msra.mxu0 %v5549_v25  ;;  %6550 = vmatprep.subr.mxu1 %v1226_v26 }
 0x226   :  { %6606 = vmatprep.subr.mxu0 %v5548_v27  ;;  %6551 = vmatpush3.msra.mxu1 %v1226_v26 }
 0x227   :  { %6607 = vmatpush3.msra.mxu0 %v5548_v27  ;;  %6552 = vmatprep.subr.mxu1 %v1225_v28 }
 0x228   :  { %6608 = vmatprep.subr.mxu0 %v5547_v29  ;;  %6553 = vmatpush3.msra.mxu1 %v1225_v28 }
 0x229   :  { %6609 = vmatpush3.msra.mxu0 %v5547_v29  ;;  %6554 = vmatprep.subr.mxu1 %v1224_v30 }
 0x22a   :  { %6610 = vmatprep.subr.mxu0 %v5546_v31  ;;  %6555 = vmatpush3.msra.mxu1 %v1224_v30 }
 0x22b   :  { %6611 = vmatpush3.msra.mxu0 %v5546_v31  ;;  %6556 = vmatprep.subr.mxu1 %v1223_v32 }
 0x22c   :  { %6612 = vmatprep.subr.mxu0 %v5545_v33  ;;  %6557 = vmatpush3.msra.mxu1 %v1223_v32 }
 0x22d   :  { %6613 = vmatpush3.msra.mxu0 %v5545_v33 }
 0x2a7   :  { %v6412_v34 = vpop.f32.mrf.mxu0 }
 0x2a8   :  { %v781_v1 = vadd.f32 %v6412_v34, %v8092_v36 }
 0x2a9   :  { %v775_v35 = vpop.f32.mrf.mxu0 }
 0x2aa   :  { %v776_v4 = vadd.f32 %v775_v35, %v8096_v38 }
 0x2ab   :  { %v6415_v37 = vpop.f32.mrf.mxu0 }
 0x2ac   :  { %v791_v8 = vadd.f32 %v6415_v37, %v8100_v40 }
 0x2ad   :  { %v785_v39 = vpop.f32.mrf.mxu0 }
 0x2ae   :  { %v786_v12 = vadd.f32 %v785_v39, %v8104_v42 }
 0x2af   :  { %v6418_v41 = vpop.f32.mrf.mxu0 }
 0x2b0   :  { %v801_v36 = vadd.f32 %v6418_v41, %v8106_v44 }
 0x2b1   :  { %v795_v43 = vpop.f32.mrf.mxu0 }
 0x2b2   :  { %v796_v40 = vadd.f32 %v795_v43, %v8108_v46 }
 0x2b3   :  { %v6421_v45 = vpop.f32.mrf.mxu0 }
 0x2b4   :  { %v811_v22 = vadd.f32 %v6421_v45, %v8110_v48 }
 0x2b5   :  { %v805_v47 = vpop.f32.mrf.mxu0 }
 0x2b6   :  { %v806_v27 = vadd.f32 %v805_v47, %v8112_v50 }
 0x2b7   :  { %v6424_v49 = vpop.f32.mrf.mxu0 }
 0x2b8   :  { %v821_v30 = vadd.f32 %v6424_v49, %v8114_v52 }
 0x2b9   :  { %v815_v51 = vpop.f32.mrf.mxu0 }
 0x2ba   :  { %v816_v35 = vadd.f32 %v815_v51, %v8116_v54 }
 0x2bb   :  { %v6427_v53 = vpop.f32.mrf.mxu0 }
 0x2bc   :  { %v831_v41 = vadd.f32 %v6427_v53, %v8118_v56 }
 0x2bd   :  { %v8198_v55 = vpop.f32.mrf.mxu0 }
 0x2bf   :  { %v8200_v57 = vpop.f32.mrf.mxu0 }
 0x2c0   :  { %v841_v56 = vadd.f32 %v8200_v57, %v8122_v60 }
 0x2c1   :  { %v8202_v59 = vpop.f32.mrf.mxu0 }
 0x2c3   :  { %v8204_v61 = vpop.f32.mrf.mxu0 }
 0x2c4   :  { %v851_v60 = vadd.f32 %v8204_v61, %v8126_v0 }
 0x2c5   :  { %v8206_v63 = vpop.f32.mrf.mxu0 }
 0x2c7   :  { %v6504_v3 = vpop.f32.mrf.mxu0 }
 0x2c8   :  { %v1169_v5 = vadd.f32 %v6504_v3, %v781_v1  ;;  %v826_v1 = vadd.f32 %v8198_v55, %v8120_v58  ;;  %v836_v58 = vadd.f32 %v8202_v59, %v8124_v62  ;;  %v846_v62 = vadd.f32 %v8206_v63, %v8128_v2 }
 0x2c9   :  { %v1089_v7 = vpop.f32.mrf.mxu0 }
 0x2ca   :  { %v1168_v9 = vadd.f32 %v1089_v7, %v776_v4  ;;  %v1192_v10 = vadd.f32 %v8211_v6, %v1169_v5 }
 0x2cb   :  { %v6507_v11 = vpop.f32.mrf.mxu0 }
 0x2cc   :  { %v1191_v13 = vadd.f32 %v8211_v6, %v1168_v9  ;;  %v1171_v14 = vadd.f32 %v6507_v11, %v791_v8  ;;  %v1208_v17 = vmax.f32 %v1192_v10, 0.0 }
 0x2cd   :  { %v1099_v15 = vpop.f32.mrf.mxu0 }
 0x2ce   :  { %v1207_v16 = vmax.f32 %v1191_v13, 0.0  ;;  %v1170_v38 = vadd.f32 %v1099_v15, %v786_v12  ;;  %v1194_v18 = vadd.f32 %v8211_v6, %v1171_v14 }
 0x2cf   :  { %v6510_v19 = vpop.f32.mrf.mxu0 }
 0x2d0   :  { %v1193_v20 = vadd.f32 %v8211_v6, %v1170_v38  ;;  %v1173_v21 = vadd.f32 %v6510_v19, %v801_v36  ;;  %6558 = vmatprep.mubr.f32.mxu1 %v1207_v16  ;;  %6614 = vmatprep.mubr.f32.mxu0 %v1207_v16  ;;  %v1210_v24 = vmax.f32 %v1194_v18, 0.0  ;;  %v1562_v18 = vld [vmem:[#allocation6] sm:$0xff] }
 0x2d1   :  { %v1109_v42 = vpop.f32.mrf.mxu0  ;;  %6559 = vmatmul.mubr.f32.vlgmr.msra.gmra.mxu1 %v1208_v17  ;;  %6615 = vmatmul.mubr.f32.vlgmr.msra.gmra.mxu0 %v1208_v17  ;;  %v1676_v19 = vld [vmem:[#allocation6 + $0x40] sm:$0xff] }
 0x2d2   :  { %v1209_v23 = vmax.f32 %v1193_v20, 0.0  ;;  %v1172_v44 = vadd.f32 %v1109_v42, %v796_v40  ;;  %v1196_v25 = vadd.f32 %v8211_v6, %v1173_v21 }
 0x2d3   :  { %v6513_v26 = vpop.f32.mrf.mxu0 }
 0x2d4   :  { %v1195_v46 = vadd.f32 %v8211_v6, %v1172_v44  ;;  %v1175_v28 = vadd.f32 %v6513_v26, %v811_v22  ;;  %6561 = vmatprep.mubr.f32.mxu1 %v1209_v23  ;;  %6617 = vmatprep.mubr.f32.mxu0 %v1209_v23  ;;  %v1212_v32 = vmax.f32 %v1196_v25, 0.0 }
 0x2d5   :  { %v1119_v29 = vpop.f32.mrf.mxu0  ;;  %6562 = vmatmul.mubr.f32.gmra.mxu1 %v1210_v24  ;;  %6618 = vmatmul.mubr.f32.gmra.mxu0 %v1210_v24 }
 0x2d6   :  { %v1211_v31 = vmax.f32 %v1195_v46, 0.0  ;;  %v1174_v48 = vadd.f32 %v1119_v29, %v806_v27  ;;  %v1198_v33 = vadd.f32 %v8211_v6, %v1175_v28 }
 0x2d7   :  { %v6516_v34 = vpop.f32.mrf.mxu0 }
 0x2d8   :  { %v1197_v50 = vadd.f32 %v8211_v6, %v1174_v48  ;;  %v1177_v37 = vadd.f32 %v6516_v34, %v821_v30  ;;  %6564 = vmatprep.mubr.f32.mxu1 %v1211_v31  ;;  %6620 = vmatprep.mubr.f32.mxu0 %v1211_v31  ;;  %v1214_v45 = vmax.f32 %v1198_v33, 0.0 }
 0x2d9   :  { %v1129_v39 = vpop.f32.mrf.mxu0  ;;  %6565 = vmatmul.mubr.f32.gmra.mxu1 %v1212_v32  ;;  %6621 = vmatmul.mubr.f32.gmra.mxu0 %v1212_v32 }
 0x2da   :  { %v1213_v43 = vmax.f32 %v1197_v50, 0.0  ;;  %v1176_v52 = vadd.f32 %v1129_v39, %v816_v35  ;;  %v1200_v47 = vadd.f32 %v8211_v6, %v1177_v37 }
 0x2db   :  { %v6519_v49 = vpop.f32.mrf.mxu0 }
 0x2dc   :  { %v1199_v54 = vadd.f32 %v8211_v6, %v1176_v52  ;;  %v1179_v51 = vadd.f32 %v6519_v49, %v831_v41  ;;  %6567 = vmatprep.mubr.f32.mxu1 %v1213_v43  ;;  %6623 = vmatprep.mubr.f32.mxu0 %v1213_v43  ;;  %v1216_v5 = vmax.f32 %v1200_v47, 0.0 }
 0x2dd   :  { %v1139_v3 = vpop.f32.mrf.mxu0  ;;  %6568 = vmatmul.mubr.f32.gmra.mxu1 %v1214_v45  ;;  %6624 = vmatmul.mubr.f32.gmra.mxu0 %v1214_v45 }
 0x2de   :  { %v1215_v53 = vmax.f32 %v1199_v54, 0.0  ;;  %v1178_v4 = vadd.f32 %v1139_v3, %v826_v1  ;;  %v1202_v7 = vadd.f32 %v8211_v6, %v1179_v51 }
 0x2df   :  { %v6522_v8 = vpop.f32.mrf.mxu0 }
 0x2e0   :  { %v1201_v55 = vadd.f32 %v8211_v6, %v1178_v4  ;;  %v1181_v9 = vadd.f32 %v6522_v8, %v841_v56  ;;  %6570 = vmatprep.mubr.f32.mxu1 %v1215_v53  ;;  %6626 = vmatprep.mubr.f32.mxu0 %v1215_v53  ;;  %v1218_v12 = vmax.f32 %v1202_v7, 0.0 }
 0x2e1   :  { %v1149_v10 = vpop.f32.mrf.mxu0  ;;  %6571 = vmatmul.mubr.f32.gmra.mxu1 %v1216_v5  ;;  %6627 = vmatmul.mubr.f32.gmra.mxu0 %v1216_v5 }
 0x2e2   :  { %v1217_v57 = vmax.f32 %v1201_v55, 0.0  ;;  %v1180_v11 = vadd.f32 %v1149_v10, %v836_v58  ;;  %v1204_v13 = vadd.f32 %v8211_v6, %v1181_v9 }
 0x2e3   :  { %v6525_v14 = vpop.f32.mrf.mxu0 }
 0x2e4   :  { %v1203_v59 = vadd.f32 %v8211_v6, %v1180_v11  ;;  %v1183_v15 = vadd.f32 %v6525_v14, %v851_v60  ;;  %6573 = vmatprep.mubr.f32.mxu1 %v1217_v57  ;;  %6629 = vmatprep.mubr.f32.mxu0 %v1217_v57  ;;  %v1220_v0 = vmax.f32 %v1204_v13, 0.0  ;;  %v1677_v13 = vld [vmem:[#allocation6 + $0x48] sm:$0xff]  ;;  %v1564_v14 = vld [vmem:[#allocation6 + $0x10] sm:$0xff] }
 0x2e5   :  { %v1159_v36 = vpop.f32.mrf.mxu0  ;;  %6574 = vmatmul.mubr.f32.gmra.mxu1 %v1218_v12  ;;  %6630 = vmatmul.mubr.f32.gmra.mxu0 %v1218_v12  ;;  %v1563_v12 = vld [vmem:[#allocation6 + $0x8] sm:$0xff] }
 0x2e6   :  { %v1219_v16 = vmax.f32 %v1203_v59, 0.0  ;;  %v1182_v38 = vadd.f32 %v1159_v36, %v846_v62  ;;  %v1206_v61 = vadd.f32 %v8211_v6, %v1183_v15  ;;  %v1678_v62 = vld [vmem:[#allocation6 + $0x50] sm:$0xff]  ;;  %v1804_v59 = vld [vmem:[#allocation7 + $0x38] sm:$0xff] }
 0x2e7   :  { %v1951_v15 = vld [vmem:[#allocation7 + $0x78] sm:$0xff] }
 0x2e8   :  { %v1205_v17 = vadd.f32 %v8211_v6, %v1182_v38  ;;  %6576 = vmatprep.mubr.f32.mxu1 %v1219_v16  ;;  %6632 = vmatprep.mubr.f32.mxu0 %v1219_v16  ;;  %v1222_v63 = vmax.f32 %v1206_v61, 0.0  ;;  %v1565_v36 = vld [vmem:[#allocation6 + $0x18] sm:$0xff]  ;;  %v1566_v38 = vld [vmem:[#allocation6 + $0x20] sm:$0xff]  ;;  %v1803_v61 = vld [vmem:[#allocation7 + $0x30] sm:$0xff] }
 0x2e9   :  { %6577 = vmatmul.mubr.f32.gmra.mxu1 %v1220_v0  ;;  %6633 = vmatmul.mubr.f32.gmra.mxu0 %v1220_v0  ;;  %v1679_v16 = vld [vmem:[#allocation6 + $0x58] sm:$0xff]  ;;  %v1680_v0 = vld [vmem:[#allocation6 + $0x60] sm:$0xff] }
 0x2ea   :  { %v1221_v2 = vmax.f32 %v1205_v17, 0.0  ;;  %v1950_v17 = vld [vmem:[#allocation7 + $0x70] sm:$0xff] }
 0x2ec   :  { %6579 = vmatprep.mubr.f32.mxu1 %v1221_v2  ;;  %6635 = vmatprep.mubr.f32.mxu0 %v1221_v2  ;;  %v1567_v2 = vld [vmem:[#allocation6 + $0x28] sm:$0xff] }
 0x2ed   :  { %6580 = vmatmul.mubr.f32.gmra.mxu1 %v1222_v63  ;;  %6636 = vmatmul.mubr.f32.gmra.mxu0 %v1222_v63  ;;  %v1681_v63 = vld [vmem:[#allocation6 + $0x68] sm:$0xff] }
 0x2ee   :  { %6670 = vmatprep.mubr.f32.mxu1 %v1562_v18  ;;  %6714 = vmatprep.mubr.f32.mxu0 %v1676_v19  ;;  %v1568_v18 = vld [vmem:[#allocation6 + $0x30] sm:$0xff] }
 0x2ef   :  { %v1682_v19 = vld [vmem:[#allocation6 + $0x70] sm:$0xff] }
 0x391   :  { %v8248_v40 = vpop.f32.mrf.mxu1  ;;  %v8250_v20 = vpop.f32.mrf.mxu0 }
 0x392   :  { %v1547_v57 = vmax.f32 %v8248_v40, %v8250_v20  ;;  %v1802_v40 = vld [vmem:[#allocation7 + $0x28] sm:$0xff] }
 0x393   :  { %v8252_v21 = vpop.f32.mrf.mxu1  ;;  %v8254_v6 = vpop.f32.mrf.mxu0  ;;  %v1949_v20 = vld [vmem:[#allocation7 + $0x68] sm:$0xff] }
 0x394   :  { %v1546_v11 = vmax.f32 %v8252_v21, %v8254_v6  ;;  %v1569_v21 = vld [vmem:[#allocation6 + $0x38] sm:$0xff] }
 0x395   :  { %v8256_v42 = vpop.f32.mrf.mxu1  ;;  %v8258_v22 = vpop.f32.mrf.mxu0  ;;  %v1683_v6 = vld [vmem:[#allocation6 + $0x78] sm:$0xff] }
 0x396   :  { %v1549_v10 = vmax.f32 %v8256_v42, %v8258_v22  ;;  %v1801_v42 = vld [vmem:[#allocation7 + $0x20] sm:$0xff] }
 0x397   :  { %v8260_v23 = vpop.f32.mrf.mxu1  ;;  %v8262_v44 = vpop.f32.mrf.mxu0  ;;  %v1948_v22 = vld [vmem:[#allocation7 + $0x60] sm:$0xff] }
 0x398   :  { %v1548_v60 = vmax.f32 %v8260_v23, %v8262_v44  ;;  %v1800_v23 = vld [vmem:[#allocation7 + $0x18] sm:$0xff] }
 0x399   :  { %v8264_v24 = vpop.f32.mrf.mxu1  ;;  %v8266_v25 = vpop.f32.mrf.mxu0  ;;  %v1947_v44 = vld [vmem:[#allocation7 + $0x58] sm:$0xff] }
 0x39a   :  { %v1551_v55 = vmax.f32 %v8264_v24, %v8266_v25  ;;  %v1799_v24 = vld [vmem:[#allocation7 + $0x10] sm:$0xff] }
 0x39b   :  { %v8268_v26 = vpop.f32.mrf.mxu1  ;;  %v8270_v27 = vpop.f32.mrf.mxu0  ;;  %v1946_v25 = vld [vmem:[#allocation7 + $0x50] sm:$0xff] }
 0x39c   :  { %v1550_v9 = vmax.f32 %v8268_v26, %v8270_v27  ;;  %v1798_v26 = vld [vmem:[#allocation7 + $0x8] sm:$0xff] }
 0x39d   :  { %v6569_v46 = vpop.f32.mrf.mxu1  ;;  %v6625_v28 = vpop.f32.mrf.mxu0  ;;  %v1945_v27 = vld [vmem:[#allocation7 + $0x48] sm:$0xff] }
 0x39e   :  { %v1553_v8 = vmax.f32 %v6569_v46, %v6625_v28  ;;  %v1797_v46 = vld [vmem:[#allocation7] sm:$0xff] }
 0x39f   :  { %v1335_v29 = vpop.f32.mrf.mxu1  ;;  %v1497_v30 = vpop.f32.mrf.mxu0  ;;  %v1944_v28 = vld [vmem:[#allocation7 + $0x40] sm:$0xff] }
 0x3a0   :  { %v1552_v58 = vmax.f32 %v1335_v29, %v1497_v30  ;;  %v2194_v29 = vld [vmem:[#allocation7 + $0xb8] sm:$0xff] }
 0x3a1   :  { %v6572_v31 = vpop.f32.mrf.mxu1  ;;  %v6628_v48 = vpop.f32.mrf.mxu0 }
 0x3a2   :  { %v1555_v5 = vmax.f32 %v6572_v31, %v6628_v48 }
 0x3a3   :  { %v1345_v32 = vpop.f32.mrf.mxu1  ;;  %v1507_v33 = vpop.f32.mrf.mxu0 }
 0x3a4   :  { %v1554_v7 = vmax.f32 %v1345_v32, %v1507_v33 }
 0x3a5   :  { %v6575_v34 = vpop.f32.mrf.mxu1  ;;  %v6631_v35 = vpop.f32.mrf.mxu0 }
 0x3a6   :  { %v1557_v53 = vmax.f32 %v6575_v34, %v6631_v35 }
 0x3a7   :  { %v1355_v50 = vpop.f32.mrf.mxu1  ;;  %v1517_v37 = vpop.f32.mrf.mxu0 }
 0x3a8   :  { %v1556_v4 = vmax.f32 %v1355_v50, %v1517_v37  ;;  %v2193_v37 = vld [vmem:[#allocation7 + $0xb0] sm:$0xff] }
 0x3a9   :  { %v6578_v39 = vpop.f32.mrf.mxu1  ;;  %v6634_v41 = vpop.f32.mrf.mxu0 }
 0x3aa   :  { %v1559_v3 = vmax.f32 %v6578_v39, %v6634_v41 }
 0x3ab   :  { %v1365_v43 = vpop.f32.mrf.mxu1  ;;  %v1527_v52 = vpop.f32.mrf.mxu0 }
 0x3ac   :  { %v1558_v56 = vmax.f32 %v1365_v43, %v1527_v52 }
 0x3ad   :  { %v6581_v45 = vpop.f32.mrf.mxu1  ;;  %v6637_v47 = vpop.f32.mrf.mxu0 }
 0x3ae   :  { %v1561_v49 = vmax.f32 %v6581_v45, %v6637_v47 }
 0x3af   :  { %v1375_v1 = vpop.f32.mrf.mxu1  ;;  %v1537_v54 = vpop.f32.mrf.mxu0 }
 0x3b0   :  { %v1560_v51 = vmax.f32 %v1375_v1, %v1537_v54  ;;  %6638 = vmatprep.subr.mxu1 %v1561_v49  ;;  %6682 = vmatprep.subr.mxu0 %v1561_v49 }
 0x3b1   :  { %6639 = vmatpush3.msra.mxu1 %v1561_v49  ;;  %6683 = vmatpush3.msra.mxu0 %v1561_v49  ;;  %v2192_v49 = vld [vmem:[#allocation7 + $0xa8] sm:$0xff] }
 0x3b2   :  { %6640 = vmatprep.subr.mxu1 %v1560_v51  ;;  %6684 = vmatprep.subr.mxu0 %v1560_v51 }
 0x3b3   :  { %6641 = vmatpush3.msra.mxu1 %v1560_v51  ;;  %6685 = vmatpush3.msra.mxu0 %v1560_v51  ;;  %v2191_v51 = vld [vmem:[#allocation7 + $0xa0] sm:$0xff] }
 0x3b4   :  { %6642 = vmatprep.subr.mxu1 %v1559_v3  ;;  %6686 = vmatprep.subr.mxu0 %v1559_v3 }
 0x3b5   :  { %6643 = vmatpush3.msra.mxu1 %v1559_v3  ;;  %6687 = vmatpush3.msra.mxu0 %v1559_v3 }
 0x3b6   :  { %6644 = vmatprep.subr.mxu1 %v1558_v56  ;;  %6688 = vmatprep.subr.mxu0 %v1558_v56 }
 0x3b7   :  { %6645 = vmatpush3.msra.mxu1 %v1558_v56  ;;  %6689 = vmatpush3.msra.mxu0 %v1558_v56 }
 0x3b8   :  { %6646 = vmatprep.subr.mxu1 %v1557_v53  ;;  %6690 = vmatprep.subr.mxu0 %v1557_v53 }
 0x3b9   :  { %6647 = vmatpush3.msra.mxu1 %v1557_v53  ;;  %6691 = vmatpush3.msra.mxu0 %v1557_v53 }
 0x3ba   :  { %6648 = vmatprep.subr.mxu1 %v1556_v4  ;;  %6692 = vmatprep.subr.mxu0 %v1556_v4 }
 0x3bb   :  { %6649 = vmatpush3.msra.mxu1 %v1556_v4  ;;  %6693 = vmatpush3.msra.mxu0 %v1556_v4 }
 0x3bc   :  { %6650 = vmatprep.subr.mxu1 %v1555_v5  ;;  %6694 = vmatprep.subr.mxu0 %v1555_v5 }
 0x3bd   :  { %6651 = vmatpush3.msra.mxu1 %v1555_v5  ;;  %6695 = vmatpush3.msra.mxu0 %v1555_v5  ;;  %v2190_v5 = vld [vmem:[#allocation7 + $0x98] sm:$0xff] }
 0x3be   :  { %6652 = vmatprep.subr.mxu1 %v1554_v7  ;;  %6696 = vmatprep.subr.mxu0 %v1554_v7 }
 0x3bf   :  { %6653 = vmatpush3.msra.mxu1 %v1554_v7  ;;  %6697 = vmatpush3.msra.mxu0 %v1554_v7 }
 0x3c0   :  { %6654 = vmatprep.subr.mxu1 %v1553_v8  ;;  %6698 = vmatprep.subr.mxu0 %v1553_v8 }
 0x3c1   :  { %6655 = vmatpush3.msra.mxu1 %v1553_v8  ;;  %6699 = vmatpush3.msra.mxu0 %v1553_v8 }
 0x3c2   :  { %6656 = vmatprep.subr.mxu1 %v1552_v58  ;;  %6700 = vmatprep.subr.mxu0 %v1552_v58 }
 0x3c3   :  { %6657 = vmatpush3.msra.mxu1 %v1552_v58  ;;  %6701 = vmatpush3.msra.mxu0 %v1552_v58 }
 0x3c4   :  { %6658 = vmatprep.subr.mxu1 %v1551_v55  ;;  %6702 = vmatprep.subr.mxu0 %v1551_v55 }
 0x3c5   :  { %6659 = vmatpush3.msra.mxu1 %v1551_v55  ;;  %6703 = vmatpush3.msra.mxu0 %v1551_v55  ;;  %v2189_v55 = vld [vmem:[#allocation7 + $0x90] sm:$0xff] }
 0x3c6   :  { %6660 = vmatprep.subr.mxu1 %v1550_v9  ;;  %6704 = vmatprep.subr.mxu0 %v1550_v9 }
 0x3c7   :  { %6661 = vmatpush3.msra.mxu1 %v1550_v9  ;;  %6705 = vmatpush3.msra.mxu0 %v1550_v9 }
 0x3c8   :  { %6662 = vmatprep.subr.mxu1 %v1549_v10  ;;  %6706 = vmatprep.subr.mxu0 %v1549_v10 }
 0x3c9   :  { %6663 = vmatpush3.msra.mxu1 %v1549_v10  ;;  %6707 = vmatpush3.msra.mxu0 %v1549_v10  ;;  %v2188_v10 = vld [vmem:[#allocation7 + $0x88] sm:$0xff] }
 0x3ca   :  { %6664 = vmatprep.subr.mxu1 %v1548_v60  ;;  %6708 = vmatprep.subr.mxu0 %v1548_v60 }
 0x3cb   :  { %6665 = vmatpush3.msra.mxu1 %v1548_v60  ;;  %6709 = vmatpush3.msra.mxu0 %v1548_v60  ;;  %v2187_v60 = vld [vmem:[#allocation7 + $0x80] sm:$0xff] }
 0x3cc   :  { %6666 = vmatprep.subr.mxu1 %v1547_v57  ;;  %6710 = vmatprep.subr.mxu0 %v1547_v57 }
 0x3cd   :  { %6667 = vmatpush3.msra.mxu1 %v1547_v57  ;;  %6711 = vmatpush3.msra.mxu0 %v1547_v57  ;;  %v1935_v57 = vld [vmem:[#allocation9] sm:$0xff] }
 0x3ce   :  { %6668 = vmatprep.subr.mxu1 %v1546_v11  ;;  %6712 = vmatprep.subr.mxu0 %v1546_v11 }
 0x3cf   :  { %6669 = vmatpush3.msra.mxu1 %v1546_v11  ;;  %6713 = vmatpush3.msra.mxu0 %v1546_v11 }
 0x3d0   :  { %6671 = vmatmul.mubr.f32.vlgmr.msra.gmra.mxu1 %v1563_v12  ;;  %6715 = vmatmul.mubr.f32.vlgmr.msra.gmra.mxu0 %v1677_v13 }
 0x3d1   :  { %6673 = vmatprep.mubr.f32.mxu1 %v1564_v14  ;;  %6717 = vmatprep.mubr.f32.mxu0 %v1678_v62 }
 0x3d2   :  { %6726 = vmatprep.subr.mxu0 %v1804_v59  ;;  %6754 = vmatprep.subr.mxu1 %v1951_v15 }
 0x3d3   :  { %6727 = vmatpush3.msra.mxu0 %v1804_v59  ;;  %6755 = vmatpush3.msra.mxu1 %v1951_v15 }
 0x3d4   :  { %6674 = vmatmul.mubr.f32.gmra.mxu1 %v1565_v36  ;;  %6718 = vmatmul.mubr.f32.gmra.mxu0 %v1679_v16 }
 0x3d5   :  { %6676 = vmatprep.mubr.f32.mxu1 %v1566_v38  ;;  %6720 = vmatprep.mubr.f32.mxu0 %v1680_v0 }
 0x3d6   :  { %6728 = vmatprep.subr.mxu0 %v1803_v61  ;;  %6756 = vmatprep.subr.mxu1 %v1950_v17 }
 0x3d7   :  { %6729 = vmatpush3.msra.mxu0 %v1803_v61  ;;  %6757 = vmatpush3.msra.mxu1 %v1950_v17 }
 0x3d8   :  { %6677 = vmatmul.mubr.f32.gmra.mxu1 %v1567_v2  ;;  %6721 = vmatmul.mubr.f32.gmra.mxu0 %v1681_v63 }
 0x3d9   :  { %6679 = vmatprep.mubr.f32.mxu1 %v1568_v18  ;;  %6723 = vmatprep.mubr.f32.mxu0 %v1682_v19 }
 0x3da   :  { %6730 = vmatprep.subr.mxu0 %v1802_v40  ;;  %6758 = vmatprep.subr.mxu1 %v1949_v20 }
 0x3db   :  { %6731 = vmatpush3.msra.mxu0 %v1802_v40  ;;  %6759 = vmatpush3.msra.mxu1 %v1949_v20 }
 0x3dc   :  { %6680 = vmatmul.mubr.f32.gmra.mxu1 %v1569_v21  ;;  %6724 = vmatmul.mubr.f32.gmra.mxu0 %v1683_v6 }
 0x3dd   :  { %6732 = vmatprep.subr.mxu0 %v1801_v42  ;;  %6760 = vmatprep.subr.mxu1 %v1948_v22 }
 0x3de   :  { %6733 = vmatpush3.msra.mxu0 %v1801_v42  ;;  %6761 = vmatpush3.msra.mxu1 %v1948_v22  ;;  %v1936_v42 = vld [vmem:[#allocation9 + $0x8] sm:$0xff] }
 0x3df   :  { %6734 = vmatprep.subr.mxu0 %v1800_v23  ;;  %6762 = vmatprep.subr.mxu1 %v1947_v44 }
 0x3e0   :  { %6735 = vmatpush3.msra.mxu0 %v1800_v23  ;;  %6763 = vmatpush3.msra.mxu1 %v1947_v44  ;;  %v1937_v23 = vld [vmem:[#allocation9 + $0x10] sm:$0xff] }
 0x3e1   :  { %6736 = vmatprep.subr.mxu0 %v1799_v24  ;;  %6764 = vmatprep.subr.mxu1 %v1946_v25 }
 0x3e2   :  { %6737 = vmatpush3.msra.mxu0 %v1799_v24  ;;  %6765 = vmatpush3.msra.mxu1 %v1946_v25  ;;  %v1938_v25 = vld [vmem:[#allocation9 + $0x18] sm:$0xff] }
 0x3e3   :  { %6738 = vmatprep.subr.mxu0 %v1798_v26  ;;  %6766 = vmatprep.subr.mxu1 %v1945_v27 }
 0x3e4   :  { %6739 = vmatpush3.msra.mxu0 %v1798_v26  ;;  %6767 = vmatpush3.msra.mxu1 %v1945_v27  ;;  %v1939_v26 = vld [vmem:[#allocation9 + $0x20] sm:$0xff]  ;;  %v1940_v27 = vld [vmem:[#allocation9 + $0x28] sm:$0xff] }
 0x3e5   :  { %6740 = vmatprep.subr.mxu0 %v1797_v46  ;;  %6768 = vmatprep.subr.mxu1 %v1944_v28 }
 0x3e6   :  { %6741 = vmatpush3.msra.mxu0 %v1797_v46  ;;  %6769 = vmatpush3.msra.mxu1 %v1944_v28  ;;  %v1941_v46 = vld [vmem:[#allocation9 + $0x30] sm:$0xff]  ;;  %v1942_v28 = vld [vmem:[#allocation9 + $0x38] sm:$0xff] }
 0x3e7   :  { %6810 = vmatprep.subr.mxu1 %v2194_v29 }
 0x490   :  { %v6672_v30 = vpop.f32.mrf.mxu1  ;;  %v6716_v31 = vpop.f32.mrf.mxu0 }
 0x491   :  { %v1790_v34 = vmax.f32 %v6672_v30, %v6716_v31  ;;  %v2302_v30 = vld [vmem:[#allocation9 + $0x88] sm:$0xff]  ;;  %v2303_v31 = vld [vmem:[#allocation9 + $0x90] sm:$0xff] }
 0x492   :  { %v1636_v48 = vpop.f32.mrf.mxu1  ;;  %v1750_v32 = vpop.f32.mrf.mxu0 }
 0x493   :  { %v1789_v33 = vmax.f32 %v1636_v48, %v1750_v32  ;;  %v2304_v48 = vld [vmem:[#allocation9 + $0x98] sm:$0xff]  ;;  %v2305_v32 = vld [vmem:[#allocation9 + $0xa0] sm:$0xff] }
 0x494   :  { %v6675_v35 = vpop.f32.mrf.mxu1  ;;  %v6719_v50 = vpop.f32.mrf.mxu0 }
 0x495   :  { %6742 = vmatprep.mubr.msk.f32.mxu0 %vm1805_vm1, %v1789_v33  ;;  %6770 = vmatprep.mubr.msk.f32.mxu1 %vm1805_vm1, %v1789_v33  ;;  %v1792_v52 = vmax.f32 %v6675_v35, %v6719_v50  ;;  %v2308_v35 = vld [vmem:[#allocation9 + $0xb8] sm:$0xff] }
 0x496   :  { %v1646_v39 = vpop.f32.mrf.mxu1  ;;  %v1760_v41 = vpop.f32.mrf.mxu0  ;;  %6743 = vmatmul.mubr.msk.f32.vlgmr.msra.gmra.mxu0 %vm1805_vm1, %v1790_v34  ;;  %6771 = vmatmul.mubr.msk.f32.vlgmr.msra.gmra.mxu1 %vm1805_vm1, %v1790_v34  ;;  %v2476_v50 = vld [vmem:[#allocation10 + $0x38] sm:$0xff] }
 0x497   :  { %v1791_v43 = vmax.f32 %v1646_v39, %v1760_v41  ;;  %6811 = vmatpush3.msra.mxu1 %v2194_v29  ;;  %v2301_v29 = vld [vmem:[#allocation9 + $0x80] sm:$0xff]  ;;  %v2475_v39 = vld [vmem:[#allocation10 + $0x30] sm:$0xff] }
 0x498   :  { %v6678_v45 = vpop.f32.mrf.mxu1  ;;  %v6722_v47 = vpop.f32.mrf.mxu0  ;;  %6812 = vmatprep.subr.mxu1 %v2193_v37  ;;  %v2613_v41 = vld [vmem:[#allocation10 + $0x70] sm:$0xff] }
 0x499   :  { %6745 = vmatprep.mubr.msk.f32.mxu0 %vm1805_vm1, %v1791_v43  ;;  %6773 = vmatprep.mubr.msk.f32.mxu1 %vm1805_vm1, %v1791_v43  ;;  %v1794_v4 = vmax.f32 %v6678_v45, %v6722_v47  ;;  %v2473_v45 = vld [vmem:[#allocation10 + $0x20] sm:$0xff] }
 0x49a   :  { %6813 = vmatpush3.msra.mxu1 %v2193_v37  ;;  %v1656_v1 = vpop.f32.mrf.mxu1  ;;  %v1770_v54 = vpop.f32.mrf.mxu0  ;;  %6746 = vmatmul.mubr.msk.f32.gmra.mxu0 %vm1805_vm1, %v1792_v52  ;;  %v2614_v37 = vld [vmem:[#allocation10 + $0x78] sm:$0xff]  ;;  %v2611_v47 = vld [vmem:[#allocation10 + $0x60] sm:$0xff] }
 0x49b   :  { %v1793_v3 = vmax.f32 %v1656_v1, %v1770_v54  ;;  %6774 = vmatmul.mubr.msk.f32.gmra.mxu1 %vm1805_vm1, %v1792_v52  ;;  %6814 = vmatprep.subr.mxu1 %v2192_v49  ;;  %v2610_v1 = vld [vmem:[#allocation10 + $0x58] sm:$0xff]  ;;  %v2471_v54 = vld [vmem:[#allocation10 + $0x10] sm:$0xff] }
 0x49c   :  { %6815 = vmatpush3.msra.mxu1 %v2192_v49  ;;  %v6681_v56 = vpop.f32.mrf.mxu1  ;;  %v6725_v53 = vpop.f32.mrf.mxu0  ;;  %v2472_v49 = vld [vmem:[#allocation10 + $0x18] sm:$0xff] }
 0x49d   :  { %6816 = vmatprep.subr.mxu1 %v2191_v51  ;;  %6748 = vmatprep.mubr.msk.f32.mxu0 %vm1805_vm1, %v1793_v3  ;;  %v1796_v9 = vmax.f32 %v6681_v56, %v6725_v53  ;;  %v2608_v56 = vld [vmem:[#allocation10 + $0x48] sm:$0xff]  ;;  %v2469_v53 = vld [vmem:[#allocation10] sm:$0xff] }
 0x49e   :  { %6776 = vmatprep.mubr.msk.f32.mxu1 %vm1805_vm1, %v1793_v3  ;;  %6817 = vmatpush3.msra.mxu1 %v2191_v51  ;;  %v1666_v7 = vpop.f32.mrf.mxu1  ;;  %v1780_v8 = vpop.f32.mrf.mxu0  ;;  %v2609_v51 = vld [vmem:[#allocation10 + $0x50] sm:$0xff] }
 0x49f   :  { %v1795_v58 = vmax.f32 %v1666_v7, %v1780_v8  ;;  %6749 = vmatmul.mubr.msk.f32.gmra.mxu0 %vm1805_vm1, %v1794_v4  ;;  %6777 = vmatmul.mubr.msk.f32.gmra.mxu1 %vm1805_vm1, %v1794_v4 }
 0x4a0   :  { %6818 = vmatprep.subr.mxu1 %v2190_v5 }
 0x4a1   :  { %6819 = vmatpush3.msra.mxu1 %v2190_v5  ;;  %6751 = vmatprep.mubr.msk.f32.mxu0 %vm1805_vm1, %v1795_v58 }
 0x4a2   :  { %6820 = vmatprep.subr.mxu1 %v2189_v55  ;;  %6779 = vmatprep.mubr.msk.f32.mxu1 %vm1805_vm1, %v1795_v58 }
 0x4a3   :  { %6821 = vmatpush3.msra.mxu1 %v2189_v55  ;;  %6752 = vmatmul.mubr.msk.f32.gmra.mxu0 %vm1805_vm1, %v1796_v9 }
 0x4a4   :  { %6780 = vmatmul.mubr.msk.f32.gmra.mxu1 %vm1805_vm1, %v1796_v9  ;;  %6822 = vmatprep.subr.mxu1 %v2188_v10 }
 0x4a5   :  { %6823 = vmatpush3.msra.mxu1 %v2188_v10  ;;  %6826 = vmatprep.mubr.msk.f32.mxu1 %vm1805_vm1, %v1789_v33  ;;  %v2306_v33 = vld [vmem:[#allocation9 + $0xa8] sm:$0xff] }
 0x4a6   :  { %6824 = vmatprep.subr.mxu1 %v2187_v60  ;;  %6798 = vmatprep.mubr.msk.f32.mxu0 %vm1805_vm1, %v1935_v57 }
 0x4a7   :  { %6825 = vmatpush3.msra.mxu1 %v2187_v60 }
 0x4a8   :  { %6827 = vmatmul.mubr.msk.f32.vlgmr.msra.gmra.mxu1 %vm1805_vm1, %v1790_v34  ;;  %v2307_v34 = vld [vmem:[#allocation9 + $0xb0] sm:$0xff]  ;;  %6866 = vmatprep.subr.mxu1 %v2476_v50 }
 0x4a9   :  { %6829 = vmatprep.mubr.msk.f32.mxu1 %vm1805_vm1, %v1791_v43  ;;  %6867 = vmatpush3.msra.mxu1 %v2476_v50  ;;  %v2474_v43 = vld [vmem:[#allocation10 + $0x28] sm:$0xff] }
 0x4aa   :  { %6868 = vmatprep.subr.mxu1 %v2475_v39 }
 0x4ab   :  { %6869 = vmatpush3.msra.mxu1 %v2475_v39  ;;  %v2830_v39 = vld [vmem:[#allocation12 + $0x20] sm:$0xff] }
 0x4ac   :  { %6830 = vmatmul.mubr.msk.f32.gmra.mxu1 %vm1805_vm1, %v1792_v52  ;;  %v2612_v52 = vld [vmem:[#allocation10 + $0x68] sm:$0xff]  ;;  %6870 = vmatprep.subr.mxu1 %v2474_v43 }
 0x4ad   :  { %6832 = vmatprep.mubr.msk.f32.mxu1 %vm1805_vm1, %v1793_v3  ;;  %6871 = vmatpush3.msra.mxu1 %v2474_v43  ;;  %v2470_v3 = vld [vmem:[#allocation10 + $0x8] sm:$0xff] }
 0x4ae   :  { %6872 = vmatprep.subr.mxu1 %v2473_v45 }
 0x4af   :  { %6873 = vmatpush3.msra.mxu1 %v2473_v45 }
 0x4b0   :  { %6833 = vmatmul.mubr.msk.f32.gmra.mxu1 %vm1805_vm1, %v1794_v4  ;;  %6874 = vmatprep.subr.mxu1 %v2472_v49  ;;  %v2607_v4 = vld [vmem:[#allocation10 + $0x40] sm:$0xff] }
 0x4b1   :  { %6835 = vmatprep.mubr.msk.f32.mxu1 %vm1805_vm1, %v1795_v58  ;;  %6875 = vmatpush3.msra.mxu1 %v2472_v49 }
 0x4b2   :  { %6876 = vmatprep.subr.mxu1 %v2471_v54 }
 0x4b3   :  { %6877 = vmatpush3.msra.mxu1 %v2471_v54 }
 0x4b4   :  { %6836 = vmatmul.mubr.msk.f32.gmra.mxu1 %vm1805_vm1, %v1796_v9  ;;  %6878 = vmatprep.subr.mxu1 %v2470_v3 }
 0x4b5   :  { %6879 = vmatpush3.msra.mxu1 %v2470_v3 }
 0x4b6   :  { %6880 = vmatprep.subr.mxu1 %v2469_v53 }
 0x4b7   :  { %6881 = vmatpush3.msra.mxu1 %v2469_v53 }
 0x556   :  { %v6744_v11 = vpop.f32.mrf.mxu0  ;;  %v8309_v12 = vpop.f32.mrf.mxu1 }
 0x558   :  { %v1896_v13 = vpop.f32.mrf.mxu0  ;;  %v8311_v14 = vpop.f32.mrf.mxu1 }
 0x55a   :  { %v6747_v62 = vpop.f32.mrf.mxu0 }
 0x55b   :  { %v8313_v59 = vpop.f32.mrf.mxu1 }
 0x55c   :  { %v1906_v15 = vpop.f32.mrf.mxu0 }
 0x55d   :  { %v8315_v36 = vpop.f32.mrf.mxu1 }
 0x55f   :  { %v6750_v16 = vpop.f32.mrf.mxu0  ;;  %v8317_v38 = vpop.f32.mrf.mxu1 }
 0x561   :  { %v1916_v0 = vpop.f32.mrf.mxu0  ;;  %v8319_v61 = vpop.f32.mrf.mxu1 }
 0x563   :  { %v6753_v17 = vpop.f32.mrf.mxu0 }
 0x564   :  { %v8321_v2 = vpop.f32.mrf.mxu1  ;;  %6782 = vmatprep.subr.mxu0 %v6753_v17 }
 0x565   :  { %v1926_v63 = vpop.f32.mrf.mxu0  ;;  %6783 = vmatpush3.msra.mxu0 %v6753_v17 }
 0x566   :  { %v8323_v18 = vpop.f32.mrf.mxu1  ;;  %6784 = vmatprep.subr.mxu0 %v1926_v63 }
 0x567   :  { %6785 = vmatpush3.msra.mxu0 %v1926_v63 }
 0x568   :  { %v6828_v19 = vpop.f32.mrf.mxu1  ;;  %6786 = vmatprep.subr.mxu0 %v6750_v16 }
 0x569   :  { %6787 = vmatpush3.msra.mxu0 %v6750_v16 }
 0x56a   :  { %v2261_v40 = vpop.f32.mrf.mxu1  ;;  %6788 = vmatprep.subr.mxu0 %v1916_v0 }
 0x56b   :  { %6789 = vmatpush3.msra.mxu0 %v1916_v0 }
 0x56c   :  { %v6831_v20 = vpop.f32.mrf.mxu1  ;;  %6790 = vmatprep.subr.mxu0 %v6747_v62 }
 0x56d   :  { %6791 = vmatpush3.msra.mxu0 %v6747_v62 }
 0x56e   :  { %v2271_v21 = vpop.f32.mrf.mxu1  ;;  %6792 = vmatprep.subr.mxu0 %v1906_v15 }
 0x56f   :  { %6793 = vmatpush3.msra.mxu0 %v1906_v15  ;;  %v5601_v15 = vld [vmem:[%s8927_s0] ss:$0 sm:$0xff] }
 0x570   :  { %v6834_v6 = vpop.f32.mrf.mxu1  ;;  %6794 = vmatprep.subr.mxu0 %v6744_v11 }
 0x571   :  { %6795 = vmatpush3.msra.mxu0 %v6744_v11 }
 0x572   :  { %v2281_v22 = vpop.f32.mrf.mxu1  ;;  %6796 = vmatprep.subr.mxu0 %v1896_v13 }
 0x573   :  { %6797 = vmatpush3.msra.mxu0 %v1896_v13 }
 0x574   :  { %v6837_v44 = vpop.f32.mrf.mxu1  ;;  %6799 = vmatmul.mubr.msk.f32.vlgmr.msra.gmra.mxu0 %vm1805_vm1, %v1936_v42 }
 0x575   :  { %6838 = vmatprep.subr.mxu0 %v6837_v44  ;;  %6801 = vmatprep.mubr.msk.f32.mxu0 %vm1805_vm1, %v1937_v23 }
 0x576   :  { %v2291_v24 = vpop.f32.mrf.mxu1  ;;  %6839 = vmatpush3.msra.mxu0 %v6837_v44 }
 0x577   :  { %6840 = vmatprep.subr.mxu0 %v2291_v24 }
 0x578   :  { %6841 = vmatpush3.msra.mxu0 %v2291_v24 }
 0x579   :  { %6802 = vmatmul.mubr.msk.f32.gmra.mxu0 %vm1805_vm1, %v1938_v25  ;;  %6842 = vmatprep.subr.mxu0 %v6834_v6 }
 0x57a   :  { %6843 = vmatpush3.msra.mxu0 %v6834_v6  ;;  %6804 = vmatprep.mubr.msk.f32.mxu0 %vm1805_vm1, %v1939_v26 }
 0x57b   :  { %6844 = vmatprep.subr.mxu0 %v2281_v22 }
 0x57c   :  { %6845 = vmatpush3.msra.mxu0 %v2281_v22 }
 0x57d   :  { %6805 = vmatmul.mubr.msk.f32.gmra.mxu0 %vm1805_vm1, %v1940_v27  ;;  %6846 = vmatprep.subr.mxu0 %v6831_v20 }
 0x57e   :  { %6847 = vmatpush3.msra.mxu0 %v6831_v20  ;;  %6807 = vmatprep.mubr.msk.f32.mxu0 %vm1805_vm1, %v1941_v46 }
 0x57f   :  { %6848 = vmatprep.subr.mxu0 %v2271_v21 }
 0x580   :  { %6849 = vmatpush3.msra.mxu0 %v2271_v21 }
 0x581   :  { %6808 = vmatmul.mubr.msk.f32.gmra.mxu0 %vm1805_vm1, %v1942_v28  ;;  %6850 = vmatprep.subr.mxu0 %v6828_v19 }
 0x582   :  { %6851 = vmatpush3.msra.mxu0 %v6828_v19  ;;  %6854 = vmatprep.mubr.msk.f32.mxu0 %vm1805_vm1, %v2301_v29 }
 0x583   :  { %6852 = vmatprep.subr.mxu0 %v2261_v40 }
 0x584   :  { %6853 = vmatpush3.msra.mxu0 %v2261_v40 }
 0x585   :  { %6855 = vmatmul.mubr.msk.f32.vlgmr.msra.gmra.mxu0 %vm1805_vm1, %v2302_v30  ;;  %6894 = vmatprep.subr.mxu0 %v2614_v37 }
 0x586   :  { %6857 = vmatprep.mubr.msk.f32.mxu0 %vm1805_vm1, %v2303_v31  ;;  %6895 = vmatpush3.msra.mxu0 %v2614_v37  ;;  %v2728_v37 = vld [vmem:[#allocation12] sm:$0xff] }
 0x587   :  { %6896 = vmatprep.subr.mxu0 %v2613_v41 }
 0x588   :  { %6897 = vmatpush3.msra.mxu0 %v2613_v41 }
 0x589   :  { %6858 = vmatmul.mubr.msk.f32.gmra.mxu0 %vm1805_vm1, %v2304_v48  ;;  %6898 = vmatprep.subr.mxu0 %v2612_v52 }
 0x58a   :  { %6860 = vmatprep.mubr.msk.f32.mxu0 %vm1805_vm1, %v2305_v32  ;;  %6899 = vmatpush3.msra.mxu0 %v2612_v52 }
 0x58b   :  { %6900 = vmatprep.subr.mxu0 %v2611_v47 }
 0x58c   :  { %6901 = vmatpush3.msra.mxu0 %v2611_v47 }
 0x58d   :  { %6861 = vmatmul.mubr.msk.f32.gmra.mxu0 %vm1805_vm1, %v2306_v33  ;;  %6902 = vmatprep.subr.mxu0 %v2610_v1 }
 0x58e   :  { %6863 = vmatprep.mubr.msk.f32.mxu0 %vm1805_vm1, %v2307_v34  ;;  %6903 = vmatpush3.msra.mxu0 %v2610_v1 }
 0x58f   :  { %6904 = vmatprep.subr.mxu0 %v2609_v51 }
 0x590   :  { %6905 = vmatpush3.msra.mxu0 %v2609_v51 }
 0x591   :  { %6864 = vmatmul.mubr.msk.f32.gmra.mxu0 %vm1805_vm1, %v2308_v35  ;;  %6906 = vmatprep.subr.mxu0 %v2608_v56 }
 0x592   :  { %6907 = vmatpush3.msra.mxu0 %v2608_v56 }
 0x593   :  { %6908 = vmatprep.subr.mxu0 %v2607_v4 }
 0x594   :  { %6909 = vmatpush3.msra.mxu0 %v2607_v4 }
 0x634   :  { %v6800_v5 = vpop.f32.mrf.mxu0 }
 0x635   :  { %v2153_v57 = vadd.f32 %v6800_v5, %v8309_v12 }
 0x636   :  { %v2147_v7 = vpop.f32.mrf.mxu0 }
 0x637   :  { %v2148_v13 = vadd.f32 %v2147_v7, %v8311_v14 }
 0x639   :  { %v6803_v8 = vpop.f32.mrf.mxu0 }
 0x63a   :  { %v2163_v0 = vadd.f32 %v6803_v8, %v8313_v59 }
 0x63b   :  { %v2157_v58 = vpop.f32.mrf.mxu0 }
 0x63c   :  { %v2158_v40 = vadd.f32 %v2157_v58, %v8315_v36 }
 0x63d   :  { %v6806_v55 = vpop.f32.mrf.mxu0 }
 0x63e   :  { %v2173_v42 = vadd.f32 %v6806_v55, %v8317_v38 }
 0x63f   :  { %v2167_v9 = vpop.f32.mrf.mxu0 }
 0x640   :  { %v2168_v24 = vadd.f32 %v2167_v9, %v8319_v61 }
 0x641   :  { %v6809_v10 = vpop.f32.mrf.mxu0 }
 0x642   :  { %v2183_v36 = vadd.f32 %v6809_v10, %v8321_v2 }
 0x643   :  { %v2177_v60 = vpop.f32.mrf.mxu0 }
 0x644   :  { %v2178_v61 = vadd.f32 %v2177_v60, %v8323_v18 }
 0x645   :  { %v6856_v11 = vpop.f32.mrf.mxu0 }
 0x646   :  { %v2439_v62 = vadd.f32 %v6856_v11, %v2153_v57 }
 0x647   :  { %v2399_v16 = vpop.f32.mrf.mxu0 }
 0x648   :  { %v2438_v17 = vadd.f32 %v2399_v16, %v2148_v13  ;;  %v2454_v63 = vadd.f32 %v5601_v15, %v2439_v62  ;;  %v2729_v62 = vld [vmem:[#allocation12 + $0x8] sm:$0xff]  ;;  %v2730_v16 = vld [vmem:[#allocation12 + $0x10] sm:$0xff] }
 0x649   :  { %v6859_v19 = vpop.f32.mrf.mxu0 }
 0x64a   :  { %v2453_v20 = vadd.f32 %v5601_v15, %v2438_v17  ;;  %v2441_v21 = vadd.f32 %v6859_v19, %v2163_v0  ;;  %v2462_v23 = vmax.f32 %v2454_v63, 0.0  ;;  %v2832_v0 = vld [vmem:[#allocation12 + $0x30] sm:$0xff]  ;;  %v2731_v17 = vld [vmem:[#allocation12 + $0x18] sm:$0xff]  ;;  %v7797_v19 = vmov 0.0  }
 0x64b   :  { %v2409_v6 = vpop.f32.mrf.mxu0  ;;  %v2833_v63 = vld [vmem:[#allocation12 + $0x38] sm:$0xff] }
 0x64c   :  { %v2461_v22 = vmax.f32 %v2453_v20, 0.0  ;;  %v2440_v12 = vadd.f32 %v2409_v6, %v2158_v40  ;;  %v2456_v44 = vadd.f32 %v5601_v15, %v2441_v21 }
 0x64d   :  { %v6862_v14 = vpop.f32.mrf.mxu0 }
 0x64e   :  { %v2455_v25 = vadd.f32 %v5601_v15, %v2440_v12  ;;  %v2443_v26 = vadd.f32 %v6862_v14, %v2173_v42  ;;  %6882 = vmatprep.mubr.msk.f32.mxu1 %vm1805_vm1, %v2461_v22  ;;  %6910 = vmatprep.mubr.msk.f32.mxu0 %vm1805_vm1, %v2461_v22  ;;  %v2464_v46 = vmax.f32 %v2456_v44, 0.0 }
 0x64f   :  { %v2419_v59 = vpop.f32.mrf.mxu0  ;;  %6883 = vmatmul.mubr.msk.f32.vlgmr.msra.gmra.mxu1 %vm1805_vm1, %v2462_v23  ;;  %6911 = vmatmul.mubr.msk.f32.vlgmr.msra.gmra.mxu0 %vm1805_vm1, %v2462_v23 }
 0x650   :  { %v2463_v38 = vmax.f32 %v2455_v25, 0.0  ;;  %v2442_v27 = vadd.f32 %v2419_v59, %v2168_v24  ;;  %v2458_v28 = vadd.f32 %v5601_v15, %v2443_v26  ;;  %v2935_v26 = vld [vmem:[%s8928_s18] sm:$0xff]  ;;  %v5627_v59 = vld [vmem:[%s8928_s18 + $0x8] sm:$0xff] }
 0x651   :  { %v6865_v29 = vpop.f32.mrf.mxu0 }
 0x652   :  { %v2457_v30 = vadd.f32 %v5601_v15, %v2442_v27  ;;  %v2445_v31 = vadd.f32 %v6865_v29, %v2183_v36  ;;  %6885 = vmatprep.mubr.msk.f32.mxu1 %vm1805_vm1, %v2463_v38  ;;  %6913 = vmatprep.mubr.msk.f32.mxu0 %vm1805_vm1, %v2463_v38  ;;  %v2466_v33 = vmax.f32 %v2458_v28, 0.0  ;;  %v3013_v36 = vld [vmem:[#allocation13 + $0x18] sm:$0xff]  ;;  %v3012_v38 = vld [vmem:[#allocation13 + $0x10] sm:$0xff]  ;;  %v3011_v27 = vld [vmem:[#allocation13 + $0x8] sm:$0xff] }
 0x653   :  { %v2429_v48 = vpop.f32.mrf.mxu0  ;;  %6886 = vmatmul.mubr.msk.f32.gmra.mxu1 %vm1805_vm1, %v2464_v46  ;;  %6914 = vmatmul.mubr.msk.f32.gmra.mxu0 %vm1805_vm1, %v2464_v46  ;;  %v3010_v46 = vld [vmem:[#allocation13] sm:$0xff]  ;;  %v3093_v28 = vld [vmem:[#allocation13 + $0x38] sm:$0xff]  ;;  %v3092_v29 = vld [vmem:[#allocation13 + $0x30] sm:$0xff] }
 0x654   :  { %v2465_v32 = vmax.f32 %v2457_v30, 0.0  ;;  %v2444_v2 = vadd.f32 %v2429_v48, %v2178_v61  ;;  %v2460_v34 = vadd.f32 %v5601_v15, %v2445_v31  ;;  %v3091_v61 = vld [vmem:[#allocation13 + $0x28] sm:$0xff]  ;;  %v3090_v30 = vld [vmem:[#allocation13 + $0x20] sm:$0xff] }
 0x656   :  { %v2459_v35 = vadd.f32 %v5601_v15, %v2444_v2  ;;  %6888 = vmatprep.mubr.msk.f32.mxu1 %vm1805_vm1, %v2465_v32  ;;  %6916 = vmatprep.mubr.msk.f32.mxu0 %vm1805_vm1, %v2465_v32  ;;  %v2468_v50 = vmax.f32 %v2460_v34, 0.0  ;;  %v2831_v15 = vld [vmem:[#allocation12 + $0x28] sm:$0xff] }
 0x657   :  { %6889 = vmatmul.mubr.msk.f32.gmra.mxu1 %vm1805_vm1, %v2466_v33  ;;  %6917 = vmatmul.mubr.msk.f32.gmra.mxu0 %vm1805_vm1, %v2466_v33  ;;  %v5631_v33 = vld [vmem:[%s8928_s18 + $0x10] sm:$0xff]  ;;  %v5634_v34 = vld [vmem:[%s8928_s18 + $0x18] sm:$0xff] }
 0x658   :  { %v2467_v18 = vmax.f32 %v2459_v35, 0.0  ;;  %v3319_v35 = vld [vmem:[#allocation13 + $0x58] sm:$0xff] }
 0x65a   :  { %6891 = vmatprep.mubr.msk.f32.mxu1 %vm1805_vm1, %v2467_v18  ;;  %6919 = vmatprep.mubr.msk.f32.mxu0 %vm1805_vm1, %v2467_v18  ;;  %v3318_v18 = vld [vmem:[#allocation13 + $0x50] sm:$0xff] }
 0x65b   :  { %6892 = vmatmul.mubr.msk.f32.gmra.mxu1 %vm1805_vm1, %v2468_v50  ;;  %6920 = vmatmul.mubr.msk.f32.gmra.mxu0 %vm1805_vm1, %v2468_v50  ;;  %v3317_v50 = vld [vmem:[#allocation13 + $0x48] sm:$0xff] }
 0x65c   :  { %6938 = vmatprep.mubr.msk.f32.mxu1 %vm1805_vm1, %v2728_v37  ;;  %6960 = vmatprep.mubr.msk.f32.mxu0 %vm1805_vm1, %v2830_v39  ;;  %v3316_v37 = vld [vmem:[#allocation13 + $0x40] sm:$0xff] }
 0x70f   :  { %v6884_v41 = vpop.f32.mrf.mxu1  ;;  %v6912_v43 = vpop.f32.mrf.mxu0 }
 0x710   :  { %v2721_v11 = vmax.f32 %v6884_v41, %v6912_v43 }
 0x711   :  { %v2567_v52 = vpop.f32.mrf.mxu1  ;;  %v2681_v45 = vpop.f32.mrf.mxu0 }
 0x712   :  { %v2720_v13 = vmax.f32 %v2567_v52, %v2681_v45 }
 0x713   :  { %v6887_v47 = vpop.f32.mrf.mxu1  ;;  %v6915_v49 = vpop.f32.mrf.mxu0 }
 0x714   :  { %v2723_v60 = vmax.f32 %v6887_v47, %v6915_v49  ;;  %v3473_v47 = vld [vmem:[#allocation13 + $0x78] sm:$0xff] }
 0x715   :  { %v2577_v1 = vpop.f32.mrf.mxu1  ;;  %v2691_v54 = vpop.f32.mrf.mxu0 }
 0x716   :  { %v2722_v57 = vmax.f32 %v2577_v1, %v2691_v54  ;;  %v3472_v1 = vld [vmem:[#allocation13 + $0x70] sm:$0xff] }
 0x717   :  { %v6890_v51 = vpop.f32.mrf.mxu1  ;;  %v6918_v3 = vpop.f32.mrf.mxu0 }
 0x718   :  { %v2725_v9 = vmax.f32 %v6890_v51, %v6918_v3  ;;  %v3471_v51 = vld [vmem:[#allocation13 + $0x68] sm:$0xff]  ;;  %v3470_v3 = vld [vmem:[#allocation13 + $0x60] sm:$0xff] }
 0x719   :  { %v2587_v56 = vpop.f32.mrf.mxu1  ;;  %v2701_v53 = vpop.f32.mrf.mxu0 }
 0x71a   :  { %v2724_v10 = vmax.f32 %v2587_v56, %v2701_v53  ;;  %v3568_v56 = vld [vmem:[%s8929_s1 + $0x78] sm:$0xff] }
 0x71b   :  { %v6893_v4 = vpop.f32.mrf.mxu1  ;;  %v6921_v5 = vpop.f32.mrf.mxu0 }
 0x71c   :  { %v2727_v7 = vmax.f32 %v6893_v4, %v6921_v5  ;;  %v3567_v4 = vld [vmem:[%s8929_s1 + $0x70] sm:$0xff] }
 0x71d   :  { %v2597_v8 = vpop.f32.mrf.mxu1  ;;  %v2711_v58 = vpop.f32.mrf.mxu0 }
 0x71e   :  { %v2726_v55 = vmax.f32 %v2597_v8, %v2711_v58  ;;  %6922 = vmatprep.subr.mxu1 %v2727_v7  ;;  %6944 = vmatprep.subr.mxu0 %v2727_v7  ;;  %v3565_v8 = vld [vmem:[%s8929_s1 + $0x60] sm:$0xff]  ;;  %v3564_v58 = vld [vmem:[%s8929_s1 + $0x58] sm:$0xff] }
 0x71f   :  { %6923 = vmatpush3.msra.mxu1 %v2727_v7  ;;  %6945 = vmatpush3.msra.mxu0 %v2727_v7  ;;  %v3566_v7 = vld [vmem:[%s8929_s1 + $0x68] sm:$0xff] }
 0x720   :  { %6924 = vmatprep.subr.mxu1 %v2726_v55  ;;  %6946 = vmatprep.subr.mxu0 %v2726_v55 }
 0x721   :  { %6925 = vmatpush3.msra.mxu1 %v2726_v55  ;;  %6947 = vmatpush3.msra.mxu0 %v2726_v55  ;;  %v3563_v55 = vld [vmem:[%s8929_s1 + $0x50] sm:$0xff] }
 0x722   :  { %6926 = vmatprep.subr.mxu1 %v2725_v9  ;;  %6948 = vmatprep.subr.mxu0 %v2725_v9 }
 0x723   :  { %6927 = vmatpush3.msra.mxu1 %v2725_v9  ;;  %6949 = vmatpush3.msra.mxu0 %v2725_v9  ;;  %v3562_v9 = vld [vmem:[%s8929_s1 + $0x48] sm:$0xff] }
 0x724   :  { %6928 = vmatprep.subr.mxu1 %v2724_v10  ;;  %6950 = vmatprep.subr.mxu0 %v2724_v10 }
 0x725   :  { %6929 = vmatpush3.msra.mxu1 %v2724_v10  ;;  %6951 = vmatpush3.msra.mxu0 %v2724_v10  ;;  %v3561_v10 = vld [vmem:[%s8929_s1 + $0x40] sm:$0xff] }
 0x726   :  { %6930 = vmatprep.subr.mxu1 %v2723_v60  ;;  %6952 = vmatprep.subr.mxu0 %v2723_v60 }
 0x727   :  { %6931 = vmatpush3.msra.mxu1 %v2723_v60  ;;  %6953 = vmatpush3.msra.mxu0 %v2723_v60  ;;  %v3560_v60 = vld [vmem:[%s8929_s1 + $0x38] sm:$0xff] }
 0x728   :  { %6932 = vmatprep.subr.mxu1 %v2722_v57  ;;  %6954 = vmatprep.subr.mxu0 %v2722_v57 }
 0x729   :  { %6933 = vmatpush3.msra.mxu1 %v2722_v57  ;;  %6955 = vmatpush3.msra.mxu0 %v2722_v57  ;;  %v3559_v57 = vld [vmem:[%s8929_s1 + $0x30] sm:$0xff] }
 0x72a   :  { %6934 = vmatprep.subr.mxu1 %v2721_v11  ;;  %6956 = vmatprep.subr.mxu0 %v2721_v11 }
 0x72b   :  { %6935 = vmatpush3.msra.mxu1 %v2721_v11  ;;  %6957 = vmatpush3.msra.mxu0 %v2721_v11  ;;  %v3558_v11 = vld [vmem:[%s8929_s1 + $0x28] sm:$0xff] }
 0x72c   :  { %6936 = vmatprep.subr.mxu1 %v2720_v13  ;;  %6958 = vmatprep.subr.mxu0 %v2720_v13 }
 0x72d   :  { %6937 = vmatpush3.msra.mxu1 %v2720_v13  ;;  %6959 = vmatpush3.msra.mxu0 %v2720_v13  ;;  %v3557_v13 = vld [vmem:[%s8929_s1 + $0x20] sm:$0xff] }
 0x72e   :  { %6939 = vmatmul.mubr.msk.f32.vlgmr.msra.gmra.mxu1 %vm1805_vm1, %v2729_v62  ;;  %6961 = vmatmul.mubr.msk.f32.vlgmr.msra.gmra.mxu0 %vm1805_vm1, %v2831_v15  ;;  %v8488_v62 = vld [vmem:[#allocation15 + $0x18] sm:$0xff]  ;;  %v3556_v15 = vld [vmem:[%s8929_s1 + $0x18] sm:$0xff] }
 0x72f   :  { %6941 = vmatprep.mubr.msk.f32.mxu1 %vm1805_vm1, %v2730_v16  ;;  %6963 = vmatprep.mubr.msk.f32.mxu0 %vm1805_vm1, %v2832_v0  ;;  %v8492_v16 = vld [vmem:[#allocation15 + $0x10] sm:$0xff]  ;;  %v3555_v0 = vld [vmem:[%s8929_s1 + $0x10] sm:$0xff] }
 0x730   :  { %6966 = vmatprep.subr.mxu1 %v7797_v19  ;;  %6988 = vmatprep.subr.mxu0 %v7797_v19 }
 0x731   :  { %6989 = vmatpush3.msra.mxu0 %v3093_v28  ;;  %v5651_v28 = vld [vmem:[%s8929_s1 + $0xe8] sm:$0xff] }
 0x732   :  { %6942 = vmatmul.mubr.msk.f32.gmra.mxu1 %vm1805_vm1, %v2731_v17  ;;  %6964 = vmatmul.mubr.msk.f32.gmra.mxu0 %vm1805_vm1, %v2833_v63  ;;  %v8497_v17 = vld [vmem:[#allocation15 + $0x8] sm:$0xff]  ;;  %v3554_v63 = vld [vmem:[%s8929_s1 + $0x8] sm:$0xff] }
 0x733   :  { %6974 = vmatprep.mubr.msk.f32.mxu1 %vm7798_vm2, %v7797_v19  ;;  %6996 = vmatprep.mubr.msk.f32.mxu0 %vm7798_vm2, %v7797_v19 }
 0x734   :  { %6990 = vmatprep.subr.mxu0 %v7797_v19 }
 0x735   :  { %6991 = vmatpush3.msra.mxu0 %v3092_v29  ;;  %v5650_v29 = vld [vmem:[%s8929_s1 + $0xe0] sm:$0xff] }
 0x736   :  { %6992 = vmatprep.subr.mxu0 %v7797_v19 }
 0x737   :  { %6993 = vmatpush3.msra.mxu0 %v3091_v61  ;;  %v5649_v61 = vld [vmem:[%s8929_s1 + $0xd8] sm:$0xff] }
 0x738   :  { %6994 = vmatprep.subr.mxu0 %v7797_v19 }
 0x739   :  { %6995 = vmatpush3.msra.mxu0 %v3090_v30  ;;  %v5648_v30 = vld [vmem:[%s8929_s1 + $0xd0] sm:$0xff] }
 0x73a   :  { %7010 = vmatprep.subr.mxu0 %v7797_v19 }
 0x7ee   :  { %v6940_v40 = vpop.f32.mrf.mxu1  ;;  %v6962_v20 = vpop.f32.mrf.mxu0 }
 0x7ef   :  { %v8385_v24 = vmax.f32 %v6940_v40, %v6962_v20  ;;  %v8506_v40 = vld [vmem:[#allocation15] sm:$0xff]  ;;  %v3553_v20 = vld [vmem:[%s8929_s1] sm:$0xff] }
 0x7f0   :  { %v2810_v21 = vpop.f32.mrf.mxu1  ;;  %v2912_v6 = vpop.f32.mrf.mxu0 }
 0x7f1   :  { %v8389_v25 = vmax.f32 %v2810_v21, %v2912_v6 }
 0x7f2   :  { %v6943_v42 = vpop.f32.mrf.mxu1  ;;  %v6965_v22 = vpop.f32.mrf.mxu0 }
 0x7f3   :  { %v8379_v12 = vmax.f32 %v6943_v42, %v6965_v22 }
 0x7f4   :  { %v2820_v23 = vpop.f32.mrf.mxu1  ;;  %v2922_v44 = vpop.f32.mrf.mxu0 }
 0x7f5   :  { %v8381_v14 = vmax.f32 %v2820_v23, %v2922_v44  ;;  %6967 = vmatpush3.msra.mxu1 %v8379_v12 }
 0x7f6   :  { %6968 = vmatprep.subr.mxu1 %v7797_v19 }
 0x7f7   :  { %6969 = vmatpush3.msra.mxu1 %v8381_v14 }
 0x7f8   :  { %6970 = vmatprep.subr.mxu1 %v7797_v19 }
 0x7f9   :  { %6971 = vmatpush3.msra.mxu1 %v8385_v24 }
 0x7fa   :  { %6972 = vmatprep.subr.mxu1 %v7797_v19 }
 0x7fb   :  { %6973 = vmatpush3.msra.mxu1 %v8389_v25 }
 0x7fc   :  { %6975 = vmatmul.mubr.msk.f32.vlgmr.msra.gmra.mxu1 %vm2936_vm3, %v2935_v26  ;;  %6977 = vmatprep.subr.mxu1 %v7797_v19 }
 0x7fd   :  { %6978 = vmatpush3.msra.mxu1 %v8379_v12  ;;  %6985 = vmatprep.mubr.msk.f32.mxu1 %vm7798_vm2, %v7797_v19 }
 0x7fe   :  { %6979 = vmatprep.subr.mxu1 %v7797_v19 }
 0x7ff   :  { %6980 = vmatpush3.msra.mxu1 %v8381_v14 }
 0x800   :  { %6981 = vmatprep.subr.mxu1 %v7797_v19 }
 0x801   :  { %6982 = vmatpush3.msra.mxu1 %v8385_v24 }
 0x802   :  { %6983 = vmatprep.subr.mxu1 %v7797_v19 }
 0x803   :  { %6984 = vmatpush3.msra.mxu1 %v8389_v25 }
 0x804   :  { %6986 = vmatmul.mubr.msk.f32.vlgmr.msra.gmra.mxu1 %vm2936_vm3, %v5627_v59  ;;  %6999 = vmatprep.subr.mxu1 %v7797_v19 }
 0x805   :  { %7000 = vmatpush3.msra.mxu1 %v3013_v36  ;;  %7007 = vmatprep.mubr.msk.f32.mxu1 %vm7798_vm2, %v7797_v19 }
 0x806   :  { %7001 = vmatprep.subr.mxu1 %v7797_v19 }
 0x807   :  { %7002 = vmatpush3.msra.mxu1 %v3012_v38  ;;  %v5653_v38 = vld [vmem:[%s8929_s1 + $0xf8] sm:$0xff] }
 0x808   :  { %7003 = vmatprep.subr.mxu1 %v7797_v19 }
 0x809   :  { %7004 = vmatpush3.msra.mxu1 %v3011_v27 }
 0x80a   :  { %7005 = vmatprep.subr.mxu1 %v7797_v19 }
 0x80b   :  { %7006 = vmatpush3.msra.mxu1 %v3010_v46  ;;  %v5652_v46 = vld [vmem:[%s8929_s1 + $0xf0] sm:$0xff] }
 0x80c   :  { %7021 = vmatprep.subr.mxu1 %v7797_v19 }
 0x8bc   :  { %v3006_v31 = vpop.f32.mrf.mxu1 }
 0x8bd   :  { %7008 = vmatmul.mubr.msk.f32.vlgmr.msra.gmra.mxu1 %vm2936_vm3, %v3006_v31  ;;  %v5647_v31 = vld [vmem:[%s8929_s1 + $0xc8] sm:$0xff] }
 0x8be   :  { %v6976_v48 = vpop.f32.mrf.mxu1  ;;  %7029 = vmatprep.mubr.msk.f32.mxu1 %vm7798_vm2, %v7797_v19  ;;  %7022 = vmatpush3.msra.mxu1 %v3319_v35  ;;  %v5641_v35 = vld [vmem:[%s8929_s1 + $0x98] sm:$0xff] }
 0x8bf   :  { %7023 = vmatprep.subr.mxu1 %v7797_v19  ;;  %v5646_v48 = vld [vmem:[%s8929_s1 + $0xc0] sm:$0xff] }
 0x8c0   :  { %7024 = vmatpush3.msra.mxu1 %v3318_v18  ;;  %v5640_v18 = vld [vmem:[%s8929_s1 + $0x90] sm:$0xff] }
 0x8c1   :  { %7025 = vmatprep.subr.mxu1 %v7797_v19 }
 0x8c2   :  { %7026 = vmatpush3.msra.mxu1 %v3317_v50  ;;  %v5639_v50 = vld [vmem:[%s8929_s1 + $0x88] sm:$0xff] }
 0x8c3   :  { %7027 = vmatprep.subr.mxu1 %v7797_v19 }
 0x8c4   :  { %v3085_v32 = vpop.f32.mrf.mxu1  ;;  %7028 = vmatpush3.msra.mxu1 %v3316_v37  ;;  %v5638_v37 = vld [vmem:[%s8929_s1 + $0x80] sm:$0xff] }
 0x8c5   :  { %6997 = vmatmul.mubr.msk.f32.vlgmr.msra.gmra.mxu0 %vm2936_vm3, %v3085_v32  ;;  %7043 = vmatprep.subr.mxu1 %v7797_v19  ;;  %v5645_v32 = vld [vmem:[%s8929_s1 + $0xb8] sm:$0xff] }
 0x8c6   :  { %7011 = vmatpush3.msra.mxu0 %v8379_v12  ;;  %v6987_v2 = vpop.f32.mrf.mxu1  ;;  %7018 = vmatprep.mubr.msk.f32.mxu0 %vm7798_vm2, %v7797_v19 }
 0x8c7   :  { %7012 = vmatprep.subr.mxu0 %v7797_v19  ;;  %v5644_v2 = vld [vmem:[%s8929_s1 + $0xb0] sm:$0xff] }
 0x8c8   :  { %7013 = vmatpush3.msra.mxu0 %v8381_v14 }
 0x8c9   :  { %7014 = vmatprep.subr.mxu0 %v7797_v19 }
 0x8ca   :  { %7015 = vmatpush3.msra.mxu0 %v8385_v24 }
 0x8cb   :  { %7016 = vmatprep.subr.mxu0 %v7797_v19 }
 0x8cc   :  { %7017 = vmatpush3.msra.mxu0 %v8389_v25 }
 0x8cd   :  { %7019 = vmatmul.mubr.msk.f32.vlgmr.msra.gmra.mxu0 %vm2936_vm3, %v5631_v33  ;;  %7032 = vmatprep.subr.mxu0 %v7797_v19  ;;  %v5643_v33 = vld [vmem:[%s8929_s1 + $0xa8] sm:$0xff] }
 0x8ce   :  { %7033 = vmatpush3.msra.mxu0 %v8379_v12  ;;  %7040 = vmatprep.mubr.msk.f32.mxu0 %vm7798_vm2, %v7797_v19 }
 0x8cf   :  { %7034 = vmatprep.subr.mxu0 %v7797_v19 }
 0x8d0   :  { %7035 = vmatpush3.msra.mxu0 %v8381_v14 }
 0x8d1   :  { %7036 = vmatprep.subr.mxu0 %v7797_v19 }
 0x8d2   :  { %7037 = vmatpush3.msra.mxu0 %v8385_v24  ;;  %v8539_v24 = vld [vmem:[%s8930_s4] ss:$0 sm:$0xff] }
 0x8d3   :  { %7038 = vmatprep.subr.mxu0 %v7797_v19 }
 0x8d4   :  { %7039 = vmatpush3.msra.mxu0 %v8389_v25 }
 0x8d5   :  { %7041 = vmatmul.mubr.msk.f32.vlgmr.msra.gmra.mxu0 %vm2936_vm3, %v5634_v34  ;;  %7054 = vmatprep.subr.mxu0 %v7797_v19  ;;  %v5642_v34 = vld [vmem:[%s8929_s1 + $0xa0] sm:$0xff] }
 0x8d6   :  { %7062 = vmatprep.mubr.msk.f32.mxu0 %vm7798_vm2, %v7797_v19  ;;  %7055 = vmatpush3.msra.mxu0 %v8488_v62 }
 0x8d7   :  { %7056 = vmatprep.subr.mxu0 %v7797_v19 }
 0x8d8   :  { %7057 = vmatpush3.msra.mxu0 %v8492_v16 }
 0x8d9   :  { %7058 = vmatprep.subr.mxu0 %v7797_v19 }
 0x8da   :  { %7059 = vmatpush3.msra.mxu0 %v8497_v17 }
 0x8db   :  { %7060 = vmatprep.subr.mxu0 %v7797_v19 }
 0x8dc   :  { %7061 = vmatpush3.msra.mxu0 %v8506_v40 }
 0x8dd   :  { %7063 = vmatmul.mubr.f32.vlgmr.msra.gmra.mxu0 %v7797_v19  ;;  %7100 = vmatprep.subr.mxu0 %v7797_v19 }
 0x8de   :  { %7101 = vmatpush3.msra.mxu0 %v8488_v62  ;;  %7108 = vmatprep.mubr.msk.f32.mxu0 %vm7798_vm2, %v7797_v19 }
 0x8df   :  { %7102 = vmatprep.subr.mxu0 %v7797_v19 }
 0x8e0   :  { %7103 = vmatpush3.msra.mxu0 %v8492_v16 }
 0x8e1   :  { %7104 = vmatprep.subr.mxu0 %v7797_v19 }
 0x8e2   :  { %7105 = vmatpush3.msra.mxu0 %v8497_v17 }
 0x8e3   :  { %7106 = vmatprep.subr.mxu0 %v7797_v19 }
 0x8e4   :  { %7107 = vmatpush3.msra.mxu0 %v8506_v40 }
 0x8e5   :  { %7111 = vmatprep.subr.mxu0 %v7797_v19 }
 0x97d   :  { %v3236_v39 = vpop.f32.mrf.mxu1 }
 0x97f   :  { %v7009_v41 = vpop.f32.mrf.mxu1 }
 0x985   :  { %v3163_v43 = vpop.f32.mrf.mxu0 }
 0x986   :  { %v8453_v52 = vadd.f32 %v3236_v39, %v3163_v43 }
 0x987   :  { %v6998_v45 = vpop.f32.mrf.mxu0 }
 0x98d   :  { %v3311_v49 = vpop.f32.mrf.mxu0 }
 0x98e   :  { %7030 = vmatmul.mubr.msk.f32.vlgmr.msra.gmra.mxu1 %vm2936_vm3, %v3311_v49  ;;  %v5670_v49 = vld [vmem:[%s8929_s1 + $0x178] sm:$0xff] }
 0x98f   :  { %v7020_v54 = vpop.f32.mrf.mxu0  ;;  %7044 = vmatpush3.msra.mxu1 %v3473_v47  ;;  %7051 = vmatprep.mubr.msk.f32.mxu1 %vm7798_vm2, %v7797_v19 }
 0x990   :  { %7045 = vmatprep.subr.mxu1 %v7797_v19  ;;  %v5669_v54 = vld [vmem:[%s8929_s1 + $0x170] sm:$0xff] }
 0x991   :  { %7046 = vmatpush3.msra.mxu1 %v3472_v1 }
 0x992   :  { %7047 = vmatprep.subr.mxu1 %v7797_v19 }
 0x993   :  { %7048 = vmatpush3.msra.mxu1 %v3471_v51  ;;  %v5668_v51 = vld [vmem:[%s8929_s1 + $0x168] sm:$0xff] }
 0x994   :  { %7049 = vmatprep.subr.mxu1 %v7797_v19 }
 0x995   :  { %v3465_v53 = vpop.f32.mrf.mxu0  ;;  %7050 = vmatpush3.msra.mxu1 %v3470_v3  ;;  %v5667_v3 = vld [vmem:[%s8929_s1 + $0x160] sm:$0xff] }
 0x996   :  { %7052 = vmatmul.mubr.msk.f32.vlgmr.msra.gmra.mxu1 %vm2936_vm3, %v3465_v53  ;;  %7065 = vmatprep.subr.mxu1 %v7797_v19  ;;  %v5665_v53 = vld [vmem:[%s8929_s1 + $0x150] sm:$0xff] }
 0x997   :  { %v7042_v5 = vpop.f32.mrf.mxu0  ;;  %7066 = vmatpush3.msra.mxu1 %v3568_v56  ;;  %7097 = vmatprep.mubr.msk.f32.mxu1 %vm7798_vm2, %v7797_v19  ;;  %v5666_v56 = vld [vmem:[%s8929_s1 + $0x158] sm:$0xff] }
 0x998   :  { %7067 = vmatprep.subr.mxu1 %v7797_v19  ;;  %v5663_v5 = vld [vmem:[%s8929_s1 + $0x140] sm:$0xff] }
 0x999   :  { %7068 = vmatpush3.msra.mxu1 %v3567_v4  ;;  %v5664_v4 = vld [vmem:[%s8929_s1 + $0x148] sm:$0xff] }
 0x99a   :  { %7069 = vmatprep.subr.mxu1 %v7797_v19 }
 0x99b   :  { %7070 = vmatpush3.msra.mxu1 %v3566_v7  ;;  %v5662_v7 = vld [vmem:[%s8929_s1 + $0x138] sm:$0xff] }
 0x99c   :  { %7071 = vmatprep.subr.mxu1 %v7797_v19 }
 0x99d   :  { %7072 = vmatpush3.msra.mxu1 %v3565_v8  ;;  %v3638_v44 = vpop.f32.mrf.mxu0  ;;  %v5661_v8 = vld [vmem:[%s8929_s1 + $0x130] sm:$0xff] }
 0x99e   :  { %7073 = vmatprep.subr.mxu1 %v7797_v19 }
 0x99f   :  { %7074 = vmatpush3.msra.mxu1 %v3564_v58  ;;  %v7064_v14 = vpop.f32.mrf.mxu0  ;;  %v5660_v58 = vld [vmem:[%s8929_s1 + $0x128] sm:$0xff] }
 0x9a0   :  { %7075 = vmatprep.subr.mxu1 %v7797_v19 }
 0x9a1   :  { %7076 = vmatpush3.msra.mxu1 %v3563_v55  ;;  %v5659_v55 = vld [vmem:[%s8929_s1 + $0x120] sm:$0xff] }
 0x9a2   :  { %7077 = vmatprep.subr.mxu1 %v7797_v19 }
 0x9a3   :  { %7078 = vmatpush3.msra.mxu1 %v3562_v9  ;;  %v5658_v9 = vld [vmem:[%s8929_s1 + $0x118] sm:$0xff] }
 0x9a4   :  { %7079 = vmatprep.subr.mxu1 %v7797_v19 }
 0x9a5   :  { %7080 = vmatpush3.msra.mxu1 %v3561_v10  ;;  %v5657_v10 = vld [vmem:[%s8929_s1 + $0x110] sm:$0xff] }
 0x9a6   :  { %7081 = vmatprep.subr.mxu1 %v7797_v19 }
 0x9a7   :  { %7082 = vmatpush3.msra.mxu1 %v3560_v60  ;;  %v5656_v60 = vld [vmem:[%s8929_s1 + $0x108] sm:$0xff] }
 0x9a8   :  { %7083 = vmatprep.subr.mxu1 %v7797_v19 }
 0x9a9   :  { %7084 = vmatpush3.msra.mxu1 %v3559_v57  ;;  %v5655_v57 = vld [vmem:[%s8929_s1 + $0x100] sm:$0xff] }
 0x9aa   :  { %7085 = vmatprep.subr.mxu1 %v7797_v19 }
 0x9ab   :  { %7086 = vmatpush3.msra.mxu1 %v3558_v11  ;;  %v8629_v11 = vld [vmem:[#allocation18 + $0x18] sm:$0xff] }
 0x9ac   :  { %7087 = vmatprep.subr.mxu1 %v7797_v19 }
 0x9ad   :  { %7088 = vmatpush3.msra.mxu1 %v3557_v13  ;;  %v8633_v13 = vld [vmem:[#allocation18 + $0x10] sm:$0xff] }
 0x9ae   :  { %7089 = vmatprep.subr.mxu1 %v7797_v19 }
 0x9af   :  { %7090 = vmatpush3.msra.mxu1 %v3556_v15  ;;  %v8643_v15 = vld [vmem:[#allocation18] sm:$0xff] }
 0x9b0   :  { %7091 = vmatprep.subr.mxu1 %v7797_v19 }
 0x9b1   :  { %7092 = vmatpush3.msra.mxu1 %v3555_v0  ;;  %v4208_v0 = vld [vmem:[#allocation16 + $0x10] sm:$0xff] }
 0x9b2   :  { %7093 = vmatprep.subr.mxu1 %v7797_v19 }
 0x9b3   :  { %7094 = vmatpush3.msra.mxu1 %v3554_v63  ;;  %v4206_v63 = vld [vmem:[#allocation16] sm:$0xff] }
 0x9b4   :  { %7095 = vmatprep.subr.mxu1 %v7797_v19 }
 0x9b5   :  { %7096 = vmatpush3.msra.mxu1 %v3553_v20 }
 0x9b6   :  { %7146 = vmatprep.subr.mxu1 %v7797_v19 }
 0xa4e   :  { %v3389_v21 = vpop.f32.mrf.mxu1 }
 0xa4f   :  { %v3393_v42 = vadd.f32 %v3389_v21, %v8453_v52 }
 0xa50   :  { %v7031_v6 = vpop.f32.mrf.mxu1 }
 0xa56   :  { %v3543_v22 = vpop.f32.mrf.mxu1 }
 0xa57   :  { %v8525_v12 = vadd.f32 %v3543_v22, %v3393_v42 }
 0xa58   :  { %v7053_v23 = vpop.f32.mrf.mxu1 }
 0xa59   :  { %7098 = vmatmul.mubr.f32.vlgmr.msra.gmra.mxu1 %v8525_v12 }
 0xa5a   :  { %7147 = vmatpush3.msra.mxu1 %v8488_v62  ;;  %7154 = vmatprep.mubr.msk.f32.mxu1 %vm7798_vm2, %v7797_v19 }
 0xa5b   :  { %7148 = vmatprep.subr.mxu1 %v7797_v19 }
 0xa5c   :  { %7149 = vmatpush3.msra.mxu1 %v8492_v16 }
 0xa5d   :  { %7150 = vmatprep.subr.mxu1 %v7797_v19 }
 0xa5e   :  { %7151 = vmatpush3.msra.mxu1 %v8497_v17 }
 0xa5f   :  { %7152 = vmatprep.subr.mxu1 %v7797_v19 }
 0xa60   :  { %7153 = vmatpush3.msra.mxu1 %v8506_v40 }
 0xa61   :  { %7157 = vmatprep.subr.mxu1 %v7797_v19 }
 0xb19   :  { %v3708_v25 = vpop.f32.mrf.mxu1 }
 0xb1a   :  { %v3709_v26 = vadd.f32 %v3708_v25, %v3638_v44  ;;  %v5687_v25 = vld [vmem:[%s8929_s1 + $0x1f8] sm:$0xff] }
 0xb1b   :  { %v7099_v59 = vpop.f32.mrf.mxu1 }
 0xb1c   :  { %v3718_v36 = vadd.f32 %v8539_v24, %v3709_v26 }
 0xb1e   :  { %7417 = vtanh.f32 %v3718_v36  ;;  %v5686_v36 = vld [vmem:[%s8929_s1 + $0x1f0] sm:$0xff] }
 0xb2b   :  { %v8543_v27 = vpop.eup %7417 }
 0xb2c   :  { %7109 = vmatmul.mubr.msk.f32.vlgmr.msra.gmra.mxu0 %vm2936_vm3, %v8543_v27 }
 0xb2d   :  { %7112 = vmatpush3.msra.mxu0 %v5653_v38  ;;  %7143 = vmatprep.mubr.msk.f32.mxu0 %vm7798_vm2, %v7797_v19  ;;  %v5685_v38 = vld [vmem:[%s8929_s1 + $0x1e8] sm:$0xff] }
 0xb2e   :  { %7113 = vmatprep.subr.mxu0 %v7797_v19 }
 0xb2f   :  { %7114 = vmatpush3.msra.mxu0 %v5652_v46 }
 0xb30   :  { %7115 = vmatprep.subr.mxu0 %v7797_v19 }
 0xb31   :  { %7116 = vmatpush3.msra.mxu0 %v5651_v28  ;;  %v5683_v28 = vld [vmem:[%s8929_s1 + $0x1d8] sm:$0xff] }
 0xb32   :  { %7117 = vmatprep.subr.mxu0 %v7797_v19 }
 0xb33   :  { %7118 = vmatpush3.msra.mxu0 %v5650_v29 }
 0xb34   :  { %7119 = vmatprep.subr.mxu0 %v7797_v19 }
 0xb35   :  { %7120 = vmatpush3.msra.mxu0 %v5649_v61  ;;  %v5682_v61 = vld [vmem:[%s8929_s1 + $0x1d0] sm:$0xff] }
 0xb36   :  { %7121 = vmatprep.subr.mxu0 %v7797_v19 }
 0xb37   :  { %7122 = vmatpush3.msra.mxu0 %v5648_v30  ;;  %v5681_v30 = vld [vmem:[%s8929_s1 + $0x1c8] sm:$0xff] }
 0xb38   :  { %7123 = vmatprep.subr.mxu0 %v7797_v19 }
 0xb39   :  { %7124 = vmatpush3.msra.mxu0 %v5647_v31  ;;  %v5680_v31 = vld [vmem:[%s8929_s1 + $0x1c0] sm:$0xff] }
 0xb3a   :  { %7125 = vmatprep.subr.mxu0 %v7797_v19 }
 0xb3b   :  { %7126 = vmatpush3.msra.mxu0 %v5646_v48  ;;  %v5679_v48 = vld [vmem:[%s8929_s1 + $0x1b8] sm:$0xff] }
 0xb3c   :  { %7127 = vmatprep.subr.mxu0 %v7797_v19 }
 0xb3d   :  { %7128 = vmatpush3.msra.mxu0 %v5645_v32  ;;  %v5678_v32 = vld [vmem:[%s8929_s1 + $0x1b0] sm:$0xff] }
 0xb3e   :  { %7129 = vmatprep.subr.mxu0 %v7797_v19 }
 0xb3f   :  { %7130 = vmatpush3.msra.mxu0 %v5644_v2 }
 0xb40   :  { %7131 = vmatprep.subr.mxu0 %v7797_v19 }
 0xb41   :  { %7132 = vmatpush3.msra.mxu0 %v5643_v33  ;;  %v5677_v33 = vld [vmem:[%s8929_s1 + $0x1a8] sm:$0xff] }
 0xb42   :  { %7133 = vmatprep.subr.mxu0 %v7797_v19 }
 0xb43   :  { %7134 = vmatpush3.msra.mxu0 %v5642_v34  ;;  %v8705_v34 = vld [vmem:[%s8931_s27] ss:$0 sm:$0xff] }
 0xb44   :  { %7135 = vmatprep.subr.mxu0 %v7797_v19 }
 0xb45   :  { %7136 = vmatpush3.msra.mxu0 %v5641_v35  ;;  %v5676_v35 = vld [vmem:[%s8929_s1 + $0x1a0] sm:$0xff] }
 0xb46   :  { %7137 = vmatprep.subr.mxu0 %v7797_v19 }
 0xb47   :  { %7138 = vmatpush3.msra.mxu0 %v5640_v18 }
 0xb48   :  { %7139 = vmatprep.subr.mxu0 %v7797_v19 }
 0xb49   :  { %7140 = vmatpush3.msra.mxu0 %v5639_v50  ;;  %v5675_v50 = vld [vmem:[%s8929_s1 + $0x198] sm:$0xff] }
 0xb4a   :  { %7141 = vmatprep.subr.mxu0 %v7797_v19 }
 0xb4b   :  { %7142 = vmatpush3.msra.mxu0 %v5638_v37  ;;  %v5674_v37 = vld [vmem:[%s8929_s1 + $0x190] sm:$0xff] }
 0xb4c   :  { %7144 = vmatmul.mubr.f32.vlgmr.msra.gmra.mxu0 %v8525_v12  ;;  %7192 = vmatprep.subr.mxu0 %v7797_v19 }
 0xb4d   :  { %7193 = vmatpush3.msra.mxu0 %v8488_v62  ;;  %7200 = vmatprep.mubr.msk.f32.mxu0 %vm7798_vm2, %v7797_v19  ;;  %v8639_v62 = vld [vmem:[#allocation18 + $0x8] sm:$0xff] }
 0xb4e   :  { %7194 = vmatprep.subr.mxu0 %v7797_v19 }
 0xb4f   :  { %7195 = vmatpush3.msra.mxu0 %v8492_v16  ;;  %v4209_v16 = vld [vmem:[#allocation16 + $0x18] sm:$0xff] }
 0xb50   :  { %7196 = vmatprep.subr.mxu0 %v7797_v19 }
 0xb51   :  { %7197 = vmatpush3.msra.mxu0 %v8497_v17  ;;  %v4207_v17 = vld [vmem:[#allocation16 + $0x8] sm:$0xff] }
 0xb52   :  { %7198 = vmatprep.subr.mxu0 %v7797_v19 }
 0xb53   :  { %7199 = vmatpush3.msra.mxu0 %v8506_v40 }
 0xb54   :  { %7203 = vmatprep.subr.mxu0 %v7797_v19 }
 0xbec   :  { %v3806_v39 = vpop.f32.mrf.mxu0 }
 0xbee   :  { %v7110_v41 = vpop.f32.mrf.mxu0 }
 0xbef   :  { %v5672_v41 = vld [vmem:[%s8929_s1 + $0x180] sm:$0xff] }
 0xc0c   :  { %v3876_v43 = vpop.f32.mrf.mxu0 }
 0xc0d   :  { %v3877_v52 = vadd.f32 %v3876_v43, %v3806_v39  ;;  %v5673_v39 = vld [vmem:[%s8929_s1 + $0x188] sm:$0xff] }
 0xc0e   :  { %v7145_v45 = vpop.f32.mrf.mxu0 }
 0xc0f   :  { %v3880_v47 = vadd.f32 %v8539_v24, %v3877_v52 }
 0xc11   :  { %7419 = vtanh.f32 %v3880_v47 }
 0xc1e   :  { %v8593_v1 = vpop.eup %7419 }
 0xc1f   :  { %7155 = vmatmul.mubr.msk.f32.vlgmr.msra.gmra.mxu1 %vm2936_vm3, %v8593_v1 }
 0xc20   :  { %7158 = vmatpush3.msra.mxu1 %v5670_v49  ;;  %7189 = vmatprep.mubr.msk.f32.mxu1 %vm7798_vm2, %v7797_v19 }
 0xc21   :  { %7159 = vmatprep.subr.mxu1 %v7797_v19 }
 0xc22   :  { %7160 = vmatpush3.msra.mxu1 %v5669_v54 }
 0xc23   :  { %7161 = vmatprep.subr.mxu1 %v7797_v19 }
 0xc24   :  { %7162 = vmatpush3.msra.mxu1 %v5668_v51 }
 0xc25   :  { %7163 = vmatprep.subr.mxu1 %v7797_v19 }
 0xc26   :  { %7164 = vmatpush3.msra.mxu1 %v5667_v3 }
 0xc27   :  { %7165 = vmatprep.subr.mxu1 %v7797_v19 }
 0xc28   :  { %7166 = vmatpush3.msra.mxu1 %v5666_v56 }
 0xc29   :  { %7167 = vmatprep.subr.mxu1 %v7797_v19 }
 0xc2a   :  { %7168 = vmatpush3.msra.mxu1 %v5665_v53 }
 0xc2b   :  { %7169 = vmatprep.subr.mxu1 %v7797_v19 }
 0xc2c   :  { %7170 = vmatpush3.msra.mxu1 %v5664_v4 }
 0xc2d   :  { %7171 = vmatprep.subr.mxu1 %v7797_v19 }
 0xc2e   :  { %7172 = vmatpush3.msra.mxu1 %v5663_v5 }
 0xc2f   :  { %7173 = vmatprep.subr.mxu1 %v7797_v19 }
 0xc30   :  { %7174 = vmatpush3.msra.mxu1 %v5662_v7 }
 0xc31   :  { %7175 = vmatprep.subr.mxu1 %v7797_v19 }
 0xc32   :  { %7176 = vmatpush3.msra.mxu1 %v5661_v8 }
 0xc33   :  { %7177 = vmatprep.subr.mxu1 %v7797_v19 }
 0xc34   :  { %7178 = vmatpush3.msra.mxu1 %v5660_v58 }
 0xc35   :  { %7179 = vmatprep.subr.mxu1 %v7797_v19 }
 0xc36   :  { %7180 = vmatpush3.msra.mxu1 %v5659_v55 }
 0xc37   :  { %7181 = vmatprep.subr.mxu1 %v7797_v19 }
 0xc38   :  { %7182 = vmatpush3.msra.mxu1 %v5658_v9 }
 0xc39   :  { %7183 = vmatprep.subr.mxu1 %v7797_v19 }
 0xc3a   :  { %7184 = vmatpush3.msra.mxu1 %v5657_v10 }
 0xc3b   :  { %7185 = vmatprep.subr.mxu1 %v7797_v19 }
 0xc3c   :  { %7186 = vmatpush3.msra.mxu1 %v5656_v60 }
 0xc3d   :  { %7187 = vmatprep.subr.mxu1 %v7797_v19 }
 0xc3e   :  { %7188 = vmatpush3.msra.mxu1 %v5655_v57  ;;  %v4814_v57 = vld [vmem:[#allocation19 + $0x68] sm:$0xff] }
 0xc3f   :  { %7190 = vmatmul.mubr.f32.vlgmr.msra.gmra.mxu1 %v8525_v12  ;;  %7238 = vmatprep.subr.mxu1 %v7797_v19 }
 0xc40   :  { %7239 = vmatpush3.msra.mxu1 %v8629_v11  ;;  %7246 = vmatprep.mubr.msk.f32.mxu1 %vm7798_vm2, %v7797_v19 }
 0xc41   :  { %7240 = vmatprep.subr.mxu1 %v7797_v19 }
 0xc42   :  { %7241 = vmatpush3.msra.mxu1 %v8633_v13 }
 0xc43   :  { %7242 = vmatprep.subr.mxu1 %v7797_v19 }
 0xc44   :  { %7243 = vmatpush3.msra.mxu1 %v8639_v62 }
 0xc45   :  { %7244 = vmatprep.subr.mxu1 %v7797_v19 }
 0xc46   :  { %7245 = vmatpush3.msra.mxu1 %v8643_v15 }
 0xc47   :  { %7249 = vmatprep.subr.mxu1 %v7797_v19  ;;  %7247 = vmatmul.mubr.f32.vlgmr.msra.gmra.mxu1 %v7797_v19 }
 0xc48   :  { %7250 = vmatpush3.msra.mxu1 %v4209_v16  ;;  %7257 = vmatprep.mubr.msk.f32.mxu1 %vm7798_vm2, %v7797_v19 }
 0xc49   :  { %7251 = vmatprep.subr.mxu1 %v7797_v19 }
 0xc4a   :  { %7252 = vmatpush3.msra.mxu1 %v4208_v0 }
 0xc4b   :  { %7253 = vmatprep.subr.mxu1 %v7797_v19 }
 0xc4c   :  { %7254 = vmatpush3.msra.mxu1 %v4207_v17 }
 0xc4d   :  { %7255 = vmatprep.subr.mxu1 %v7797_v19 }
 0xc4e   :  { %7256 = vmatpush3.msra.mxu1 %v4206_v63 }
 0xc4f   :  { %7258 = vmatmul.mubr.msk.f32.vlgmr.msra.gmra.mxu1 %vm2936_vm3, %v8543_v27  ;;  %7271 = vmatprep.subr.mxu1 %v7797_v19  ;;  %v5684_v27 = vld [vmem:[%s8929_s1 + $0x1e0] sm:$0xff] }
 0xc50   :  { %7272 = vmatpush3.msra.mxu1 %v4209_v16  ;;  %7279 = vmatprep.mubr.msk.f32.mxu1 %vm7798_vm2, %v7797_v19 }
 0xc51   :  { %7273 = vmatprep.subr.mxu1 %v7797_v19 }
 0xc52   :  { %7274 = vmatpush3.msra.mxu1 %v4208_v0 }
 0xc53   :  { %7275 = vmatprep.subr.mxu1 %v7797_v19 }
 0xc54   :  { %7276 = vmatpush3.msra.mxu1 %v4207_v17 }
 0xc55   :  { %7277 = vmatprep.subr.mxu1 %v7797_v19 }
 0xc56   :  { %7278 = vmatpush3.msra.mxu1 %v4206_v63 }
 0xc57   :  { %7280 = vmatmul.mubr.msk.f32.vlgmr.msra.gmra.mxu1 %vm2936_vm3, %v8593_v1  ;;  %7293 = vmatprep.subr.mxu1 %v7797_v19 }
 0xc58   :  { %7294 = vmatpush3.msra.mxu1 %v4209_v16  ;;  %7301 = vmatprep.mubr.msk.f32.mxu1 %vm7798_vm2, %v7797_v19 }
 0xc59   :  { %7295 = vmatprep.subr.mxu1 %v7797_v19 }
 0xc5a   :  { %7296 = vmatpush3.msra.mxu1 %v4208_v0 }
 0xc5b   :  { %7297 = vmatprep.subr.mxu1 %v7797_v19 }
 0xc5c   :  { %7298 = vmatpush3.msra.mxu1 %v4207_v17 }
 0xc5d   :  { %7299 = vmatprep.subr.mxu1 %v7797_v19 }
 0xc5e   :  { %7300 = vmatpush3.msra.mxu1 %v4206_v63 }
 0xc5f   :  { %7315 = vmatprep.subr.mxu1 %v7797_v19 }
 0xcdf   :  { %v3968_v40 = vpop.f32.mrf.mxu1 }
 0xce1   :  { %v7156_v20 = vpop.f32.mrf.mxu1 }
 0xce2   :  { %v4808_v20 = vld [vmem:[#allocation19 + $0x38] sm:$0xff] }
 0xcff   :  { %v4038_v21 = vpop.f32.mrf.mxu1 }
 0xd00   :  { %v4039_v6 = vadd.f32 %v4038_v21, %v3968_v40  ;;  %v4805_v40 = vld [vmem:[#allocation19 + $0x20] sm:$0xff]  ;;  %v4802_v21 = vld [vmem:[#allocation19 + $0x8] sm:$0xff] }
 0xd01   :  { %v7191_v42 = vpop.f32.mrf.mxu1 }
 0xd02   :  { %v4042_v22 = vadd.f32 %v8539_v24, %v4039_v6  ;;  %v4807_v6 = vld [vmem:[#allocation19 + $0x30] sm:$0xff]  ;;  %v4804_v42 = vld [vmem:[#allocation19 + $0x18] sm:$0xff] }
 0xd04   :  { %7421 = vtanh.f32 %v4042_v22  ;;  %v4801_v22 = vld [vmem:[#allocation19] sm:$0xff] }
 0xd07   :  { %v4281_v23 = vpop.f32.mrf.mxu1 }
 0xd09   :  { %v7248_v44 = vpop.f32.mrf.mxu1 }
 0xd0f   :  { %v4351_v14 = vpop.f32.mrf.mxu1 }
 0xd10   :  { %v4352_v2 = vadd.f32 %v4351_v14, %v4281_v23  ;;  %v4803_v23 = vld [vmem:[#allocation19 + $0x10] sm:$0xff] }
 0xd11   :  { %v7422_v26 = vpop.eup %7421  ;;  %v7259_v59 = vpop.f32.mrf.mxu1 }
 0xd12   :  { %7201 = vmatmul.mubr.msk.f32.vlgmr.msra.gmra.mxu0 %vm2936_vm3, %v7422_v26  ;;  %7302 = vmatmul.mubr.msk.f32.vlgmr.msra.gmra.mxu1 %vm2936_vm3, %v7422_v26  ;;  %v4361_v18 = vadd.f32 %v8705_v34, %v4352_v2  ;;  %v4988_v59 = vld [vmem:[#allocation21 + $0x18] sm:$0xff]  ;;  %v5073_v2 = vld [vmem:[#allocation22 + $0x8] sm:$0xff] }
 0xd13   :  { %7204 = vmatpush3.msra.mxu0 %v5687_v25  ;;  %7235 = vmatprep.mubr.msk.f32.mxu0 %vm7798_vm2, %v7797_v19 }
 0xd14   :  { %7205 = vmatprep.subr.mxu0 %v7797_v19  ;;  %7316 = vmatpush3.msra.mxu1 %v4209_v16  ;;  %7423 = vtanh.f32 %v4361_v18  ;;  %v4809_v16 = vld [vmem:[#allocation19 + $0x40] sm:$0xff] }
 0xd15   :  { %7206 = vmatpush3.msra.mxu0 %v5686_v36  ;;  %7317 = vmatprep.subr.mxu1 %v7797_v19 }
 0xd16   :  { %7207 = vmatprep.subr.mxu0 %v7797_v19  ;;  %7318 = vmatpush3.msra.mxu1 %v4208_v0  ;;  %v4812_v0 = vld [vmem:[#allocation19 + $0x58] sm:$0xff] }
 0xd17   :  { %7208 = vmatpush3.msra.mxu0 %v5685_v38  ;;  %v8684_v46 = vpop.f32.mrf.mxu1  ;;  %7319 = vmatprep.subr.mxu1 %v7797_v19  ;;  %v5079_v38 = vld [vmem:[#allocation22 + $0x38] sm:$0xff] }
 0xd18   :  { %7209 = vmatprep.subr.mxu0 %v7797_v19  ;;  %7320 = vmatpush3.msra.mxu1 %v4207_v17  ;;  %v4806_v17 = vld [vmem:[#allocation19 + $0x28] sm:$0xff] }
 0xd19   :  { %7210 = vmatpush3.msra.mxu0 %v5684_v27  ;;  %v7281_v29 = vpop.f32.mrf.mxu1  ;;  %7321 = vmatprep.subr.mxu1 %v7797_v19  ;;  %v4987_v27 = vld [vmem:[#allocation21 + $0x10] sm:$0xff] }
 0xd1a   :  { %7211 = vmatprep.subr.mxu0 %v7797_v19  ;;  %7322 = vmatpush3.msra.mxu1 %v4206_v63  ;;  %v4811_v63 = vld [vmem:[#allocation19 + $0x50] sm:$0xff]  ;;  %v4985_v29 = vld [vmem:[#allocation21] sm:$0xff] }
 0xd1b   :  { %7212 = vmatpush3.msra.mxu0 %v5683_v28  ;;  %7323 = vmatprep.mubr.msk.f32.mxu1 %vm7798_vm2, %v7797_v19  ;;  %v4986_v28 = vld [vmem:[#allocation21 + $0x8] sm:$0xff] }
 0xd1c   :  { %7213 = vmatprep.subr.mxu0 %v7797_v19 }
 0xd1d   :  { %7214 = vmatpush3.msra.mxu0 %v5682_v61  ;;  %v4984_v61 = vld [vmem:[%s8932_s2] sm:$0xff] }
 0xd1e   :  { %7215 = vmatprep.subr.mxu0 %v7797_v19 }
 0xd1f   :  { %7216 = vmatpush3.msra.mxu0 %v5681_v30  ;;  %v5077_v30 = vld [vmem:[#allocation22 + $0x28] sm:$0xff] }
 0xd20   :  { %7217 = vmatprep.subr.mxu0 %v7797_v19 }
 0xd21   :  { %7218 = vmatpush3.msra.mxu0 %v5680_v31  ;;  %v7424_v43 = vpop.eup %7423  ;;  %v5076_v31 = vld [vmem:[#allocation22 + $0x20] sm:$0xff] }
 0xd22   :  { %7219 = vmatprep.subr.mxu0 %v7797_v19 }
 0xd23   :  { %7220 = vmatpush3.msra.mxu0 %v5679_v48  ;;  %v5075_v48 = vld [vmem:[#allocation22 + $0x18] sm:$0xff] }
 0xd24   :  { %7221 = vmatprep.subr.mxu0 %v7797_v19 }
 0xd25   :  { %7222 = vmatpush3.msra.mxu0 %v5678_v32  ;;  %v5074_v32 = vld [vmem:[#allocation22 + $0x10] sm:$0xff] }
 0xd26   :  { %7223 = vmatprep.subr.mxu0 %v7797_v19 }
 0xd27   :  { %7224 = vmatpush3.msra.mxu0 %v5677_v33  ;;  %v5072_v33 = vld [vmem:[#allocation22] sm:$0xff] }
 0xd28   :  { %7225 = vmatprep.subr.mxu0 %v7797_v19 }
 0xd29   :  { %7226 = vmatpush3.msra.mxu0 %v5676_v35  ;;  %v4819_v35 = vlaneseq }
 0xd2a   :  { %7227 = vmatprep.subr.mxu0 %v7797_v19 }
 0xd2b   :  { %7228 = vmatpush3.msra.mxu0 %v5675_v50  ;;  %v8788_v50 = vshrl.u32 %v4819_v35, 7  ;;  %v5177_v35 = vld [vmem:[%s7937_s25 + $0x70] sm:$0xff] }
 0xd2c   :  { %7229 = vmatprep.subr.mxu0 %v7797_v19 }
 0xd2d   :  { %7230 = vmatpush3.msra.mxu0 %v5674_v37  ;;  %v4833_v37 = vsub.s32 3, %v8788_v50 }
 0xd2e   :  { %7231 = vmatprep.subr.mxu0 %v7797_v19 }
 0xd2f   :  { %7232 = vmatpush3.msra.mxu0 %v5673_v39 }
 0xd30   :  { %7233 = vmatprep.subr.mxu0 %v7797_v19 }
 0xd31   :  { %7234 = vmatpush3.msra.mxu0 %v5672_v41 }
 0xd32   :  { %7236 = vmatmul.mubr.f32.vlgmr.msra.gmra.mxu0 %v8525_v12  ;;  %7260 = vmatprep.subr.mxu0 %v7797_v19 }
 0xd33   :  { %7261 = vmatpush3.msra.mxu0 %v8629_v11  ;;  %7268 = vmatprep.mubr.msk.f32.mxu0 %vm7798_vm2, %v7797_v19 }
 0xd34   :  { %7262 = vmatprep.subr.mxu0 %v7797_v19 }
 0xd35   :  { %7263 = vmatpush3.msra.mxu0 %v8633_v13 }
 0xd36   :  { %7264 = vmatprep.subr.mxu0 %v7797_v19 }
 0xd37   :  { %7265 = vmatpush3.msra.mxu0 %v8639_v62 }
 0xd38   :  { %7266 = vmatprep.subr.mxu0 %v7797_v19 }
 0xd39   :  { %7267 = vmatpush3.msra.mxu0 %v8643_v15 }
 0xd3a   :  { %7269 = vmatmul.mubr.msk.f32.vlgmr.msra.gmra.mxu0 %vm2936_vm3, %v7424_v43  ;;  %7282 = vmatprep.subr.mxu0 %v7797_v19  ;;  %v5699_v43 = vld [vmem:[%s8933_s17] ss:$0 sm:$0xff] }
 0xd3b   :  { %7283 = vmatpush3.msra.mxu0 %v8629_v11  ;;  %7290 = vmatprep.mubr.msk.f32.mxu0 %vm7798_vm2, %v7797_v19 }
 0xd3c   :  { %7284 = vmatprep.subr.mxu0 %v7797_v19 }
 0xd3d   :  { %7285 = vmatpush3.msra.mxu0 %v8633_v13 }
 0xd3e   :  { %7286 = vmatprep.subr.mxu0 %v7797_v19 }
 0xd3f   :  { %7287 = vmatpush3.msra.mxu0 %v8639_v62 }
 0xd40   :  { %7288 = vmatprep.subr.mxu0 %v7797_v19 }
 0xd41   :  { %7289 = vmatpush3.msra.mxu0 %v8643_v15 }
 0xd42   :  { %7304 = vmatprep.subr.mxu0 %v7797_v19 }
 0xdd2   :  { %v4130_v12 = vpop.f32.mrf.mxu0  ;;  %v4647_v52 = vpop.f32.mrf.mxu1 }
 0xdd4   :  { %v7202_v45 = vpop.f32.mrf.mxu0  ;;  %v7303_v47 = vpop.f32.mrf.mxu1 }
 0xdf2   :  { %v4200_v49 = vpop.f32.mrf.mxu0 }
 0xdf3   :  { %v4201_v1 = vadd.f32 %v4200_v49, %v4130_v12  ;;  %v8797_v12 = vld [vmem:[%s8934_s3] sm:$0xf] }
 0xdf4   :  { %v7237_v54 = vpop.f32.mrf.mxu0  ;;  %v4834_v45 = vrot.slane %v8797_v12, %v4833_v37  ;;  %v5192_v37 = vld [vmem:[%s7937_s25 + $0xe8] sm:$0xff] }
 0xdf5   :  { %v4204_v51 = vadd.f32 %v8539_v24, %v4201_v1 }
 0xdf7   :  { %7425 = vtanh.f32 %v4204_v51  ;;  %v5210_v51 = vld [vmem:[%s7937_s25 + $0x178] sm:$0xff] }
 0xdfa   :  { %v4432_v3 = vpop.f32.mrf.mxu0 }
 0xdfb   :  { %v4503_v56 = vadd.f32 %v8684_v46, %v4432_v3  ;;  %v5078_v46 = vld [vmem:[#allocation22 + $0x30] sm:$0xff] }
 0xdfc   :  { %v7270_v53 = vpop.f32.mrf.mxu0 }
 0xdfd   :  { %v4506_v4 = vadd.f32 %v8705_v34, %v4503_v56  ;;  %v5209_v53 = vld [vmem:[%s7937_s25 + $0x170] sm:$0xff] }
 0xdff   :  { %7427 = vtanh.f32 %v4506_v4  ;;  %v5208_v4 = vld [vmem:[%s7937_s25 + $0x168] sm:$0xff] }
 0xe04   :  { %v7426_v5 = vpop.eup %7425 }
 0xe05   :  { %7324 = vmatmul.mubr.msk.f32.vlgmr.msra.gmra.mxu1 %vm2936_vm3, %v7426_v5  ;;  %v5207_v5 = vld [vmem:[%s7937_s25 + $0x160] sm:$0xff] }
 0xe06   :  { %4977 = vmatprep.mubr.f32.mxu1 %v7797_v19 }
 0xe0c   :  { %v7428_v7 = vpop.eup %7427 }
 0xe0d   :  { %7291 = vmatmul.mubr.msk.f32.vlgmr.msra.gmra.mxu0 %vm2936_vm3, %v7428_v7  ;;  %v5206_v7 = vld [vmem:[%s7937_s25 + $0x158] sm:$0xff] }
 0xe0e   :  { %7305 = vmatpush3.msra.mxu0 %v8629_v11  ;;  %7312 = vmatprep.mubr.msk.f32.mxu0 %vm7798_vm2, %v7797_v19  ;;  %v4813_v11 = vld [vmem:[#allocation19 + $0x60] sm:$0xff] }
 0xe0f   :  { %7306 = vmatprep.subr.mxu0 %v7797_v19 }
 0xe10   :  { %7307 = vmatpush3.msra.mxu0 %v8633_v13  ;;  %v4816_v13 = vld [vmem:[#allocation19 + $0x78] sm:$0xff] }
 0xe11   :  { %7308 = vmatprep.subr.mxu0 %v7797_v19  ;;  %4937 = vmatprep.subr.mxu1 %v4816_v13  ;;  %v5196_v13 = vld [vmem:[%s7937_s25 + $0x108] sm:$0xff] }
 0xe12   :  { %7309 = vmatpush3.msra.mxu0 %v8639_v62  ;;  %v4810_v62 = vld [vmem:[#allocation19 + $0x48] sm:$0xff] }
 0xe13   :  { %7310 = vmatprep.subr.mxu0 %v7797_v19 }
 0xe14   :  { %7311 = vmatpush3.msra.mxu0 %v8643_v15  ;;  %v4815_v15 = vld [vmem:[#allocation19 + $0x70] sm:$0xff] }
 0xe15   :  { %4866 = vmatprep.subr.mxu0 %v4814_v57  ;;  %4938 = vmatpush1.msra.mxu1 %v4815_v15  ;;  %v5198_v57 = vld [vmem:[%s7937_s25 + $0x118] sm:$0xff]  ;;  %v5224_v15 = vld [vmem:[%s7937_s25 + $0x1e8] sm:$0xff] }
 0xe16   :  { %4939 = vmatprep.subr.mxu1 %v4812_v0  ;;  %v5222_v0 = vld [vmem:[%s7937_s25 + $0x1d8] sm:$0xff] }
 0xe17   :  { %4940 = vmatpush1.msra.mxu1 %v4811_v63  ;;  %v5220_v63 = vld [vmem:[%s7937_s25 + $0x1c8] sm:$0xff] }
 0xe18   :  { %4941 = vmatprep.subr.mxu1 %v4808_v20  ;;  %v5218_v20 = vld [vmem:[%s7937_s25 + $0x1b8] sm:$0xff] }
 0xe19   :  { %4942 = vmatpush1.msra.mxu1 %v4807_v6  ;;  %v5216_v6 = vld [vmem:[%s7937_s25 + $0x1a8] sm:$0xff] }
 0xe1a   :  { %4943 = vmatprep.subr.mxu1 %v4804_v42  ;;  %v5215_v42 = vld [vmem:[%s7937_s25 + $0x1a0] sm:$0xff] }
 0xe1b   :  { %4944 = vmatpush1.msra.mxu1 %v4803_v23  ;;  %v5214_v23 = vld [vmem:[%s7937_s25 + $0x198] sm:$0xff] }
 0xe1c   :  { %7337 = vmatprep.subr.mxu1 %v7797_v19 }
 0xec5   :  { %v4795_v24 = vpop.f32.mrf.mxu1 }
 0xec7   :  { %v7325_v8 = vpop.f32.mrf.mxu1 }
 0xec8   :  { %v5204_v8 = vld [vmem:[%s7937_s25 + $0x148] sm:$0xff] }
 0xecd   :  { %v4577_v58 = vpop.f32.mrf.mxu0 }
 0xece   :  { %v4648_v55 = vadd.f32 %v4647_v52, %v4577_v58  ;;  %v5203_v58 = vld [vmem:[%s7937_s25 + $0x140] sm:$0xff] }
 0xecf   :  { %v7292_v9 = vpop.f32.mrf.mxu0 }
 0xed0   :  { %v4651_v10 = vadd.f32 %v8705_v34, %v4648_v55  ;;  %v5202_v55 = vld [vmem:[%s7937_s25 + $0x138] sm:$0xff]  ;;  %v5201_v9 = vld [vmem:[%s7937_s25 + $0x130] sm:$0xff] }
 0xed2   :  { %7429 = vtanh.f32 %v4651_v10  ;;  %v5200_v10 = vld [vmem:[%s7937_s25 + $0x128] sm:$0xff] }
 0xedf   :  { %v7430_v60 = vpop.eup %7429 }
 0xee0   :  { %7313 = vmatmul.mubr.msk.f32.vlgmr.msra.gmra.mxu0 %vm2936_vm3, %v7430_v60  ;;  %v5199_v60 = vld [vmem:[%s7937_s25 + $0x120] sm:$0xff] }
 0xee1   :  { %4906 = vmatprep.mubr.f32.mxu0 %v7797_v19  ;;  %4867 = vmatpush1.msra.mxu0 %v4813_v11  ;;  %v5197_v11 = vld [vmem:[%s7937_s25 + $0x110] sm:$0xff] }
 0xee2   :  { %4868 = vmatprep.subr.mxu0 %v4810_v62  ;;  %v5195_v62 = vld [vmem:[%s7937_s25 + $0x100] sm:$0xff] }
 0xee3   :  { %4869 = vmatpush1.msra.mxu0 %v4809_v16  ;;  %v5223_v16 = vld [vmem:[%s7937_s25 + $0x1e0] sm:$0xff] }
 0xee4   :  { %4870 = vmatprep.subr.mxu0 %v4806_v17  ;;  %v5221_v17 = vld [vmem:[%s7937_s25 + $0x1d0] sm:$0xff] }
 0xee5   :  { %4871 = vmatpush1.msra.mxu0 %v4805_v40  ;;  %v5219_v40 = vld [vmem:[%s7937_s25 + $0x1c0] sm:$0xff] }
 0xee6   :  { %4872 = vmatprep.subr.mxu0 %v4802_v21  ;;  %v5217_v21 = vld [vmem:[%s7937_s25 + $0x1b0] sm:$0xff] }
 0xee7   :  { %4873 = vmatpush1.msra.mxu0 %v4801_v22  ;;  %v4829_v22 = vsub.s32 2, %v8788_v50 }
 0xee8   :  { %7326 = vmatprep.subr.mxu0 %v7797_v19 }
 0xfa0   :  { %v4722_v44 = vpop.f32.mrf.mxu0 }
 0xfa1   :  { %v4796_v14 = vadd.f32 %v4795_v24, %v4722_v44  ;;  %v5205_v24 = vld [vmem:[%s7937_s25 + $0x150] sm:$0xff] }
 0xfa2   :  { %v7314_v25 = vpop.f32.mrf.mxu0  ;;  %v5213_v44 = vld [vmem:[%s7937_s25 + $0x190] sm:$0xff] }
 0xfa3   :  { %v4799_v26 = vadd.f32 %v8705_v34, %v4796_v14  ;;  %v5228_v34 = vld [vmem:[#allocation24 + $0x18] sm:$0xff]  ;;  %v4830_v14 = vrot.slane %v8797_v12, %v4829_v22 }
 0xfa4   :  { %v5212_v25 = vld [vmem:[%s7937_s25 + $0x188] sm:$0xff] }
 0xfa5   :  { %7431 = vtanh.f32 %v4799_v26  ;;  %v5211_v26 = vld [vmem:[%s7937_s25 + $0x180] sm:$0xff] }
 0xfb2   :  { %v7432_v36 = vpop.eup %7431 }
 0xfb3   :  { %5697 = vmatmul.mubr.msk.f32.vlgmr.msra.gmra.mxu0 %vm2936_vm3, %v7432_v36  ;;  %5698 = vmatmul.mubr.msk.f32.vlgmr.msra.gmra.mxu1 %vm2936_vm3, %v7432_v36  ;;  %v5227_v36 = vld [vmem:[#allocation24 + $0x10] sm:$0xff] }
 0xfb4   :  { %7327 = vmatpush3.msra.mxu0 %v4988_v59  ;;  %7334 = vmatprep.mubr.msk.f32.mxu0 %vm7798_vm2, %v7797_v19 }
 0xfb5   :  { %7328 = vmatprep.subr.mxu0 %v7797_v19  ;;  %7338 = vmatpush3.msra.mxu1 %v5079_v38  ;;  %v5226_v38 = vld [vmem:[#allocation24 + $0x8] sm:$0xff] }
 0xfb6   :  { %7329 = vmatpush3.msra.mxu0 %v4987_v27  ;;  %7339 = vmatprep.subr.mxu1 %v7797_v19  ;;  %v5225_v27 = vld [vmem:[#allocation24] sm:$0xff] }
 0xfb7   :  { %7330 = vmatprep.subr.mxu0 %v7797_v19  ;;  %7340 = vmatpush3.msra.mxu1 %v5078_v46  ;;  %v5194_v46 = vld [vmem:[%s7937_s25 + $0xf8] sm:$0xff] }
 0xfb8   :  { %7331 = vmatpush3.msra.mxu0 %v4986_v28  ;;  %7341 = vmatprep.subr.mxu1 %v7797_v19  ;;  %v4825_v28 = vsub.s32 1, %v8788_v50 }
 0xfb9   :  { %7332 = vmatprep.subr.mxu0 %v7797_v19  ;;  %7353 = vmatprep.mubr.msk.f32.mxu1 %vm7798_vm2, %v7797_v19 }
 0xfba   :  { %7333 = vmatpush3.msra.mxu0 %v4985_v29  ;;  %7342 = vmatpush3.msra.mxu1 %v5077_v30  ;;  %v5701_v29 = vld [vmem:[%s8935_s7] ss:$0 sm:$0xff]  ;;  %v4826_v30 = vrot.slane %v8797_v12, %v4825_v28 }
 0xfbb   :  { %7335 = vmatmul.mubr.msk.f32.vlgmr.msra.gmra.mxu0 %vm2936_vm3, %v4984_v61  ;;  %7356 = vmatprep.subr.mxu0 %v7797_v19 }
 0xfbc   :  { %7364 = vmatprep.mubr.msk.f32.mxu0 %vm7798_vm2, %v7797_v19  ;;  %7343 = vmatprep.subr.mxu1 %v7797_v19 }
 0xfbd   :  { %7344 = vmatpush3.msra.mxu1 %v5076_v31  ;;  %7357 = vmatpush3.msra.mxu0 %v5228_v34  ;;  %v5193_v34 = vld [vmem:[%s7937_s25 + $0xf0] sm:$0xff] }
 0xfbe   :  { %7345 = vmatprep.subr.mxu1 %v7797_v19  ;;  %7358 = vmatprep.subr.mxu0 %v7797_v19 }
 0xfbf   :  { %7346 = vmatpush3.msra.mxu1 %v5075_v48  ;;  %7359 = vmatpush3.msra.mxu0 %v5227_v36 }
 0xfc0   :  { %7347 = vmatprep.subr.mxu1 %v7797_v19  ;;  %7360 = vmatprep.subr.mxu0 %v7797_v19 }
 0xfc1   :  { %7348 = vmatpush3.msra.mxu1 %v5074_v32  ;;  %7361 = vmatpush3.msra.mxu0 %v5226_v38  ;;  %v5178_v32 = vld [vmem:[%s7937_s25 + $0x78] sm:$0xff] }
 0xfc2   :  { %7349 = vmatprep.subr.mxu1 %v7797_v19  ;;  %7362 = vmatprep.subr.mxu0 %v7797_v19 }
 0xfc3   :  { %7350 = vmatpush3.msra.mxu1 %v5073_v2  ;;  %7363 = vmatpush3.msra.mxu0 %v5225_v27 }
 0xfc4   :  { %7351 = vmatprep.subr.mxu1 %v7797_v19  ;;  %6271 = vmatprep.subr.mxu0 %v5194_v46 }
 0xfc5   :  { %7352 = vmatpush3.msra.mxu1 %v5072_v33 }
 0xfc6   :  { %5376 = vmatprep.subr.mxu1 %v7797_v19 }
0x1073   :  { %v8786_v18 = vpop.f32.mrf.mxu0  ;;  %v8791_v39 = vpop.f32.mrf.mxu1 }
0x1074   :  { %v4980_v59 = vadd.f32 %v8791_v39, %v4830_v14  ;;  %v5176_v39 = vld [vmem:[%s7937_s25 + $0x68] sm:$0xff] }
0x1075   :  { %v8793_v41 = vpop.f32.mrf.mxu0  ;;  %v4981_v49 = vpop.f32.mrf.mxu1 }
0x1076   :  { %v4982_v3 = vadd.f32 %v4981_v49, %v4834_v45  ;;  %v4911_v2 = vadd.f32 %v8793_v41, %v4826_v30  ;;  %v5175_v41 = vld [vmem:[%s7937_s25 + $0x60] sm:$0xff]  ;;  %v5174_v45 = vld [vmem:[%s7937_s25 + $0x58] sm:$0xff]  ;;  %v5173_v49 = vld [vmem:[%s7937_s25 + $0x50] sm:$0xff] }
0x107b   :  { %v5065_v52 = vpop.f32.mrf.mxu0 }
0x107c   :  { %v5066_v47 = vadd.f32 %v5699_v43, %v5065_v52  ;;  %v5191_v43 = vld [vmem:[%s7937_s25 + $0xe0] sm:$0xff]  ;;  %v5190_v52 = vld [vmem:[%s7937_s25 + $0xd8] sm:$0xff] }
0x107d   :  { %v7336_v1 = vpop.f32.mrf.mxu0 }
0x107e   :  { %vm5069_vm4 = vcmp.ge.f32.partialorder %v5066_v47, 0.0  ;;  %v5070_v54 = vmul.f32 0.01, %v5066_v47  ;;  %v5188_v1 = vld [vmem:[%s7937_s25 + $0xc8] sm:$0xff] }
0x1080   :  { %v5071_v56 = vsel %vm5069_vm4, %v5066_v47, %v5070_v54  ;;  %v5189_v47 = vld [vmem:[%s7937_s25 + $0xd0] sm:$0xff]  ;;  %v5172_v54 = vld [vmem:[%s7937_s25 + $0x48] sm:$0xff] }
0x1081   :  { %7354 = vmatmul.mubr.msk.f32.vlgmr.msra.gmra.mxu1 %vm1805_vm1, %v5071_v56  ;;  %v5186_v56 = vld [vmem:[%s7937_s25 + $0xb8] sm:$0xff] }
0x1082   :  { %5377 = vmatpush1.msra.mxu1 %v5210_v51  ;;  %5704 = vmatprep.mubr.msk.f32.mxu1 %vm5302_vm5, %v4982_v3  ;;  %v5187_v51 = vld [vmem:[%s7937_s25 + $0xc0] sm:$0xff] }
0x1083   :  { %5378 = vmatprep.subr.mxu1 %v7797_v19  ;;  %v5171_v3 = vld [vmem:[%s7937_s25 + $0x40] sm:$0xff] }
0x1084   :  { %5379 = vmatpush1.msra.mxu1 %v5209_v53  ;;  %v5170_v53 = vld [vmem:[%s7937_s25 + $0x38] sm:$0xff] }
0x1085   :  { %5380 = vmatprep.subr.mxu1 %v7797_v19 }
0x1086   :  { %5381 = vmatpush1.msra.mxu1 %v5208_v4  ;;  %v5185_v4 = vld [vmem:[%s7937_s25 + $0xb0] sm:$0xff] }
0x1087   :  { %5382 = vmatprep.subr.mxu1 %v7797_v19 }
0x1088   :  { %5383 = vmatpush1.msra.mxu1 %v5207_v5  ;;  %v5169_v5 = vld [vmem:[%s7937_s25 + $0x30] sm:$0xff] }
0x1089   :  { %5384 = vmatprep.subr.mxu1 %v7797_v19 }
0x108a   :  { %5385 = vmatpush1.msra.mxu1 %v5206_v7  ;;  %v5184_v7 = vld [vmem:[%s7937_s25 + $0xa8] sm:$0xff] }
0x108b   :  { %5386 = vmatprep.subr.mxu1 %v7797_v19 }
0x108c   :  { %5387 = vmatpush1.msra.mxu1 %v5205_v24  ;;  %v5168_v24 = vld [vmem:[%s7937_s25 + $0x28] sm:$0xff] }
0x108d   :  { %5388 = vmatprep.subr.mxu1 %v7797_v19 }
0x108e   :  { %5389 = vmatpush1.msra.mxu1 %v5204_v8  ;;  %v5183_v8 = vld [vmem:[%s7937_s25 + $0xa0] sm:$0xff] }
0x108f   :  { %5390 = vmatprep.subr.mxu1 %v7797_v19 }
0x1090   :  { %5391 = vmatpush1.msra.mxu1 %v5203_v58  ;;  %v5167_v58 = vld [vmem:[%s7937_s25 + $0x20] sm:$0xff] }
0x1091   :  { %5392 = vmatprep.subr.mxu1 %v7797_v19 }
0x1092   :  { %5393 = vmatpush1.msra.mxu1 %v5202_v55  ;;  %v5182_v55 = vld [vmem:[%s7937_s25 + $0x98] sm:$0xff] }
0x1093   :  { %5394 = vmatprep.subr.mxu1 %v7797_v19 }
0x1094   :  { %5395 = vmatpush1.msra.mxu1 %v5201_v9  ;;  %v4821_v9 = vsub.s32 0, %v8788_v50 }
0x1095   :  { %5396 = vmatprep.subr.mxu1 %v7797_v19 }
0x1096   :  { %5397 = vmatpush1.msra.mxu1 %v5200_v10  ;;  %v5166_v10 = vld [vmem:[%s7937_s25 + $0x18] sm:$0xff] }
0x1097   :  { %5398 = vmatprep.subr.mxu1 %v7797_v19 }
0x1098   :  { %5399 = vmatpush1.msra.mxu1 %v5199_v60  ;;  %v5181_v60 = vld [vmem:[%s7937_s25 + $0x90] sm:$0xff] }
0x1099   :  { %5400 = vmatprep.subr.mxu1 %v7797_v19 }
0x109a   :  { %5401 = vmatpush1.msra.mxu1 %v5198_v57  ;;  %v5165_v57 = vld [vmem:[%s7937_s25 + $0x10] sm:$0xff] }
0x109b   :  { %5402 = vmatprep.subr.mxu1 %v7797_v19 }
0x109c   :  { %5403 = vmatpush1.msra.mxu1 %v5197_v11  ;;  %v5180_v11 = vld [vmem:[%s7937_s25 + $0x88] sm:$0xff] }
0x109d   :  { %5404 = vmatprep.subr.mxu1 %v7797_v19 }
0x109e   :  { %5405 = vmatpush1.msra.mxu1 %v5196_v13  ;;  %v4822_v13 = vrot.slane %v8797_v12, %v4821_v9 }
0x109f   :  { %5406 = vmatprep.subr.mxu1 %v7797_v19 }
0x10a0   :  { %5407 = vmatpush1.msra.mxu1 %v5195_v62  ;;  %v5164_v62 = vld [vmem:[%s7937_s25 + $0x8] sm:$0xff]  ;;  %v4909_v50 = vadd.f32 %v8786_v18, %v4822_v13 }
0x10a1   :  { %5412 = vmatprep.subr.mxu1 %v7797_v19 }
0x10a2   :  { %5413 = vmatpush2.msra.mxu1 %v5224_v15  ;;  %v5179_v15 = vld [vmem:[%s7937_s25 + $0x80] sm:$0xff] }
0x10a3   :  { %5414 = vmatprep.subr.mxu1 %v7797_v19 }
0x10a4   :  { %5415 = vmatpush2.msra.mxu1 %v5223_v16  ;;  %v5163_v16 = vld [vmem:[%s7937_s25] sm:$0xff] }
0x10a5   :  { %5416 = vmatprep.subr.mxu1 %v7797_v19 }
0x10a6   :  { %5417 = vmatpush2.msra.mxu1 %v5222_v0 }
0x10a7   :  { %5418 = vmatprep.subr.mxu1 %v7797_v19 }
0x10a8   :  { %5419 = vmatpush2.msra.mxu1 %v5221_v17 }
0x10a9   :  { %5420 = vmatprep.subr.mxu1 %v7797_v19 }
0x10aa   :  { %5421 = vmatpush2.msra.mxu1 %v5220_v63 }
0x10ab   :  { %5422 = vmatprep.subr.mxu1 %v7797_v19 }
0x10ac   :  { %5423 = vmatpush2.msra.mxu1 %v5219_v40 }
0x10ad   :  { %5424 = vmatprep.subr.mxu1 %v7797_v19 }
0x10ae   :  { %5425 = vmatpush2.msra.mxu1 %v5218_v20 }
0x10af   :  { %5426 = vmatprep.subr.mxu1 %v7797_v19 }
0x10b0   :  { %5427 = vmatpush2.msra.mxu1 %v5217_v21 }
0x10b1   :  { %5428 = vmatprep.subr.mxu1 %v7797_v19 }
0x10b2   :  { %5429 = vmatpush2.msra.mxu1 %v5216_v6 }
0x10b3   :  { %5430 = vmatprep.subr.mxu1 %v7797_v19 }
0x10b4   :  { %5431 = vmatpush2.msra.mxu1 %v5215_v42  ;;  %v5705_v42 = vld [vmem:[%s7947_s5] ss:$0 sm:$0xff] }
0x10b5   :  { %5432 = vmatprep.subr.mxu1 %v7797_v19 }
0x10b6   :  { %5433 = vmatpush2.msra.mxu1 %v5214_v23 }
0x10b7   :  { %5434 = vmatprep.subr.mxu1 %v7797_v19 }
0x10b8   :  { %5435 = vmatpush2.msra.mxu1 %v5213_v44 }
0x10b9   :  { %5436 = vmatprep.subr.mxu1 %v7797_v19 }
0x10ba   :  { %5437 = vmatpush2.msra.mxu1 %v5212_v25 }
0x10bb   :  { %5438 = vmatprep.subr.mxu1 %v7797_v19 }
0x10bc   :  { %5439 = vmatpush2.msra.mxu1 %v5211_v26 }
0x10bd   :  { %5441 = vmatmul.mubr.f32.vlgmr.msra.gmra.mxu1 %v4980_v59 }
0x1141   :  { %v5156_v61 = vpop.f32.mrf.mxu1 }
0x1142   :  { %v5157_v31 = vadd.f32 %v5701_v29, %v5156_v61 }
0x1143   :  { %v7355_v48 = vpop.f32.mrf.mxu1 }
0x1144   :  { %vm5160_vm6 = vcmp.ge.f32.partialorder %v5157_v31, 0.0  ;;  %v5161_v19 = vmul.f32 0.01, %v5157_v31 }
0x1146   :  { %v5162_v33 = vsel %vm5160_vm6, %v5157_v31, %v5161_v19 }
0x1147   :  { %7365 = vmatmul.mubr.msk.f32.vlgmr.msra.gmra.mxu0 %vm2936_vm3, %v5162_v33 }
0x1148   :  { %6272 = vmatpush3.msra.mxu0 %v5178_v32  ;;  %5370 = vmatprep.mubr.f32.mxu0 %v4911_v2 }
0x1149   :  { %6273 = vmatprep.subr.mxu0 %v5193_v34 }
0x114a   :  { %6274 = vmatpush3.msra.mxu0 %v5177_v35 }
0x114b   :  { %6275 = vmatprep.subr.mxu0 %v5192_v37 }
0x114c   :  { %6276 = vmatpush3.msra.mxu0 %v5176_v39 }
0x114d   :  { %6277 = vmatprep.subr.mxu0 %v5191_v43 }
0x114e   :  { %6278 = vmatpush3.msra.mxu0 %v5175_v41 }
0x114f   :  { %6279 = vmatprep.subr.mxu0 %v5190_v52 }
0x1150   :  { %6280 = vmatpush3.msra.mxu0 %v5174_v45 }
0x1151   :  { %6281 = vmatprep.subr.mxu0 %v5189_v47 }
0x1152   :  { %6282 = vmatpush3.msra.mxu0 %v5173_v49 }
0x1153   :  { %6283 = vmatprep.subr.mxu0 %v5188_v1 }
0x1154   :  { %6284 = vmatpush3.msra.mxu0 %v5172_v54 }
0x1155   :  { %6285 = vmatprep.subr.mxu0 %v5187_v51 }
0x1156   :  { %6286 = vmatpush3.msra.mxu0 %v5171_v3 }
0x1157   :  { %6287 = vmatprep.subr.mxu0 %v5186_v56 }
0x1158   :  { %6288 = vmatpush3.msra.mxu0 %v5170_v53 }
0x1159   :  { %6289 = vmatprep.subr.mxu0 %v5185_v4 }
0x115a   :  { %6290 = vmatpush3.msra.mxu0 %v5169_v5 }
0x115b   :  { %6291 = vmatprep.subr.mxu0 %v5184_v7 }
0x115c   :  { %6292 = vmatpush3.msra.mxu0 %v5168_v24 }
0x115d   :  { %6293 = vmatprep.subr.mxu0 %v5183_v8 }
0x115e   :  { %6294 = vmatpush3.msra.mxu0 %v5167_v58 }
0x115f   :  { %6295 = vmatprep.subr.mxu0 %v5182_v55 }
0x1160   :  { %6296 = vmatpush3.msra.mxu0 %v5166_v10 }
0x1161   :  { %6297 = vmatprep.subr.mxu0 %v5181_v60 }
0x1162   :  { %6298 = vmatpush3.msra.mxu0 %v5165_v57 }
0x1163   :  { %6299 = vmatprep.subr.mxu0 %v5180_v11 }
0x1164   :  { %6300 = vmatpush3.msra.mxu0 %v5164_v62 }
0x1165   :  { %6301 = vmatprep.subr.mxu0 %v5179_v15 }
0x1166   :  { %6302 = vmatpush3.msra.mxu0 %v5163_v16 }
0x1167   :  { %5371 = vmatmul.mubr.f32.vlgmr.msra.gmra.mxu0 %v4909_v50 }
0x117d   :  { %v5442_v0 = vpop.f32.mrf.mxu1 }
0x117f   :  { %v5444_v17 = vpop.f32.mrf.mxu1 }
0x1207   :  { %v5298_v63 = vpop.f32.mrf.mxu0 }
0x1209   :  { %v7366_v40 = vpop.f32.mrf.mxu0 }
0x1227   :  { %v6303_v20 = vpop.f32.mrf.mxu0 }
0x1229   :  { %v6304_v12 = vpop.f32.mrf.mxu0 }
0x122a   :  { %v6305_v21 = vadd.f32 %v6304_v12, %v6303_v20 }
0x122c   :  { %v5373_v6 = vadd.f32 %v6305_v21, %v5298_v63 }
0x122e   :  { %v5443_v22 = vadd.f32 %v5442_v0, %v5373_v6 }
0x1230   :  { %v5453_v23 = vadd.f32 %v5705_v42, %v5443_v22 }
0x1232   :  { %5454 = vst [vmem:[%s7952_s30] sm:$0xff] %v5453_v23 }
0x1233   :  { %5459 = vsyncpa [#allocation3], 1 }
0x1234   :  { %5460 = vsyncpa [#allocation5], 1 }
0x1235   :  { %5461 = vsyncpa [#allocation8], 1 }
0x1236   :  { %5462 = vsyncpa [#allocation11], 1 }
0x1237   :  { %5463 = vsyncpa [#allocation14], 1 }
0x1238   :  { %5464 = vsyncpa [#allocation17], 1 }
0x1239   :  { %5465 = vsyncpa [#allocation20], 1 }
0x123a   :  { %5466 = vsyncpa [#allocation23], 1 }

</bundles_post_ra>
